<compile_context>
chip_gen: v7x
topology: tpu7x:2x2x1
jax: 0.10.0
libtpu: 0.0.40
codegen_flags: <defaults>
</compile_context>

<pallas_src>
import functools

import jax
import jax.numpy as jnp
from jax.experimental import pallas as pl
from jax.experimental.pallas import tpu as pltpu

_LANE = 128
_BN_EPS = 1e-5


def _round_up(x, m):
    return (x + m - 1) // m * m


@functools.lru_cache(maxsize=1)
def _vmem_capacity_bytes():
    try:
        return int(pltpu.get_tpu_info().vmem_capacity_bytes)
    except Exception:
        return 64 * 1024 * 1024  # conservative (v7x per-TC VMEM)


def _conv3x3_kernel(xt_ref, w_ref, b_ref, s_ref, t_ref, m_ref, o_ref, *, q_rows, wp2):
    """Fused 3x3 stride-1 conv + bias + ReLU + BatchNorm(eval) affine on one halo tile.

    xt_ref: (1, 1, R2, Cp)  bf16 flattened halo tile: padded-image rows [i*TH, i*TH+TH+2)
                            of a ring-padded (H+2, W+2, Cp) image, rows flattened as
                            q = h' * (W+2) + w'.
    w_ref : (9, Cp, Fp)     bf16 folded conv weights, tap order (kh, kw)
    b_ref : (1, Fp)   f32   conv bias       (zero in padded channels)
    s_ref : (1, Fp)   f32   BN scale        (zero in padded channels)
    t_ref : (1, Fp)   f32   BN shift        (zero in padded channels)
    m_ref : (Q, 1)    f32   column mask: 0 at the two wrap-around columns of each row
    o_ref : (1, 1, Q, Fp)   bf16 output tile, Q = TH*(W+2); masked columns are exact zeros
                            so out_flat + flat pad == next layer's ring-padded input.
    """
    xv = xt_ref[0, 0]                                     # (R2, Cp) bf16
    acc = None
    for kh in range(3):
        for kw in range(3):
            d = kh * wp2 + kw                             # static tap offset in flat rows
            lhs = xv[d:d + q_rows, :]                     # row+col shift via static slice
            part = jnp.dot(lhs, w_ref[kh * 3 + kw],
                           preferred_element_type=jnp.float32)
            acc = part if acc is None else acc + part
    z = acc + b_ref[...]                                  # conv bias      (f32)
    a = jnp.maximum(z, 0.0)                               # ReLU
    y = (a * s_ref[...] + t_ref[...]) * m_ref[...]        # BN affine + wrap-column zeroing
    o_ref[0, 0] = y.astype(o_ref.dtype)                   # full, unmasked block store


def _plan_tiles(n_batch, h_img, wp2, cp, fp):
    """Pick the row tile TH (divides H) from the device VMEM capacity.

    Prefers the largest tile that fits the budget, keeps Q = TH*(W+2) sublane-aligned
    when possible, and keeps >=4 (else >=2) grid steps so both v7x TensorCores get work.
    """
    cap = _vmem_capacity_bytes()
    budget = int(cap * 0.35)
    vmem_limit = int(cap * 0.70)

    def est(th):
        r2 = _round_up((th + 2) * wp2 + 2, 8)
        q = th * wp2
        return (4 * r2 * cp * 2          # input halo tile: double buffer + slice temps (bf16)
                + 2 * q * fp * 2         # output tile, double buffered (bf16)
                + 2 * 9 * cp * fp * 2    # folded weights (double buffered)
                + 3 * q * fp * 4         # f32 accumulator + epilogue temps
                + 4 * q + 64 * fp)       # mask / bias / scale / shift

    divisors = [d for d in range(1, h_img + 1) if h_img % d == 0]
    fitting = [d for d in divisors if est(d) <= budget] or [1]

    def pick(cands):
        aligned = [t for t in cands if (t * wp2) % 8 == 0]
        return max(aligned or cands)

    th = pick(fitting)
    for min_steps in (4, 2):
        cands = [t for t in fitting if n_batch * (h_img // t) >= min_steps]
        if cands:
            th = pick(cands)
            break

    r2 = _round_up((th + 2) * wp2 + 2, 8)
    return dict(th=th, n_tiles=h_img // th, q=th * wp2, r2=r2,
                ext=r2 - (th + 2) * wp2, wp2=wp2, vmem_limit=vmem_limit)


def _fused_conv_bn_relu(pflat, w9, bvec, svec, tvec, mask, plan, *, interpret=False):
    """One fused conv3x3 + bias + ReLU + BN(eval) layer over a flat ring-padded input."""
    n = pflat.shape[0]
    cp = pflat.shape[-1]
    fp = w9.shape[-1]
    th, nt, q, r2, wp2 = plan["th"], plan["n_tiles"], plan["q"], plan["r2"], plan["wp2"]
    stride = th * wp2

    # Host staging of overlapping halo tiles (~(TH+2)/TH read amplification, one pass).
    xt = jnp.stack([pflat[:, i * stride:i * stride + r2, :] for i in range(nt)], axis=1)

    kernel = functools.partial(_conv3x3_kernel, q_rows=q, wp2=wp2)
    flops = 2 * n * nt * q * 9 * cp * fp
    bytes_accessed = (2 * (xt.size + w9.size + n * nt * q * fp)
                      + 4 * (bvec.size + svec.size + tvec.size + mask.size))

    return pl.pallas_call(
        kernel,
        out_shape=jax.ShapeDtypeStruct((n, nt, q, fp), jnp.bfloat16),
        grid=(n, nt),
        in_specs=[
            pl.BlockSpec((1, 1, r2, cp), lambda b, i: (b, i, 0, 0)),
            pl.BlockSpec((9, cp, fp), lambda b, i: (0, 0, 0)),
            pl.BlockSpec((1, fp), lambda b, i: (0, 0)),
            pl.BlockSpec((1, fp), lambda b, i: (0, 0)),
            pl.BlockSpec((1, fp), lambda b, i: (0, 0)),
            pl.BlockSpec((q, 1), lambda b, i: (0, 0)),
        ],
        out_specs=pl.BlockSpec((1, 1, q, fp), lambda b, i: (b, i, 0, 0)),
        compiler_params=pltpu.CompilerParams(
            dimension_semantics=("parallel", "parallel"),
            vmem_limit_bytes=plan["vmem_limit"]),
        cost_estimate=pl.CostEstimate(
            flops=flops, transcendentals=0, bytes_accessed=bytes_accessed),
        interpret=interpret,
    )(xt, w9, bvec, svec, tvec, mask)


def _fold_conv_weights(w_oihw, cp, fp):
    cout, cin = w_oihw.shape[0], w_oihw.shape[1]
    w = jnp.transpose(w_oihw, (2, 3, 1, 0))                           # (3, 3, Cin, Cout)
    w = jnp.pad(w, ((0, 0), (0, 0), (0, cp - cin), (0, fp - cout)))
    return w.reshape(9, cp, fp).astype(jnp.bfloat16)


def _pad_vec(v, fp):
    return jnp.pad(v.astype(jnp.float32), (0, fp - v.shape[0])).reshape(1, fp)


def _bn_affine(gamma, beta, mean, var):
    scale = gamma * jax.lax.rsqrt(var + _BN_EPS)
    shift = beta - mean * scale
    return scale, shift


@functools.partial(jax.jit, static_argnames=("interpret",))
def upsample_block(x_nchw, params, interpret=False):
    """Forward pass of Upsample_block (inference mode). NCHW in -> NCHW out (2x spatial)."""
    n, cin, h, w = x_nchw.shape
    wt = params["wt"]                                     # ConvTranspose2d weight (Cin, Cout, 3, 3)
    cout = wt.shape[1]
    ho, wo = 2 * h, 2 * w
    hp2, wp2 = ho + 2, wo + 2
    cp1 = _round_up(cin, _LANE)
    fp = _round_up(cout, _LANE)

    plan = _plan_tiles(n, ho, wp2, max(cp1, fp), fp)
    q, ext = plan["q"], plan["ext"]

    # Column mask: zero the two wrap-around columns of each flattened output row, so the
    # flattened output (plus a flat pad) is exactly the ring-padded input of the next layer.
    mask = (jnp.arange(q) % wp2 < wo).astype(jnp.float32).reshape(q, 1)

    x = jnp.transpose(x_nchw, (0, 2, 3, 1)).astype(jnp.bfloat16)      # NHWC bf16

    # ConvTranspose2d(k=3, s=2, p=1, output_padding=1) == stride-1 conv(pad=1) over the
    # zero-dilated input with the spatially flipped, (in,out)-transposed kernel.  Build the
    # dilated input directly inside the ring-padded flat layout.
    xpad = jnp.zeros((n, hp2, wp2, cp1), jnp.bfloat16)
    xpad = xpad.at[:, 1:ho + 1:2, 1:wo + 1:2, :cin].set(x)
    pflat = jnp.pad(xpad.reshape(n, hp2 * wp2, cp1), ((0, 0), (0, ext), (0, 0)))

    w1 = jnp.flip(jnp.transpose(wt, (1, 0, 2, 3)), axis=(2, 3))       # (Cout, Cin, 3, 3)
    layers = [
        (w1, cp1, params["b1"],
         *_bn_affine(params["bn1_gamma"], params["bn1_beta"],
                     params["bn1_mean"], params["bn1_var"])),
        (params["w2"], fp, params["b2"],
         *_bn_affine(params["bn2_gamma"], params["bn2_beta"],
                     params["bn2_mean"], params["bn2_var"])),
        (params["w3"], fp, params["b3"],
         *_bn_affine(params["bn3_gamma"], params["bn3_beta"],
                     params["bn3_mean"], params["bn3_var"])),
    ]

    out = None
    for li, (wconv, cp_in, bias, scale, shift) in enumerate(layers):
        if li > 0:
            # Previous flattened output (zeroed wrap columns) + one flat pad IS the next
            # layer's ring-padded flat input: no slice, no spatial re-pad, no transpose.
            yflat = out.reshape(n, ho * wp2, fp)
            pflat = jnp.pad(yflat, ((0, 0), (wp2 + 1, wp2 - 1 + ext), (0, 0)))
        out = _fused_conv_bn_relu(
            pflat, _fold_conv_weights(wconv, cp_in, fp), _pad_vec(bias, fp),
            _pad_vec(scale, fp), _pad_vec(shift, fp), mask, plan, interpret=interpret)

    y = out.reshape(n, ho, wp2, fp)[:, :, :wo, :cout]                 # drop wrap cols + chan pad
    return jnp.transpose(y, (0, 3, 1, 2)).astype(jnp.float32)         # back to NCHW f32


def _reference(x_nchw, params):
    """Pure-JAX reference (independent path: explicit scatter transpose-conv + lax conv)."""
    def bn(y, g, b, m, v):
        g, b, m, v = (a.reshape(1, -1, 1, 1) for a in (g, b, m, v))
        return g * (y - m) * jax.lax.rsqrt(v + _BN_EPS) + b

    n, cin, h, w = x_nchw.shape
    wt = params["wt"]
    cout = wt.shape[1]

    # ConvTranspose2d(k=3, s=2, p=1, output_padding=1) via its scatter definition.
    buf = jnp.zeros((n, cout, 2 * h + 2, 2 * w + 2), jnp.float32)
    for kh in range(3):
        for kw in range(3):
            contrib = jnp.einsum("nihw,io->nohw", x_nchw, wt[:, :, kh, kw],
                                 precision=jax.lax.Precision.HIGHEST)
            buf = buf.at[:, :, kh:kh + 2 * h:2, kw:kw + 2 * w:2].add(contrib)
    y = buf[:, :, 1:2 * h + 1, 1:2 * w + 1] + params["b1"].reshape(1, -1, 1, 1)
    y = jnp.maximum(y, 0.0)
    y = bn(y, params["bn1_gamma"], params["bn1_beta"], params["bn1_mean"], params["bn1_var"])

    def conv3(z, wgt, b):
        out = jax.lax.conv_general_dilated(
            z, wgt, window_strides=(1, 1), padding=((1, 1), (1, 1)),
            dimension_numbers=("NCHW", "OIHW", "NCHW"),
            precision=jax.lax.Precision.HIGHEST)
        return out + b.reshape(1, -1, 1, 1)

    y = jnp.maximum(conv3(y, params["w2"], params["b2"]), 0.0)
    y = bn(y, params["bn2_gamma"], params["bn2_beta"], params["bn2_mean"], params["bn2_var"])
    y = jnp.maximum(conv3(y, params["w3"], params["b3"]), 0.0)
    y = bn(y, params["bn3_gamma"], params["bn3_beta"], params["bn3_mean"], params["bn3_var"])
    return y


if __name__ == "__main__":
    N, Cin, Cout, H, W = 2, 4, 8, 16, 16
    key = jax.random.PRNGKey(0)
    ks = jax.random.split(key, 20)

    def unif(k, shape, bound):
        return jax.random.uniform(k, shape, minval=-bound, maxval=bound, dtype=jnp.float32)

    def bf16r(a):  # make values bf16-representable so bf16 storage in the kernel is exact
        return a.astype(jnp.bfloat16).astype(jnp.float32)

    x = bf16r(jax.random.normal(ks[0], (N, Cin, H, W), dtype=jnp.float32))
    b_t = 1.0 / float(jnp.sqrt(jnp.float32(Cin * 9)))
    b_c = 1.0 / float(jnp.sqrt(jnp.float32(Cout * 9)))

    params = dict(
        wt=bf16r(unif(ks[1], (Cin, Cout, 3, 3), b_t)),
        b1=unif(ks[2], (Cout,), b_t),
        bn1_gamma=jax.random.uniform(ks[3], (Cout,), minval=0.5, maxval=1.5, dtype=jnp.float32),
        bn1_beta=0.1 * jax.random.normal(ks[4], (Cout,), dtype=jnp.float32),
        bn1_mean=0.1 * jax.random.normal(ks[5], (Cout,), dtype=jnp.float32),
        bn1_var=jax.random.uniform(ks[6], (Cout,), minval=0.5, maxval=1.5, dtype=jnp.float32),
        w2=bf16r(unif(ks[7], (Cout, Cout, 3, 3), b_c)),
        b2=unif(ks[8], (Cout,), b_c),
        bn2_gamma=jax.random.uniform(ks[9], (Cout,), minval=0.5, maxval=1.5, dtype=jnp.float32),
        bn2_beta=0.1 * jax.random.normal(ks[10], (Cout,), dtype=jnp.float32),
        bn2_mean=0.1 * jax.random.normal(ks[11], (Cout,), dtype=jnp.float32),
        bn2_var=jax.random.uniform(ks[12], (Cout,), minval=0.5, maxval=1.5, dtype=jnp.float32),
        w3=bf16r(unif(ks[13], (Cout, Cout, 3, 3), b_c)),
        b3=unif(ks[14], (Cout,), b_c),
        bn3_gamma=jax.random.uniform(ks[15], (Cout,), minval=0.5, maxval=1.5, dtype=jnp.float32),
        bn3_beta=0.1 * jax.random.normal(ks[16], (Cout,), dtype=jnp.float32),
        bn3_mean=0.1 * jax.random.normal(ks[17], (Cout,), dtype=jnp.float32),
        bn3_var=jax.random.uniform(ks[18], (Cout,), minval=0.5, maxval=1.5, dtype=jnp.float32),
    )

    y = upsample_block(x, params)
    jax.block_until_ready(y)

    y_ref = _reference(x, params)
    assert y.shape == (N, Cout, 2 * H, 2 * W), y.shape
    max_err = float(jnp.max(jnp.abs(y - y_ref)))
    # bf16 activation storage between layers -> compare at bf16-level tolerance.
    assert jnp.allclose(y, y_ref, atol=3e-2, rtol=3e-2), max_err

    print("KERNEL_OK")
</pallas_src>

<mosaic_0001>
module attributes {stable_mosaic.version = 11 : i64} {
  func.func @_conv3x3_kernel(%arg0: i32, %arg1: i32, %arg2: memref<1x1x616x128xbf16, #tpu.memory_space<vmem>>, %arg3: memref<9x128x128xbf16, #tpu.memory_space<vmem>>, %arg4: memref<1x128xf32, #tpu.memory_space<vmem>>, %arg5: memref<1x128xf32, #tpu.memory_space<vmem>>, %arg6: memref<1x128xf32, #tpu.memory_space<vmem>>, %arg7: memref<544x1xf32, #tpu.memory_space<vmem>>, %arg8: memref<1x1x544x128xbf16, #tpu.memory_space<vmem>>) attributes {dimension_semantics = [#tpu.dimension_semantics<parallel>, #tpu.dimension_semantics<parallel>], iteration_bounds = array<i64: 2, 2>, scalar_prefetch = 0 : i64, scratch_operands = 0 : i64, tpu.core_type = #tpu.core_type<tc>, window_params = [{transform_indices = @transform_0, window_bounds = array<i64: 1, 1, 616, 128>}, {pipeline_mode = #tpu.pipeline_mode<synchronous>, transform_indices = @transform_1, window_bounds = array<i64: 9, 128, 128>}, {pipeline_mode = #tpu.pipeline_mode<synchronous>, transform_indices = @transform_2, window_bounds = array<i64: 1, 128>}, {pipeline_mode = #tpu.pipeline_mode<synchronous>, transform_indices = @transform_3, window_bounds = array<i64: 1, 128>}, {pipeline_mode = #tpu.pipeline_mode<synchronous>, transform_indices = @transform_4, window_bounds = array<i64: 1, 128>}, {pipeline_mode = #tpu.pipeline_mode<synchronous>, transform_indices = @transform_5, window_bounds = array<i64: 544, 1>}, {transform_indices = @transform_6, window_bounds = array<i64: 1, 1, 544, 128>}]} {
    %c0 = arith.constant 0 : index
    %c0_0 = arith.constant 0 : index
    %c0_1 = arith.constant 0 : index
    %c0_2 = arith.constant 0 : index
    %0 = vector.load %arg2[%c0, %c0_0, %c0_1, %c0_2] : memref<1x1x616x128xbf16, #tpu.memory_space<vmem>>, vector<1x1x616x128xbf16>
    %1 = vector.shape_cast %0 : vector<1x1x616x128xbf16> to vector<616x128xbf16>
    %2 = vector.extract_strided_slice %1 {offsets = [0, 0], sizes = [544, 128], strides = [1, 1]} : vector<616x128xbf16> to vector<544x128xbf16>
    %c0_3 = arith.constant 0 : index
    %c0_4 = arith.constant 0 : index
    %c0_5 = arith.constant 0 : index
    %3 = vector.load %arg3[%c0_3, %c0_4, %c0_5] : memref<9x128x128xbf16, #tpu.memory_space<vmem>>, vector<1x128x128xbf16>
    %4 = vector.shape_cast %3 : vector<1x128x128xbf16> to vector<128x128xbf16>
    %cst = arith.constant dense<0.000000e+00> : vector<544x128xf32>
    %5 = tpu.matmul %2, %4, %cst {dimension_numbers = #tpu.dot_dimension_numbers<[1], [0], [0], [1], [0, 0, 1, 1], [], []>} : vector<544x128xbf16>, vector<128x128xbf16>, vector<544x128xf32> -> vector<544x128xf32>
    %6 = vector.extract_strided_slice %1 {offsets = [1, 0], sizes = [544, 128], strides = [1, 1]} : vector<616x128xbf16> to vector<544x128xbf16>
    %c1 = arith.constant 1 : index
    %c0_6 = arith.constant 0 : index
    %c0_7 = arith.constant 0 : index
    %7 = vector.load %arg3[%c1, %c0_6, %c0_7] : memref<9x128x128xbf16, #tpu.memory_space<vmem>>, vector<1x128x128xbf16>
    %8 = vector.shape_cast %7 : vector<1x128x128xbf16> to vector<128x128xbf16>
    %cst_8 = arith.constant dense<0.000000e+00> : vector<544x128xf32>
    %9 = tpu.matmul %6, %8, %cst_8 {dimension_numbers = #tpu.dot_dimension_numbers<[1], [0], [0], [1], [0, 0, 1, 1], [], []>} : vector<544x128xbf16>, vector<128x128xbf16>, vector<544x128xf32> -> vector<544x128xf32>
    %10 = arith.addf %5, %9 : vector<544x128xf32>
    %11 = vector.extract_strided_slice %1 {offsets = [2, 0], sizes = [544, 128], strides = [1, 1]} : vector<616x128xbf16> to vector<544x128xbf16>
    %c2 = arith.constant 2 : index
    %c0_9 = arith.constant 0 : index
    %c0_10 = arith.constant 0 : index
    %12 = vector.load %arg3[%c2, %c0_9, %c0_10] : memref<9x128x128xbf16, #tpu.memory_space<vmem>>, vector<1x128x128xbf16>
    %13 = vector.shape_cast %12 : vector<1x128x128xbf16> to vector<128x128xbf16>
    %cst_11 = arith.constant dense<0.000000e+00> : vector<544x128xf32>
    %14 = tpu.matmul %11, %13, %cst_11 {dimension_numbers = #tpu.dot_dimension_numbers<[1], [0], [0], [1], [0, 0, 1, 1], [], []>} : vector<544x128xbf16>, vector<128x128xbf16>, vector<544x128xf32> -> vector<544x128xf32>
    %15 = arith.addf %10, %14 : vector<544x128xf32>
    %16 = vector.extract_strided_slice %1 {offsets = [34, 0], sizes = [544, 128], strides = [1, 1]} : vector<616x128xbf16> to vector<544x128xbf16>
    %c3 = arith.constant 3 : index
    %c0_12 = arith.constant 0 : index
    %c0_13 = arith.constant 0 : index
    %17 = vector.load %arg3[%c3, %c0_12, %c0_13] : memref<9x128x128xbf16, #tpu.memory_space<vmem>>, vector<1x128x128xbf16>
    %18 = vector.shape_cast %17 : vector<1x128x128xbf16> to vector<128x128xbf16>
    %cst_14 = arith.constant dense<0.000000e+00> : vector<544x128xf32>
    %19 = tpu.matmul %16, %18, %cst_14 {dimension_numbers = #tpu.dot_dimension_numbers<[1], [0], [0], [1], [0, 0, 1, 1], [], []>} : vector<544x128xbf16>, vector<128x128xbf16>, vector<544x128xf32> -> vector<544x128xf32>
    %20 = arith.addf %15, %19 : vector<544x128xf32>
    %21 = vector.extract_strided_slice %1 {offsets = [35, 0], sizes = [544, 128], strides = [1, 1]} : vector<616x128xbf16> to vector<544x128xbf16>
    %c4 = arith.constant 4 : index
    %c0_15 = arith.constant 0 : index
    %c0_16 = arith.constant 0 : index
    %22 = vector.load %arg3[%c4, %c0_15, %c0_16] : memref<9x128x128xbf16, #tpu.memory_space<vmem>>, vector<1x128x128xbf16>
    %23 = vector.shape_cast %22 : vector<1x128x128xbf16> to vector<128x128xbf16>
    %cst_17 = arith.constant dense<0.000000e+00> : vector<544x128xf32>
    %24 = tpu.matmul %21, %23, %cst_17 {dimension_numbers = #tpu.dot_dimension_numbers<[1], [0], [0], [1], [0, 0, 1, 1], [], []>} : vector<544x128xbf16>, vector<128x128xbf16>, vector<544x128xf32> -> vector<544x128xf32>
    %25 = arith.addf %20, %24 : vector<544x128xf32>
    %26 = vector.extract_strided_slice %1 {offsets = [36, 0], sizes = [544, 128], strides = [1, 1]} : vector<616x128xbf16> to vector<544x128xbf16>
    %c5 = arith.constant 5 : index
    %c0_18 = arith.constant 0 : index
    %c0_19 = arith.constant 0 : index
    %27 = vector.load %arg3[%c5, %c0_18, %c0_19] : memref<9x128x128xbf16, #tpu.memory_space<vmem>>, vector<1x128x128xbf16>
    %28 = vector.shape_cast %27 : vector<1x128x128xbf16> to vector<128x128xbf16>
    %cst_20 = arith.constant dense<0.000000e+00> : vector<544x128xf32>
    %29 = tpu.matmul %26, %28, %cst_20 {dimension_numbers = #tpu.dot_dimension_numbers<[1], [0], [0], [1], [0, 0, 1, 1], [], []>} : vector<544x128xbf16>, vector<128x128xbf16>, vector<544x128xf32> -> vector<544x128xf32>
    %30 = arith.addf %25, %29 : vector<544x128xf32>
    %31 = vector.extract_strided_slice %1 {offsets = [68, 0], sizes = [544, 128], strides = [1, 1]} : vector<616x128xbf16> to vector<544x128xbf16>
    %c6 = arith.constant 6 : index
    %c0_21 = arith.constant 0 : index
    %c0_22 = arith.constant 0 : index
    %32 = vector.load %arg3[%c6, %c0_21, %c0_22] : memref<9x128x128xbf16, #tpu.memory_space<vmem>>, vector<1x128x128xbf16>
    %33 = vector.shape_cast %32 : vector<1x128x128xbf16> to vector<128x128xbf16>
    %cst_23 = arith.constant dense<0.000000e+00> : vector<544x128xf32>
    %34 = tpu.matmul %31, %33, %cst_23 {dimension_numbers = #tpu.dot_dimension_numbers<[1], [0], [0], [1], [0, 0, 1, 1], [], []>} : vector<544x128xbf16>, vector<128x128xbf16>, vector<544x128xf32> -> vector<544x128xf32>
    %35 = arith.addf %30, %34 : vector<544x128xf32>
    %36 = vector.extract_strided_slice %1 {offsets = [69, 0], sizes = [544, 128], strides = [1, 1]} : vector<616x128xbf16> to vector<544x128xbf16>
    %c7 = arith.constant 7 : index
    %c0_24 = arith.constant 0 : index
    %c0_25 = arith.constant 0 : index
    %37 = vector.load %arg3[%c7, %c0_24, %c0_25] : memref<9x128x128xbf16, #tpu.memory_space<vmem>>, vector<1x128x128xbf16>
    %38 = vector.shape_cast %37 : vector<1x128x128xbf16> to vector<128x128xbf16>
    %cst_26 = arith.constant dense<0.000000e+00> : vector<544x128xf32>
    %39 = tpu.matmul %36, %38, %cst_26 {dimension_numbers = #tpu.dot_dimension_numbers<[1], [0], [0], [1], [0, 0, 1, 1], [], []>} : vector<544x128xbf16>, vector<128x128xbf16>, vector<544x128xf32> -> vector<544x128xf32>
    %40 = arith.addf %35, %39 : vector<544x128xf32>
    %41 = vector.extract_strided_slice %1 {offsets = [70, 0], sizes = [544, 128], strides = [1, 1]} : vector<616x128xbf16> to vector<544x128xbf16>
    %c8 = arith.constant 8 : index
    %c0_27 = arith.constant 0 : index
    %c0_28 = arith.constant 0 : index
    %42 = vector.load %arg3[%c8, %c0_27, %c0_28] : memref<9x128x128xbf16, #tpu.memory_space<vmem>>, vector<1x128x128xbf16>
    %43 = vector.shape_cast %42 : vector<1x128x128xbf16> to vector<128x128xbf16>
    %cst_29 = arith.constant dense<0.000000e+00> : vector<544x128xf32>
    %44 = tpu.matmul %41, %43, %cst_29 {dimension_numbers = #tpu.dot_dimension_numbers<[1], [0], [0], [1], [0, 0, 1, 1], [], []>} : vector<544x128xbf16>, vector<128x128xbf16>, vector<544x128xf32> -> vector<544x128xf32>
    %45 = arith.addf %40, %44 : vector<544x128xf32>
    %c0_30 = arith.constant 0 : index
    %c0_31 = arith.constant 0 : index
    %46 = vector.load %arg4[%c0_30, %c0_31] : memref<1x128xf32, #tpu.memory_space<vmem>>, vector<1x128xf32>
    %47 = vector.broadcast %46 : vector<1x128xf32> to vector<544x128xf32>
    %48 = arith.addf %45, %47 : vector<544x128xf32>
    %cst_32 = arith.constant 0.000000e+00 : f32
    %49 = vector.broadcast %cst_32 : f32 to vector<544x128xf32>
    %50 = arith.maximumf %48, %49 : vector<544x128xf32>
    %c0_33 = arith.constant 0 : index
    %c0_34 = arith.constant 0 : index
    %51 = vector.load %arg5[%c0_33, %c0_34] : memref<1x128xf32, #tpu.memory_space<vmem>>, vector<1x128xf32>
    %52 = vector.broadcast %51 : vector<1x128xf32> to vector<544x128xf32>
    %53 = arith.mulf %50, %52 : vector<544x128xf32>
    %c0_35 = arith.constant 0 : index
    %c0_36 = arith.constant 0 : index
    %54 = vector.load %arg6[%c0_35, %c0_36] : memref<1x128xf32, #tpu.memory_space<vmem>>, vector<1x128xf32>
    %55 = vector.broadcast %54 : vector<1x128xf32> to vector<544x128xf32>
    %56 = arith.addf %53, %55 : vector<544x128xf32>
    %c0_37 = arith.constant 0 : index
    %c0_38 = arith.constant 0 : index
    %57 = vector.load %arg7[%c0_37, %c0_38] : memref<544x1xf32, #tpu.memory_space<vmem>>, vector<544x1xf32>
    %58 = vector.broadcast %57 : vector<544x1xf32> to vector<544x128xf32>
    %59 = arith.mulf %56, %58 : vector<544x128xf32>
    %60 = arith.truncf %59 : vector<544x128xf32> to vector<544x128xbf16>
    %c0_39 = arith.constant 0 : index
    %c0_40 = arith.constant 0 : index
    %c0_41 = arith.constant 0 : index
    %c0_42 = arith.constant 0 : index
    %61 = vector.load %arg8[%c0_39, %c0_40, %c0_41, %c0_42] : memref<1x1x544x128xbf16, #tpu.memory_space<vmem>>, vector<1x1x544x128xbf16>
    %62 = vector.shape_cast %61 : vector<1x1x544x128xbf16> to vector<544x128xbf16>
    %63 = vector.shape_cast %60 : vector<544x128xbf16> to vector<1x1x544x128xbf16>
    tpu.vector_store %arg8[%c0_39, %c0_40, %c0_41, %c0_42], %63 {strides = array<i32>} : memref<1x1x544x128xbf16, #tpu.memory_space<vmem>>, vector<1x1x544x128xbf16>,
    return
  }
  func.func @transform_0(%arg0: i32, %arg1: i32) -> (i32, i32, i32, i32) {
    %c0_i32 = arith.constant 0 : i32
    %c0_i32_0 = arith.constant 0 : i32
    %c0_i32_1 = arith.constant 0 : i32
    return %arg0, %arg1, %c0_i32, %c0_i32_0 : i32, i32, i32, i32
  }
  func.func @transform_1(%arg0: i32, %arg1: i32) -> (i32, i32, i32) {
    %c0_i32 = arith.constant 0 : i32
    %c0_i32_0 = arith.constant 0 : i32
    %c0_i32_1 = arith.constant 0 : i32
    %c0_i32_2 = arith.constant 0 : i32
    return %c0_i32, %c0_i32_0, %c0_i32_1 : i32, i32, i32
  }
  func.func @transform_2(%arg0: i32, %arg1: i32) -> (i32, i32) {
    %c0_i32 = arith.constant 0 : i32
    %c0_i32_0 = arith.constant 0 : i32
    %c0_i32_1 = arith.constant 0 : i32
    return %c0_i32, %c0_i32_0 : i32, i32
  }
  func.func @transform_3(%arg0: i32, %arg1: i32) -> (i32, i32) {
    %c0_i32 = arith.constant 0 : i32
    %c0_i32_0 = arith.constant 0 : i32
    %c0_i32_1 = arith.constant 0 : i32
    return %c0_i32, %c0_i32_0 : i32, i32
  }
  func.func @transform_4(%arg0: i32, %arg1: i32) -> (i32, i32) {
    %c0_i32 = arith.constant 0 : i32
    %c0_i32_0 = arith.constant 0 : i32
    %c0_i32_1 = arith.constant 0 : i32
    return %c0_i32, %c0_i32_0 : i32, i32
  }
  func.func @transform_5(%arg0: i32, %arg1: i32) -> (i32, i32) {
    %c0_i32 = arith.constant 0 : i32
    %c0_i32_0 = arith.constant 0 : i32
    %c0_i32_1 = arith.constant 0 : i32
    return %c0_i32, %c0_i32_0 : i32, i32
  }
  func.func @transform_6(%arg0: i32, %arg1: i32) -> (i32, i32, i32, i32) {
    %c0_i32 = arith.constant 0 : i32
    %c0_i32_0 = arith.constant 0 : i32
    %c0_i32_1 = arith.constant 0 : i32
    return %arg0, %arg1, %c0_i32, %c0_i32_0 : i32, i32, i32, i32
  }
}

</mosaic_0001>

<bundles_post_ra>
// kernel: upsample_block.3
= control target key start
LH: loop header
LB: loop body
LE: loop exit
PB: predicated region body
PF: predicated region fallthrough
CT: control target
= control target key end

     0   :  { %s9205_s21 = smov 0   ;;  %s9207_s22 = smov 0   ;;  %s11540_s0 = inlined_call_operand.vmem [shape: bf16[2,2,616,128], index: 0, kind: input, shape index: {}]   ;;  %s11541_s1 = inlined_call_operand.vmem [shape: bf16[9,128,128], index: 1, kind: input, shape index: {}]   ;;  %s11542_s2 = inlined_call_operand.vmem [shape: f32[1,128], index: 2, kind: input, shape index: {}]   ;;  %s11543_s3 = inlined_call_operand.vmem [shape: f32[1,128], index: 3, kind: input, shape index: {}]   ;;  %s11544_s4 = inlined_call_operand.vmem [shape: f32[1,128], index: 4, kind: input, shape index: {}]   ;;  %s11545_s5 = inlined_call_operand.vmem [shape: f32[544,1], index: 5, kind: input, shape index: {}]   ;;  %s11546_s6 = inlined_call_operand.vmem [shape: bf16[2,2,544,128], index: 6, kind: output, shape index: {}]  }
   0x1   :  { %s9209_s23 = smov 0   ;;  %s9211_s24 = smov 0  }
   0x2   :  { %s9213_s25 = smov 0  }
   0x3 LB: > { %s25_s26 = sadd.s32 1, %s9159_s23  ;;  %s28_s27 = sadd.s32 1, %s9163_s24  ;;  %s9167_s25 = sphi %s9213_s25, %s16_s25   ;;  %s9163_s24 = sphi %s9211_s24, %s11884_s24   ;;  %s9159_s23 = sphi %s9209_s23, %s11883_s23   ;;  %s9155_s22 = sphi %s9207_s22, %s11882_s22   ;;  %s9151_s21 = sphi %s9205_s21, %s11881_s21  }
   0x4   : > { %p26_p0 = scmp.ge.s32.totalorder %s25_s26, 2  ;;  %p6627_p1 = scmp.ge.s32.totalorder %s9167_s25, 1 }
   0x5   : > { %p232_p2 = scmp.lt.s32.totalorder %s9167_s25, 5 }
   0x6   : > { %s11886_s26 = smov (%p26_p0, %s25_s26), 0  ;;  %s11888_s27 = smov (!%p26_p0, %s28_s27), %s9163_s24 }
   0x7   : > { %p233_p3 = pnand %p6627_p1, %p232_p2  ;;  %p30_p4 = scmp.ge.s32.totalorder %s11888_s27, 2 }
   0x9   : > { %s11890_s27 = smov (%p30_p4, %s11888_s27), 0  ;;  %236 = sbr.rel (%p233_p3) target bundleno = 888 (0x378), region = 44 }
  0x10   : > { %v8956_v0 = vld [vmem:[%s11541_s1 + $0x40] sm:$0xff]   ;;  %p270_p5 = scmp.lt.s32.totalorder %s9155_s22, 1  ;;  %p272_p6 = scmp.lt.s32.totalorder %s9151_s21, 1  ;;  %v8958_v2 = vld [vmem:[%s11541_s1 + $0x48] sm:$0xff]   ;;  %v8960_v4 = vld [vmem:[%s11541_s1 + $0x50] sm:$0xff]   ;;  %vm3267_vm2 = vcmask 1045504  }
  0x11   : > { %v8957_v1 = vld [vmem:[%s11541_s1 + $0x100] sm:$0xff]   ;;  %7593 = vmatprep.subr.bf16.mxu1 %v8956_v0  ;;  %v8959_v3 = vld [vmem:[%s11541_s1 + $0x108] sm:$0xff]   ;;  %v8961_v5 = vld [vmem:[%s11541_s1 + $0x110] sm:$0xff]   ;;  %vm572_vm0 = vsmask.f32 7424  ;;  %vm1640_vm3 = vcmask 1046528  }
  0x12   : > { %s11892_s22 = smov (!%p270_p5, %s9155_s22), 1  ;;  %7929 = vmatprep.subr.bf16.mxu0 %v8957_v1  ;;  %7594 = vmatpush3.bf16.msra.mxu1 %v8956_v0  ;;  %s11894_s21 = smov (!%p272_p6, %s9151_s21), 1  ;;  %v8962_v6 = vld [vmem:[%s11541_s1 + $0x58] sm:$0xff]   ;;  %v8964_v8 = vld [vmem:[%s11541_s1 + $0x60] sm:$0xff]   ;;  %v8966_v10 = vld [vmem:[%s11541_s1 + $0x68] sm:$0xff]   ;;  %vm4894_vm5 = vcmask 1044480  }
  0x13   : > { %7930 = vmatpush3.bf16.msra.mxu0 %v8957_v1  ;;  %7595 = vmatprep.subr.bf16.mxu1 %v8958_v2  ;;  %s8910_s14 = smul.u32 154, %s11892_s22  ;;  %v8963_v7 = vld [vmem:[%s11541_s1 + $0x118] sm:$0xff]   ;;  %v8965_v9 = vld [vmem:[%s11541_s1 + $0x120] sm:$0xff]   ;;  %v8967_v11 = vld [vmem:[%s11541_s1 + $0x128] sm:$0xff]   ;;  %vm2640_vm1 = vsmask.f32 6400 }
  0x14   : > { %7931 = vmatprep.subr.bf16.mxu0 %v8959_v3  ;;  %s8909_s17 = smul.u32 77, %s11894_s21  ;;  %v8968_v14 = vld [vmem:[%s11541_s1 + $0x70] sm:$0xff]   ;;  %v8970_v32 = vld [vmem:[%s11541_s1 + $0x78] sm:$0xff]   ;;  %v8977_v47 = vld [vmem:[%s11541_s1 + $0x140] sm:$0xff]   ;;  %vm4267_vm4 = vsmask.f32 5376 }
  0x15   : > { %v8969_v19 = vld [vmem:[%s11541_s1 + $0x130] sm:$0xff]   ;;  %v8971_v36 = vld [vmem:[%s11541_s1 + $0x138] sm:$0xff]   ;;  %v8979_v53 = vld [vmem:[%s11541_s1] sm:$0xff]   ;;  %s8911_s19 = smul.u32 68, %s11894_s21 }
  0x16   : > { %7596 = vmatpush3.bf16.msra.mxu1 %v8958_v2  ;;  %s276_s20 = sadd.s32 %s8910_s14, %s8909_s17  ;;  %v8981_v0 = vld [vmem:[%s11541_s1 + $0x148] sm:$0xff]   ;;  %s8912_s29 = smul.u32 136, %s11892_s22 }
  0x17   : > { %7932 = vmatpush3.bf16.msra.mxu0 %v8959_v3  ;;  %7597 = vmatprep.subr.bf16.mxu1 %v8960_v4  ;;  %s6628_s30 = sshll.u32 %s276_s20, 2 }
  0x18   : > { %7933 = vmatprep.subr.bf16.mxu0 %v8961_v5  ;;  %s9277_s15 = scalar_lea.vmem %s11540_s0, %s6628_s30  ;;  %s285_s21 = sadd.s32 %s8912_s29, %s8911_s19 }
  0x19   : > { %v8972_v12 = vld [vmem:[%s9277_s15] sm:$0xff]   ;;  %v8973_v13 = vld [vmem:[%s9277_s15 + $0x8] sm:$0xff]   ;;  %v9288_v18 = vld [vmem:[%s9277_s15 + $0x10] sm:$0xff]   ;;  %s6629_s22 = sshll.u32 %s285_s21, 2 }
  0x1a   : > { %7598 = vmatpush3.bf16.msra.mxu1 %v8960_v4  ;;  %v574_v15 = vshrl.u32 %v8972_v12, 16  ;;  %v576_v16 = vshll.u32 %v8972_v12, 16  ;;  %v581_v17 = vshll.u32 %v8973_v13, 16  ;;  %v9294_v20 = vld [vmem:[%s9277_s15 + $0x18] sm:$0xff]   ;;  %v589_v23 = vshll.u32 %v9288_v18, 16  ;;  %v9301_v28 = vld [vmem:[%s9277_s15 + $0x20] sm:$0xff]   ;;  %s11136_s10 = scalar_lea.vmem %s11546_s6, %s6629_s22 }
  0x1b   : > { %7934 = vmatpush3.bf16.msra.mxu0 %v8961_v5  ;;  %7599 = vmatprep.subr.bf16.mxu1 %v8962_v6  ;;  %v593_v24 = vshrl.u32 %v9288_v18, 16  ;;  %v597_v25 = vshll.u32 %v9294_v20, 16  ;;  %v601_v26 = vshrl.u32 %v9294_v20, 16  ;;  %v585_v27 = vshrl.u32 %v8973_v13, 16  ;;  %v9319_v41 = vld [vmem:[%s9277_s15 + $0x28] sm:$0xff]   ;;  %v9323_v45 = vld [vmem:[%s9277_s15 + $0x30] sm:$0xff]  }
  0x1c   : > { %7935 = vmatprep.subr.bf16.mxu0 %v8963_v7  ;;  %v578_v21 = vrot.slane %v576_v16, 1  ;;  %v583_v22 = vrot.slane %v581_v17, 1  ;;  %v2642_v31 = vrot.slane %v589_v23, 2  ;;  %v9309_v35 = vshll.u32 %v9301_v28, 16  ;;  %v9348_v59 = vld [vmem:[%s9277_s15 + $0x38] sm:$0xff]   ;;  %v9365_v5 = vld [vmem:[%s9277_s15 + $0x40] sm:$0xff]  }
  0x1d   : > { %v2641_v30 = vrot.slane %v593_v24, 1  ;;  %v2644_v33 = vrot.slane %v601_v26, 1  ;;  %v2645_v34 = vrot.slane %v597_v25, 2  ;;  %v591_v39 = vrot.slane %v589_v23, 1  ;;  %v8987_v13 = vld [vmem:[%s11541_s1 + $0x8] sm:$0xff]  }
  0x1e   : > { %7600 = vmatpush3.bf16.msra.mxu1 %v8962_v6  ;;  %v579_v29 = vor.u32 %v578_v21, %v574_v15  ;;  %11661 = vst [vmem:[#allocation2_spill] sm:$0xff] %v9309_v35  ;;  %v9316_v40 = vshrl.u32 %v9301_v28, 16  ;;  %v587_v43 = vor.u32 %v585_v27, %v583_v22  ;;  %v2649_v44 = vrot.slane %v9309_v35, 2 }
  0x1f   : > { %7936 = vmatpush3.bf16.msra.mxu0 %v8963_v7  ;;  %7601 = vmatprep.subr.bf16.mxu1 %v8964_v8  ;;  %v2643_v38 = vor.u32 %v2642_v31, %v2641_v30  ;;  %v2646_v42 = vor.u32 %v2645_v34, %v2644_v33  ;;  %v599_v48 = vrot.slane %v597_v25, 1  ;;  %v9330_v49 = vshll.u32 %v9319_v41, 16  ;;  %v9398_v25 = vld [vmem:[%s9277_s15 + $0x50] sm:$0xff]   ;;  %v8988_v34 = vld [vmem:[%s11541_s1 + $0x158] sm:$0xff]  }
  0x20   : > { %7937 = vmatprep.subr.bf16.mxu0 %v8965_v9  ;;  %v584_v37 = vsel %vm572_vm0, %v579_v29, %v583_v22  ;;  %11662 = vst [vmem:[#allocation3_spill] sm:$0xff] %v9316_v40  ;;  %v2648_v46 = vrot.slane %v9316_v40, 1  ;;  %v9333_v50 = vshrl.u32 %v9319_v41, 16  ;;  %v595_v52 = vor.u32 %v593_v24, %v591_v39 }
  0x21   : > { %7609 = vmatprep.mubr.bf16.mxu1 %v584_v37  ;;  %11663 = vst [vmem:[#allocation4_spill] sm:$0xff] %v9330_v49  ;;  %v2647_v51 = vsel %vm2640_vm1, %v2643_v38, %v2646_v42  ;;  %v9340_v54 = vshll.u32 %v9323_v45, 16  ;;  %v2653_v57 = vrot.slane %v9330_v49, 2  ;;  %v9345_v58 = vshrl.u32 %v9323_v45, 16 }
  0x22   : > { %7602 = vmatpush3.bf16.msra.mxu1 %v8964_v8  ;;  %11664 = vst [vmem:[#allocation5_spill] sm:$0xff] %v9333_v50  ;;  %7945 = vmatprep.mubr.bf16.mxu0 %v2647_v51  ;;  %v2650_v55 = vor.u32 %v2649_v44, %v2648_v46  ;;  %v2652_v56 = vrot.slane %v9333_v50, 1  ;;  %v592_v60 = vsel %vm572_vm0, %v587_v43, %v591_v39  ;;  %v9357_v1 = vshll.u32 %v9348_v59, 16 }
  0x23   : > { %7938 = vmatpush3.bf16.msra.mxu0 %v8965_v9  ;;  %7603 = vmatprep.subr.bf16.mxu1 %v8966_v10  ;;  %11665 = vst [vmem:[#allocation6_spill] sm:$0xff] %v9340_v54  ;;  %11666 = vst [vmem:[#allocation7_spill] sm:$0xff] %v9345_v58  ;;  %v2656_v62 = vrot.slane %v9345_v58, 1  ;;  %v2657_v63 = vrot.slane %v9340_v54, 2  ;;  %v600_v3 = vsel %vm572_vm0, %v595_v52, %v599_v48  ;;  %v9362_v4 = vshrl.u32 %v9348_v59, 16  ;;  %v8991_v52 = vld [vmem:[%s11541_s1 + $0x160] sm:$0xff]  }
  0x24   : > { %7939 = vmatprep.subr.bf16.mxu0 %v8967_v11  ;;  %v2654_v61 = vor.u32 %v2653_v57, %v2652_v56  ;;  %11667 = vst [vmem:[#allocation8_spill] sm:$0xff] %v9357_v1  ;;  %v2651_v2 = vsel %vm2640_vm1, %v2646_v42, %v2650_v55  ;;  %v607_v7 = vrot.slane %v9309_v35, 1  ;;  %v2661_v8 = vrot.slane %v9357_v1, 2  ;;  %v9438_v57 = vld [vmem:[%s9277_s15 + $0x60] sm:$0xff]   ;;  %v10036_v35 = vld [vmem:[%s9277_s15 + $0x58] sm:$0xff]  }
  0x25   : > { %11668 = vst [vmem:[#allocation9_spill] sm:$0xff] %v9362_v4  ;;  %v2660_v9 = vrot.slane %v9362_v4, 1  ;;  %v615_v15 = vrot.slane %v9330_v49, 1  ;;  %v9382_v16 = vshll.u32 %v9365_v5, 16  ;;  %v9385_v17 = vshrl.u32 %v9365_v5, 16  ;;  %v10023_v49 = vld [vmem:[%s9277_s15 + $0x50] sm:$0xff]  }
  0x26   : > { %7604 = vmatpush3.bf16.msra.mxu1 %v8966_v10  ;;  %v2655_v6 = vsel %vm2640_vm1, %v2650_v55, %v2654_v61  ;;  %v9372_v10 = vld [vmem:[%s9277_s15 + $0x48] sm:$0xff]   ;;  %v611_v12 = vor.u32 %v9316_v40, %v607_v7  ;;  %v623_v37 = vrot.slane %v9340_v54, 1  ;;  %v9416_v39 = vshrl.u32 %v9398_v25, 16  ;;  %11725 = vst [vmem:[#allocation66_spill] sm:$0xff] %v10023_v49  ;;  %11728 = vst [vmem:[#allocation69_spill] sm:$0xff] %v10036_v35  ;;  %v10041_v40 = vld [vmem:[%s9277_s15 + $0x60] sm:$0xff]  }
  0x27   : > { %7940 = vmatpush3.bf16.msra.mxu0 %v8967_v11  ;;  %7605 = vmatprep.subr.bf16.mxu1 %v8968_v14  ;;  %v603_v11 = vor.u32 %v601_v26, %v599_v48  ;;  %11669 = vst [vmem:[#allocation10_spill] sm:$0xff] %v9382_v16  ;;  %11670 = vst [vmem:[#allocation11_spill] sm:$0xff] %v9385_v17  ;;  %v2662_v21 = vor.u32 %v2661_v8, %v2660_v9  ;;  %v9391_v22 = vshll.u32 %v9372_v10, 16 }
  0x28   : > { %7941 = vmatprep.subr.bf16.mxu0 %v8969_v19  ;;  %v9394_v23 = vshrl.u32 %v9372_v10, 16  ;;  %v616_v27 = vsel %vm572_vm0, %v611_v12, %v615_v15  ;;  %v2664_v29 = vrot.slane %v9385_v17, 1  ;;  %v2665_v30 = vrot.slane %v9382_v16, 2  ;;  %11673 = vst [vmem:[#allocation14_spill] sm:$0xff] %v9416_v39  ;;  %11729 = vst [vmem:[#allocation70_spill] sm:$0xff] %v10041_v40 }
  0x29   : > { %11671 = vst [vmem:[#allocation12_spill] sm:$0xff] %v9391_v22  ;;  %v608_v24 = vsel %vm572_vm0, %v603_v11, %v607_v7  ;;  %v2669_v33 = vrot.slane %v9391_v22, 2  ;;  %v619_v38 = vor.u32 %v9333_v50, %v615_v15  ;;  %v627_v43 = vor.u32 %v9345_v58, %v623_v37  ;;  %v8995_v7 = vld [vmem:[%s11541_s1 + $0x168] sm:$0xff]  }
  0x2a   : > { %7606 = vmatpush3.bf16.msra.mxu1 %v8968_v14  ;;  %v2658_v14 = vor.u32 %v2657_v63, %v2656_v62  ;;  %11672 = vst [vmem:[#allocation13_spill] sm:$0xff] %v9394_v23  ;;  %v2666_v42 = vor.u32 %v2665_v30, %v2664_v29  ;;  %v631_v44 = vrot.slane %v9357_v1, 1  ;;  %v9421_v46 = vshll.u32 %v9398_v25, 16  ;;  %v9444_v63 = vld [vmem:[%s9277_s15 + $0x68] sm:$0xff]   ;;  %v9045_v1 = vld [vmem:[%s11541_s1 + $0xb8] sm:$0xff]  }
  0x2b   : > { %7942 = vmatpush3.bf16.msra.mxu0 %v8969_v19  ;;  %7607 = vmatprep.subr.bf16.mxu1 %v8970_v32  ;;  %v8984_v19 = vld [vmem:[%s11541_s1 + $0x150] sm:$0xff]   ;;  %v624_v55 = vsel %vm572_vm0, %v619_v38, %v623_v37  ;;  %v2672_v56 = vrot.slane %v9416_v39, 1  ;;  %v647_v11 = vrot.slane %v9391_v22, 1  ;;  %v9463_v15 = vshrl.u32 %v9444_v63, 16  ;;  %v9485_v38 = vld [vmem:[%s9277_s15 + $0x78] sm:$0xff]   ;;  %v9041_v22 = vld [vmem:[%s11541_s1 + $0xa8] sm:$0xff]  }
  0x2c   : > { %7943 = vmatprep.subr.bf16.mxu0 %v8971_v36  ;;  %v2659_v26 = vsel %vm2640_vm1, %v2654_v61, %v2658_v14  ;;  %v2663_v31 = vsel %vm2640_vm1, %v2658_v14, %v2662_v21  ;;  %11674 = vst [vmem:[#allocation15_spill] sm:$0xff] %v9421_v46  ;;  %v632_v61 = vsel %vm572_vm0, %v627_v43, %v631_v44  ;;  %v2673_v62 = vrot.slane %v9421_v46, 2 }
  0x2d   : > { %v635_v8 = vor.u32 %v9362_v4, %v631_v44  ;;  %v9460_v14 = vshrl.u32 %v9438_v57, 16  ;;  %11679 = vst [vmem:[#allocation20_spill] sm:$0xff] %v9463_v15  ;;  %v655_v30 = vrot.slane %v9421_v46, 1  ;;  %v2684_v37 = vrot.slane %v9463_v15, 1  ;;  %v9003_v44 = vld [vmem:[%s11541_s1 + $0x178] sm:$0xff]   ;;  %v9999_v4 = vld [vmem:[%s9277_s15 + $0x40] sm:$0xff]  }
  0x2e   : > { %7608 = vmatpush3.bf16.msra.mxu1 %v8970_v32  ;;  %v2668_v32 = vrot.slane %v9394_v23, 1  ;;  %v2674_v12 = vor.u32 %v2673_v62, %v2672_v56  ;;  %v9507_v62 = vld [vmem:[%s11541_s1 + $0x180] sm:$0xff]  }
  0x2f   : > { %7944 = vmatpush3.bf16.msra.mxu0 %v8971_v36  ;;  %7677 = vmatprep.subr.bf16.mxu1 %v8979_v53  ;;  %v9411_v36 = vld [vmem:[%s9277_s15 + $0x58] sm:$0xff]   ;;  %11678 = vst [vmem:[#allocation19_spill] sm:$0xff] %v9460_v14 }
  0x30   : > { %8013 = vmatprep.subr.bf16.mxu0 %v8977_v47  ;;  %v9424_v48 = vshll.u32 %v9411_v36, 16  ;;  %v9427_v51 = vshrl.u32 %v9411_v36, 16 }
  0x31   : > { %7610 = vmatmul.mubr.bf16.vlgmr.msra.gmra.mrb[0].mxu1 %v592_v60  ;;  %v2667_v60 = vsel %vm2640_vm1, %v2662_v21, %v2666_v42  ;;  %v9466_v21 = vshll.u32 %v9444_v63, 16 }
  0x32   : > { %7946 = vmatmul.mubr.bf16.vlgmr.msra.gmra.mrb[0].mxu0 %v2651_v2  ;;  %7613 = vmatprep.mubr.bf16.mxu1 %v600_v3  ;;  %11675 = vst [vmem:[#allocation16_spill] sm:$0xff] %v9424_v48  ;;  %11676 = vst [vmem:[#allocation17_spill] sm:$0xff] %v9427_v51  ;;  %v639_v2 = vrot.slane %v9382_v16, 1  ;;  %v2676_v3 = vrot.slane %v9427_v51, 1  ;;  %v663_v56 = vrot.slane %v9424_v48, 1 }
  0x33   : > { %8014 = vmatpush3.bf16.msra.mxu0 %v8977_v47  ;;  %7949 = vmatprep.mubr.bf16.mxu0 %v2655_v6  ;;  %v2670_v47 = vor.u32 %v2669_v33, %v2668_v32  ;;  %v2677_v6 = vrot.slane %v9424_v48, 2  ;;  %11680 = vst [vmem:[#allocation21_spill] sm:$0xff] %v9466_v21  ;;  %v2680_v33 = vrot.slane %v9460_v14, 1  ;;  %v2685_v43 = vrot.slane %v9466_v21, 2  ;;  %v9035_v48 = vld [vmem:[%s11541_s1 + $0x98] sm:$0xff]  }
  0x34   : > { %7678 = vmatpush3.bf16.msra.mxu1 %v8979_v53  ;;  %8015 = vmatprep.subr.bf16.mxu0 %v8981_v0  ;;  %v8994_v53 = vld [vmem:[%s11541_s1 + $0x10] sm:$0xff]   ;;  %v643_v9 = vor.u32 %v9385_v17, %v639_v2 }
  0x35   : > { %7679 = vmatprep.subr.bf16.mxu1 %v8987_v13  ;;  %v2675_v32 = vsel %vm2640_vm1, %v2670_v47, %v2674_v12 }
  0x36   : > { %v648_v29 = vsel %vm572_vm0, %v643_v9, %v647_v11  ;;  %v9519_v9 = vld [vmem:[%s9277_s15 + $0x80] sm:$0xff]  }
  0x37   : > { %8016 = vmatpush3.bf16.msra.mxu0 %v8981_v0  ;;  %v2671_v0 = vsel %vm2640_vm1, %v2666_v42, %v2670_v47  ;;  %v651_v47 = vor.u32 %v9394_v23, %v647_v11  ;;  %v9975_v23 = vld [vmem:[%s9277_s15 + $0x30] sm:$0xff]  }
  0x38   : > { %8017 = vmatprep.subr.bf16.mxu0 %v8984_v19  ;;  %7680 = vmatpush3.bf16.msra.mxu1 %v8987_v13  ;;  %v9457_v13 = vshll.u32 %v9438_v57, 16 }
  0x39   : > { %7614 = vmatmul.mubr.bf16.gmra.mrb[4].mxu1 %v608_v24  ;;  %7681 = vmatprep.subr.bf16.mxu1 %v8994_v53  ;;  %v8998_v24 = vld [vmem:[%s11541_s1 + $0x170] sm:$0xff]  }
  0x3a   : > { %7950 = vmatmul.mubr.bf16.gmra.mrb[4].mxu0 %v2659_v26  ;;  %7617 = vmatprep.mubr.bf16.mxu1 %v616_v27  ;;  %11677 = vst [vmem:[#allocation18_spill] sm:$0xff] %v9457_v13  ;;  %v9001_v26 = vld [vmem:[%s11541_s1 + $0x18] sm:$0xff]   ;;  %v640_v27 = vsel %vm572_vm0, %v635_v8, %v639_v2  ;;  %v9510_v2 = vshrl.u32 %v9485_v38, 16 }
  0x3b   : > { %7953 = vmatprep.mubr.bf16.mxu0 %v2663_v31  ;;  %8018 = vmatpush3.bf16.msra.mxu0 %v8984_v19  ;;  %v2678_v19 = vor.u32 %v2677_v6, %v2676_v3  ;;  %v9478_v31 = vld [vmem:[%s9277_s15 + $0x70] sm:$0xff]   ;;  %v9006_v3 = vld [vmem:[%s11541_s1 + $0x20] sm:$0xff]   ;;  %v656_v6 = vsel %vm572_vm0, %v651_v47, %v655_v30 }
  0x3c   : > { %8019 = vmatprep.subr.bf16.mxu0 %v8988_v34  ;;  %7682 = vmatpush3.bf16.msra.mxu1 %v8994_v53  ;;  %v9495_v53 = vshll.u32 %v9478_v31, 16  ;;  %11684 = vst [vmem:[#allocation25_spill] sm:$0xff] %v9510_v2 }
  0x3d   : > { %7683 = vmatprep.subr.bf16.mxu1 %v9001_v26  ;;  %v2679_v42 = vsel %vm2640_vm1, %v2674_v12, %v2678_v19 }
  0x3e   : > { %11681 = vst [vmem:[#allocation22_spill] sm:$0xff] %v9495_v53  ;;  %v2689_v8 = vrot.slane %v9495_v53, 2 }
  0x3f   : > { %8020 = vmatpush3.bf16.msra.mxu0 %v8988_v34  ;;  %v2681_v34 = vrot.slane %v9457_v13, 2 }
  0x40   : > { %8021 = vmatprep.subr.bf16.mxu0 %v8991_v52  ;;  %7684 = vmatpush3.bf16.msra.mxu1 %v9001_v26  ;;  %v9525_v26 = vld [vmem:[%s9277_s15 + $0x88] sm:$0xff]  }
  0x41   : > { %7618 = vmatmul.mubr.bf16.gmra.mrb[8].mxu1 %v624_v55  ;;  %v2682_v55 = vor.u32 %v2681_v34, %v2680_v33  ;;  %7685 = vmatprep.subr.bf16.mxu1 %v9006_v3  ;;  %v679_v33 = vrot.slane %v9466_v21, 1 }
  0x42   : > { %7954 = vmatmul.mubr.bf16.gmra.mrb[8].mxu0 %v2667_v60  ;;  %7621 = vmatprep.mubr.bf16.mxu1 %v632_v61  ;;  %v9499_v60 = vshrl.u32 %v9478_v31, 16  ;;  %v9502_v61 = vshll.u32 %v9485_v38, 16 }
  0x43   : > { %7957 = vmatprep.mubr.bf16.mxu0 %v2671_v0  ;;  %8022 = vmatpush3.bf16.msra.mxu0 %v8991_v52  ;;  %v659_v52 = vor.u32 %v9416_v39, %v655_v30  ;;  %v2686_v0 = vor.u32 %v2685_v43, %v2684_v37  ;;  %v2683_v11 = vsel %vm2640_vm1, %v2678_v19, %v2682_v55  ;;  %v9535_v37 = vshll.u32 %v9519_v9, 16 }
  0x44   : > { %8023 = vmatprep.subr.bf16.mxu0 %v8995_v7  ;;  %11682 = vst [vmem:[#allocation23_spill] sm:$0xff] %v9499_v60  ;;  %11683 = vst [vmem:[#allocation24_spill] sm:$0xff] %v9502_v61  ;;  %7686 = vmatpush3.bf16.msra.mxu1 %v9006_v3  ;;  %v2693_v30 = vrot.slane %v9502_v61, 2  ;;  %v667_v19 = vor.u32 %v9427_v51, %v663_v56  ;;  %v9541_v43 = vshll.u32 %v9525_v26, 16  ;;  %v687_v3 = vrot.slane %v9495_v53, 1  ;;  %v9951_v51 = vld [vmem:[%s9277_s15 + $0x20] sm:$0xff]  }
  0x45   : > { %v664_v12 = vsel %vm572_vm0, %v659_v52, %v663_v56  ;;  %11685 = vst [vmem:[#allocation26_spill] sm:$0xff] %v9535_v37  ;;  %v9547_v52 = vshrl.u32 %v9525_v26, 16 }
  0x46   : > { %11687 = vst [vmem:[#allocation28_spill] sm:$0xff] %v9541_v43 }
  0x47   : > { %8024 = vmatpush3.bf16.msra.mxu0 %v8995_v7  ;;  %v671_v7 = vrot.slane %v9457_v13, 1  ;;  %11688 = vst [vmem:[#allocation29_spill] sm:$0xff] %v9547_v52 }
  0x48   : > { %8025 = vmatprep.subr.bf16.mxu0 %v8998_v24 }
  0x49   : > { %7622 = vmatmul.mubr.bf16.gmra.mrb[12].mxu1 %v640_v27  ;;  %v2687_v27 = vsel %vm2640_vm1, %v2682_v55, %v2686_v0  ;;  %v672_v55 = vsel %vm572_vm0, %v667_v19, %v671_v7 }
  0x4a   : > { %7958 = vmatmul.mubr.bf16.gmra.mrb[12].mxu0 %v2675_v32  ;;  %7625 = vmatprep.mubr.bf16.mxu1 %v648_v29  ;;  %v2692_v29 = vrot.slane %v9510_v2, 1  ;;  %v675_v32 = vor.u32 %v9460_v14, %v671_v7  ;;  %v9562_v7 = vld [vmem:[%s9277_s15 + $0x98] sm:$0xff]  }
  0x4b   : > { %7961 = vmatprep.mubr.bf16.mxu0 %v2679_v42  ;;  %8026 = vmatpush3.bf16.msra.mxu0 %v8998_v24  ;;  %v2688_v24 = vrot.slane %v9499_v60, 1  ;;  %v9538_v42 = vshrl.u32 %v9519_v9, 16 }
  0x4c   : > { %8027 = vmatprep.subr.bf16.mxu0 %v9003_v44  ;;  %v2694_v47 = vor.u32 %v2693_v30, %v2692_v29  ;;  %v680_v56 = vsel %vm572_vm0, %v675_v32, %v679_v33  ;;  %v2700_v29 = vrot.slane %v9547_v52, 1  ;;  %v691_v30 = vor.u32 %v9499_v60, %v687_v3 }
  0x4d   : > { %v2690_v34 = vor.u32 %v2689_v8, %v2688_v24  ;;  %11686 = vst [vmem:[#allocation27_spill] sm:$0xff] %v9538_v42  ;;  %v2696_v8 = vrot.slane %v9538_v42, 1  ;;  %v9557_v24 = vld [vmem:[%s9277_s15 + $0x90] sm:$0xff]   ;;  %v695_v32 = vrot.slane %v9502_v61, 1 }
  0x4f   : > { %8028 = vmatpush3.bf16.msra.mxu0 %v9003_v44  ;;  %v9012_v44 = vld [vmem:[%s11541_s1 + $0x28] sm:$0xff]   ;;  %v696_v61 = vsel %vm572_vm0, %v691_v30, %v695_v32 }
  0x50   : > { %8097 = vmatprep.subr.bf16.mxu0 %v9507_v62  ;;  %7687 = vmatprep.subr.bf16.mxu1 %v9012_v44 }
  0x51   : > { %7626 = vmatmul.mubr.bf16.gmra.mrb[16].mxu1 %v656_v6  ;;  %v2691_v6 = vsel %vm2640_vm1, %v2686_v0, %v2690_v34  ;;  %v683_v0 = vor.u32 %v9463_v15, %v679_v33  ;;  %v9580_v33 = vshrl.u32 %v9562_v7, 16 }
  0x52   : > { %7962 = vmatmul.mubr.bf16.gmra.mrb[16].mxu0 %v2683_v11  ;;  %7629 = vmatprep.mubr.bf16.mxu1 %v664_v12  ;;  %v2697_v11 = vrot.slane %v9535_v37, 2  ;;  %v2701_v12 = vrot.slane %v9541_v43, 2 }
  0x53   : > { %7965 = vmatprep.mubr.bf16.mxu0 %v2687_v27  ;;  %7688 = vmatpush3.bf16.msra.mxu1 %v9012_v44  ;;  %v2695_v27 = vsel %vm2640_vm1, %v2690_v34, %v2694_v47  ;;  %v9568_v44 = vshll.u32 %v9557_v24, 16  ;;  %v9571_v34 = vshrl.u32 %v9557_v24, 16  ;;  %11692 = vst [vmem:[#allocation33_spill] sm:$0xff] %v9580_v33  ;;  %v2708_v60 = vrot.slane %v9580_v33, 1 }
  0x54   : > { %v2698_v19 = vor.u32 %v2697_v11, %v2696_v8  ;;  %v688_v8 = vsel %vm572_vm0, %v683_v0, %v687_v3  ;;  %v9584_v11 = vld [vmem:[%s9277_s15 + $0xa0] sm:$0xff]   ;;  %v703_v3 = vrot.slane %v9535_v37, 1  ;;  %v9627_v37 = vld [vmem:[%s9277_s15 + $0xb8] sm:$0xff]  }
  0x55   : > { %11689 = vst [vmem:[#allocation30_spill] sm:$0xff] %v9568_v44  ;;  %11690 = vst [vmem:[#allocation31_spill] sm:$0xff] %v9571_v34  ;;  %v2704_v53 = vrot.slane %v9571_v34, 1  ;;  %v9596_v0 = vshll.u32 %v9584_v11, 16  ;;  %v9601_v15 = vshrl.u32 %v9584_v11, 16 }
  0x57   : > { %11693 = vst [vmem:[#allocation34_spill] sm:$0xff] %v9596_v0  ;;  %11694 = vst [vmem:[#allocation35_spill] sm:$0xff] %v9601_v15 }
  0x59   : > { %7630 = vmatmul.mubr.bf16.gmra.mrb[20].mxu1 %v672_v55  ;;  %v9018_v55 = vld [vmem:[%s11541_s1 + $0x30] sm:$0xff]  }
  0x5a   : > { %7966 = vmatmul.mubr.bf16.gmra.mrb[20].mxu0 %v2691_v6  ;;  %7633 = vmatprep.mubr.bf16.mxu1 %v680_v56  ;;  %v2702_v6 = vor.u32 %v2701_v12, %v2700_v29  ;;  %v9577_v56 = vshll.u32 %v9562_v7, 16  ;;  %v2705_v12 = vrot.slane %v9568_v44, 2 }
  0x5b   : > { %7969 = vmatprep.mubr.bf16.mxu0 %v2695_v27  ;;  %7689 = vmatprep.subr.bf16.mxu1 %v9018_v55  ;;  %v2699_v27 = vsel %vm2640_vm1, %v2694_v47, %v2698_v19  ;;  %v699_v47 = vor.u32 %v9510_v2, %v695_v32  ;;  %v2713_v32 = vrot.slane %v9596_v0, 2 }
  0x5c   : > { %11691 = vst [vmem:[#allocation32_spill] sm:$0xff] %v9577_v56  ;;  %7690 = vmatpush3.bf16.msra.mxu1 %v9018_v55  ;;  %v2703_v29 = vsel %vm2640_vm1, %v2698_v19, %v2702_v6  ;;  %v2709_v21 = vrot.slane %v9577_v56, 2  ;;  %v2706_v30 = vor.u32 %v2705_v12, %v2704_v53  ;;  %v707_v55 = vor.u32 %v9538_v42, %v703_v3 }
  0x5d   : > { %v711_v19 = vrot.slane %v9541_v43, 1  ;;  %v9612_v43 = vld [vmem:[%s9277_s15 + $0xa8] sm:$0xff]   ;;  %v3268_v42 = vrot.slane %v9288_v18, 2  ;;  %v9648_v18 = vshll.u32 %v9627_v37, 16 }
  0x5e   : > { %v2707_v53 = vsel %vm2640_vm1, %v2702_v6, %v2706_v30 }
  0x5f   : > { %v712_v12 = vsel %vm572_vm0, %v707_v55, %v711_v19  ;;  %v715_v6 = vor.u32 %v9547_v52, %v711_v19  ;;  %v9624_v55 = vld [vmem:[%s9277_s15 + $0xb0] sm:$0xff]   ;;  %v9639_v19 = vld [vmem:[%s9277_s15 + $0xc0] sm:$0xff]   ;;  %11698 = vst [vmem:[#allocation39_spill] sm:$0xff] %v9648_v18 }
  0x61   : > { %7634 = vmatmul.mubr.bf16.gmra.mrb[24].mxu1 %v688_v8  ;;  %v2710_v8 = vor.u32 %v2709_v21, %v2708_v60  ;;  %v9618_v60 = vld [vmem:[%s11541_s1 + $0x80] sm:$0xff]  }
  0x62   : > { %7970 = vmatmul.mubr.bf16.gmra.mrb[24].mxu0 %v2699_v27  ;;  %7637 = vmatprep.mubr.bf16.mxu1 %v696_v61  ;;  %v9025_v27 = vld [vmem:[%s11541_s1 + $0x38] sm:$0xff]   ;;  %v704_v61 = vsel %vm572_vm0, %v699_v47, %v703_v3  ;;  %v719_v3 = vrot.slane %v9568_v44, 1  ;;  %v727_v47 = vrot.slane %v9577_v56, 1  ;;  %v3273_v44 = vrot.slane %v9319_v41, 2 }
  0x63   : > { %7973 = vmatprep.mubr.bf16.mxu0 %v2703_v29  ;;  %v2712_v29 = vrot.slane %v9601_v15, 1  ;;  %7691 = vmatprep.subr.bf16.mxu1 %v9025_v27  ;;  %v2711_v21 = vsel %vm2640_vm1, %v2706_v30, %v2710_v8 }
  0x64   : > { %7692 = vmatpush3.bf16.msra.mxu1 %v9025_v27  ;;  %v723_v27 = vor.u32 %v9571_v34, %v719_v3  ;;  %v3275_v34 = vrot.slane %v9323_v45, 2  ;;  %v731_v41 = vor.u32 %v9580_v33, %v727_v47  ;;  %v9675_v45 = vshrl.u32 %v9627_v37, 16 }
  0x65   : > { %v9629_v30 = vor.u32 %v2713_v32, %v2712_v29  ;;  %7761 = vmatprep.subr.bf16.mxu1 %v9618_v60  ;;  %v720_v32 = vsel %vm572_vm0, %v715_v6, %v719_v3  ;;  %v9645_v29 = vshll.u32 %v9624_v55, 16  ;;  %v9660_v6 = vshll.u32 %v9639_v19, 16 }
  0x66   : > { %v728_v56 = vsel %vm572_vm0, %v723_v27, %v727_v47  ;;  %11702 = vst [vmem:[#allocation43_spill] sm:$0xff] %v9675_v45  ;;  %v9680_v47 = vshrl.u32 %v9639_v19, 16 }
  0x67   : > { %11695 = vst [vmem:[#allocation36_spill] sm:$0xff] %v9629_v30  ;;  %11697 = vst [vmem:[#allocation38_spill] sm:$0xff] %v9645_v29  ;;  %v751_v27 = vrot.slane %v9645_v29, 1  ;;  %v767_v52 = vrot.slane %v9660_v6, 1 }
  0x68   : > { %11700 = vst [vmem:[#allocation41_spill] sm:$0xff] %v9660_v6  ;;  %11703 = vst [vmem:[#allocation44_spill] sm:$0xff] %v9680_v47  ;;  %v3281_v6 = vrot.slane %v9372_v10, 2  ;;  %v9703_v10 = vld [vmem:[%s9277_s15 + $0xd0] sm:$0xff]  }
  0x69   : > { %7638 = vmatmul.mubr.bf16.gmra.mrb[28].mxu1 %v704_v61  ;;  %v3269_v61 = vrot.slane %v9294_v20, 2  ;;  %v2715_v20 = vsel %vm2640_vm1, %v2710_v8, %v9629_v30  ;;  %v9664_v8 = vshrl.u32 %v9624_v55, 16  ;;  %v759_v30 = vrot.slane %v9648_v18, 1 }
  0x6a   : > { %7974 = vmatmul.mubr.bf16.gmra.mrb[28].mxu0 %v2707_v53  ;;  %7641 = vmatprep.mubr.bf16.mxu1 %v712_v12  ;;  %v9636_v53 = vshll.u32 %v9612_v43, 16  ;;  %v735_v12 = vrot.slane %v9596_v0, 1  ;;  %v9655_v0 = vshrl.u32 %v9612_v43, 16 }
  0x6b   : > { %7977 = vmatprep.mubr.bf16.mxu0 %v2711_v21  ;;  %v3271_v21 = vrot.slane %v9301_v28, 2  ;;  %v3270_v28 = vsel %vm3267_vm2, %v3268_v42, %v3269_v61  ;;  %11701 = vst [vmem:[#allocation42_spill] sm:$0xff] %v9664_v8  ;;  %v3277_v42 = vrot.slane %v9348_v59, 2  ;;  %v9011_v59 = vld [vmem:[%s11541_s1 + $0x188] sm:$0xff]  }
  0x6c   : > { %11696 = vst [vmem:[#allocation37_spill] sm:$0xff] %v9636_v53  ;;  %11699 = vst [vmem:[#allocation40_spill] sm:$0xff] %v9655_v0  ;;  %v743_v3 = vrot.slane %v9636_v53, 1  ;;  %v9671_v53 = vld [vmem:[%s9277_s15 + $0xc8] sm:$0xff]  }
  0x6d   : > { %v9689_v29 = vshll.u32 %v9671_v53, 16 }
  0x6f   : > { %11704 = vst [vmem:[#allocation45_spill] sm:$0xff] %v9689_v29 }
  0x71   : > { %7642 = vmatmul.mubr.bf16.gmra.mrb[32].mxu1 %v720_v32  ;;  %v739_v32 = vor.u32 %v9601_v15, %v735_v12  ;;  %v9841_v15 = vld [vmem:[%s9277_s15 + $0x108] sm:$0xff]  }
  0x72   : > { %7978 = vmatmul.mubr.bf16.gmra.mrb[32].mxu0 %v2715_v20  ;;  %7645 = vmatprep.mubr.bf16.mxu1 %v728_v56  ;;  %v3279_v56 = vrot.slane %v9365_v5, 2  ;;  %v736_v20 = vsel %vm572_vm0, %v731_v41, %v735_v12  ;;  %v9693_v5 = vsel %vm3267_vm2, %v3271_v21, %v3273_v44  ;;  %v747_v12 = vor.u32 %v9655_v0, %v743_v3  ;;  %v9801_v0 = vld [vmem:[%s9277_s15 + $0xf8] sm:$0xff]  }
  0x73   : > { %8029 = vmatprep.mubr.bf16.mxu0 %v3270_v28  ;;  %v3272_v28 = vsel %vm3267_vm2, %v3269_v61, %v3271_v21  ;;  %v744_v18 = vsel %vm572_vm0, %v739_v32, %v743_v3  ;;  %v9017_v61 = vld [vmem:[%s11541_s1 + $0x190] sm:$0xff]   ;;  %v755_v41 = vor.u32 %v9664_v8, %v751_v27  ;;  %v9710_v3 = vsel %vm3267_vm2, %v3273_v44, %v3275_v34 }
  0x74   : > { %v752_v21 = vsel %vm572_vm0, %v747_v12, %v751_v27  ;;  %v763_v27 = vor.u32 %v9675_v45, %v759_v30  ;;  %v9725_v44 = vshll.u32 %v9703_v10, 16  ;;  %v9028_v12 = vld [vmem:[%s11541_s1 + $0x1a0] sm:$0xff]   ;;  %v9761_v45 = vld [vmem:[%s9277_s15 + $0xe8] sm:$0xff]  }
  0x75   : > { %v760_v32 = vsel %vm572_vm0, %v755_v41, %v759_v30  ;;  %v9735_v41 = vsel %vm3267_vm2, %v3277_v42, %v3279_v56 }
  0x76   : > { %11706 = vst [vmem:[#allocation47_spill] sm:$0xff] %v9725_v44  ;;  %v768_v30 = vsel %vm572_vm0, %v763_v27, %v767_v52  ;;  %v9752_v27 = vld [vmem:[%s9277_s15 + $0xe0] sm:$0xff]  }
  0x79   : > { %7646 = vmatmul.mubr.bf16.gmra.mrb[36].mxu1 %v736_v20  ;;  %v9717_v20 = vld [vmem:[%s9277_s15 + $0xd8] sm:$0xff]  }
  0x7a   : > { %8030 = vmatmul.mubr.bf16.vlgmr.msra.gmra.mrb[0].mxu0 %v3272_v28  ;;  %7649 = vmatprep.mubr.bf16.mxu1 %v744_v18  ;;  %v9023_v18 = vld [vmem:[%s11541_s1 + $0x198] sm:$0xff]   ;;  %v9722_v28 = vshrl.u32 %v9671_v53, 16 }
  0x7b   : > { %8098 = vmatpush3.bf16.msra.mxu0 %v9507_v62  ;;  %8033 = vmatprep.mubr.bf16.mxu0 %v9693_v5  ;;  %v9714_v62 = vsel %vm3267_vm2, %v3275_v34, %v3277_v42  ;;  %v771_v34 = vor.u32 %v9680_v47, %v767_v52  ;;  %v9742_v47 = vshll.u32 %v9717_v20, 16  ;;  %v9030_v52 = vld [vmem:[%s11541_s1 + $0x1a8] sm:$0xff]   ;;  %v783_v42 = vrot.slane %v9725_v44, 1 }
  0x7c   : > { %8099 = vmatprep.subr.bf16.mxu0 %v9011_v59  ;;  %11705 = vst [vmem:[#allocation46_spill] sm:$0xff] %v9722_v28  ;;  %v9772_v44 = vshrl.u32 %v9717_v20, 16 }
  0x7d   : > { %11708 = vst [vmem:[#allocation49_spill] sm:$0xff] %v9742_v47 }
  0x7e   : > { %11710 = vst [vmem:[#allocation51_spill] sm:$0xff] %v9772_v44 }
  0x7f   : > { %8100 = vmatpush3.bf16.msra.mxu0 %v9011_v59  ;;  %v775_v59 = vrot.slane %v9689_v29, 1  ;;  %v791_v29 = vrot.slane %v9742_v47, 1 }
  0x80   : > { %8101 = vmatprep.subr.bf16.mxu0 %v9017_v61 }
  0x81   : > { %7650 = vmatmul.mubr.bf16.gmra.mrb[40].mxu1 %v752_v21  ;;  %v776_v21 = vsel %vm572_vm0, %v771_v34, %v775_v59  ;;  %v779_v34 = vor.u32 %v9722_v28, %v775_v59  ;;  %v9768_v59 = vshll.u32 %v9752_v27, 16 }
  0x82   : > { %8034 = vmatmul.mubr.bf16.gmra.mrb[4].mxu0 %v9710_v3  ;;  %7653 = vmatprep.mubr.bf16.mxu1 %v760_v32  ;;  %v9739_v32 = vshrl.u32 %v9703_v10, 16 }
  0x83   : > { %8037 = vmatprep.mubr.bf16.mxu0 %v9714_v62  ;;  %8102 = vmatpush3.bf16.msra.mxu0 %v9017_v61  ;;  %v9745_v61 = vsel %vm3267_vm2, %v3279_v56, %v3281_v6  ;;  %v3283_v56 = vrot.slane %v9398_v25, 2  ;;  %11709 = vst [vmem:[#allocation50_spill] sm:$0xff] %v9768_v59  ;;  %v784_v25 = vsel %vm572_vm0, %v779_v34, %v783_v42  ;;  %v9792_v34 = vld [vmem:[%s9277_s15 + $0xf0] sm:$0xff]  }
  0x84   : > { %8103 = vmatprep.subr.bf16.mxu0 %v9023_v18  ;;  %11707 = vst [vmem:[#allocation48_spill] sm:$0xff] %v9739_v32 }
  0x85   : > { %v9775_v47 = vsel %vm3267_vm2, %v3281_v6, %v3283_v56  ;;  %v799_v6 = vrot.slane %v9768_v59, 1  ;;  %v9814_v59 = vshrl.u32 %v9761_v45, 16 }
  0x87   : > { %8104 = vmatpush3.bf16.msra.mxu0 %v9023_v18  ;;  %v787_v18 = vor.u32 %v9739_v32, %v783_v42  ;;  %v9782_v32 = vshll.u32 %v9761_v45, 16  ;;  %v9034_v42 = vld [vmem:[%s11541_s1 + $0x1b8] sm:$0xff]   ;;  %11714 = vst [vmem:[#allocation55_spill] sm:$0xff] %v9814_v59 }
  0x88   : > { %8105 = vmatprep.subr.bf16.mxu0 %v9028_v12 }
  0x89   : > { %7654 = vmatmul.mubr.bf16.gmra.mrb[44].mxu1 %v768_v30  ;;  %v3285_v30 = vrot.slane %v9411_v36, 2  ;;  %v9779_v36 = vshrl.u32 %v9752_v27, 16  ;;  %11712 = vst [vmem:[#allocation53_spill] sm:$0xff] %v9782_v32  ;;  %v807_v8 = vrot.slane %v9782_v32, 1 }
  0x8a   : > { %8038 = vmatmul.mubr.bf16.gmra.mrb[8].mxu0 %v9735_v41  ;;  %7657 = vmatprep.mubr.bf16.mxu1 %v776_v21  ;;  %v9032_v21 = vld [vmem:[%s11541_s1 + $0x1b0] sm:$0xff]  }
  0x8b   : > { %8041 = vmatprep.mubr.bf16.mxu0 %v9745_v61  ;;  %8106 = vmatpush3.bf16.msra.mxu0 %v9028_v12  ;;  %v792_v12 = vsel %vm572_vm0, %v787_v18, %v791_v29  ;;  %11711 = vst [vmem:[#allocation52_spill] sm:$0xff] %v9779_v36  ;;  %v9785_v28 = vsel %vm3267_vm2, %v3283_v56, %v3285_v30 }
  0x8c   : > { %8107 = vmatprep.subr.bf16.mxu0 %v9030_v52  ;;  %v795_v18 = vor.u32 %v9772_v44, %v791_v29  ;;  %v803_v56 = vor.u32 %v9779_v36, %v799_v6  ;;  %v9810_v29 = vshll.u32 %v9792_v34, 16  ;;  %v9824_v36 = vshll.u32 %v9801_v0, 16 }
  0x8e   : > { %11713 = vst [vmem:[#allocation54_spill] sm:$0xff] %v9810_v29  ;;  %11716 = vst [vmem:[#allocation57_spill] sm:$0xff] %v9824_v36 }
  0x8f   : > { %8108 = vmatpush3.bf16.msra.mxu0 %v9030_v52  ;;  %v3287_v52 = vrot.slane %v9438_v57, 2  ;;  %v800_v57 = vsel %vm572_vm0, %v795_v18, %v799_v6  ;;  %v815_v6 = vrot.slane %v9810_v29, 1  ;;  %v811_v18 = vor.u32 %v9814_v59, %v807_v8 }
  0x90   : > { %8109 = vmatprep.subr.bf16.mxu0 %v9032_v21 }
  0x91   : > { %7658 = vmatmul.mubr.bf16.gmra.mrb[48].mxu1 %v784_v25  ;;  %v3289_v25 = vrot.slane %v9444_v63, 2  ;;  %v9817_v32 = vsel %vm3267_vm2, %v3285_v30, %v3287_v52  ;;  %v9821_v63 = vshrl.u32 %v9792_v34, 16  ;;  %v9832_v30 = vld [vmem:[%s9277_s15 + $0x100] sm:$0xff]   ;;  %v816_v33 = vsel %vm572_vm0, %v811_v18, %v815_v6 }
  0x92   : > { %8042 = vmatmul.mubr.bf16.gmra.mrb[12].mxu0 %v9775_v47  ;;  %7661 = vmatprep.mubr.bf16.mxu1 %v792_v12  ;;  %v9807_v12 = vld [vmem:[%s11541_s1 + $0x1c0] sm:$0xff]   ;;  %v9845_v29 = vshll.u32 %v9832_v30, 16 }
  0x93   : > { %8045 = vmatprep.mubr.bf16.mxu0 %v9785_v28  ;;  %8110 = vmatpush3.bf16.msra.mxu0 %v9032_v21  ;;  %v808_v21 = vsel %vm572_vm0, %v803_v56, %v807_v8  ;;  %11715 = vst [vmem:[#allocation56_spill] sm:$0xff] %v9821_v63  ;;  %v9827_v44 = vsel %vm3267_vm2, %v3287_v52, %v3289_v25  ;;  %v823_v56 = vrot.slane %v9824_v36, 1  ;;  %v9859_v36 = vshll.u32 %v9841_v15, 16 }
  0x94   : > { %8111 = vmatprep.subr.bf16.mxu0 %v9034_v42  ;;  %v819_v52 = vor.u32 %v9821_v63, %v815_v6  ;;  %11717 = vst [vmem:[#allocation58_spill] sm:$0xff] %v9845_v29  ;;  %v9856_v63 = vshrl.u32 %v9832_v30, 16  ;;  %v831_v6 = vrot.slane %v9845_v29, 1 }
  0x95   : > { %11720 = vst [vmem:[#allocation61_spill] sm:$0xff] %v9859_v36 }
  0x96   : > { %11719 = vst [vmem:[#allocation60_spill] sm:$0xff] %v9856_v63  ;;  %v835_v2 = vor.u32 %v9856_v63, %v831_v6 }
  0x97   : > { %8112 = vmatpush3.bf16.msra.mxu0 %v9034_v42  ;;  %v3291_v42 = vrot.slane %v9478_v31, 2  ;;  %v824_v31 = vsel %vm572_vm0, %v819_v52, %v823_v56  ;;  %v3295_v52 = vrot.slane %v9519_v9, 2 }
  0x98   : > { %8181 = vmatprep.subr.bf16.mxu0 %v9807_v12 }
  0x99   : > { %7662 = vmatmul.mubr.bf16.gmra.mrb[52].mxu1 %v800_v57  ;;  %v3293_v57 = vrot.slane %v9485_v38, 2  ;;  %v9852_v8 = vsel %vm3267_vm2, %v3289_v25, %v3291_v42  ;;  %v9862_v38 = vld [vmem:[%s9277_s15 + $0x110] sm:$0xf] }
  0x9a   : > { %8046 = vmatmul.mubr.bf16.gmra.mrb[16].mxu0 %v9817_v32  ;;  %7665 = vmatprep.mubr.bf16.mxu1 %v808_v21  ;;  %v9849_v21 = vshrl.u32 %v9801_v0, 16  ;;  %v9872_v18 = vcombine.low %v9862_v38, %v9862_v38 }
  0x9b   : > { %8049 = vmatprep.mubr.bf16.mxu0 %v9827_v44  ;;  %v9865_v59 = vsel %vm3267_vm2, %v3291_v42, %v3293_v57  ;;  %v839_v42 = vrot.slane %v9859_v36, 1  ;;  %v3299_v36 = vrot.slane %v9557_v24, 2 }
  0x9c   : > { %11718 = vst [vmem:[#allocation59_spill] sm:$0xff] %v9849_v21  ;;  %v827_v25 = vor.u32 %v9849_v21, %v823_v56  ;;  %11721 = vst [vmem:[#allocation62_spill] sm:$0xff] %v9872_v18  ;;  %v845_v56 = vshll.u32 %v9872_v18, 16  ;;  %v9885_v21 = vsel %vm3267_vm2, %v3293_v57, %v3295_v52  ;;  %v3301_v57 = vrot.slane %v9562_v7, 2 }
  0x9d   : > { %v840_v13 = vsel %vm572_vm0, %v835_v2, %v839_v42 }
  0x9e   : > { %v832_v29 = vsel %vm572_vm0, %v827_v25, %v831_v6  ;;  %v847_v25 = vrot.slane %v845_v56, 1 }
  0xa1   : > { %7666 = vmatmul.mubr.bf16.gmra.mrb[56].mxu1 %v816_v33  ;;  %v3297_v33 = vrot.slane %v9525_v26, 2 }
  0xa2   : > { %8050 = vmatmul.mubr.bf16.gmra.mrb[20].mxu0 %v9852_v8  ;;  %7669 = vmatprep.mubr.bf16.mxu1 %v824_v31  ;;  %v9881_v31 = vshrl.u32 %v9841_v15, 16 }
  0xa3   : > { %8053 = vmatprep.mubr.bf16.mxu0 %v9865_v59  ;;  %v9889_v14 = vsel %vm3267_vm2, %v3295_v52, %v3297_v33  ;;  %v9898_v2 = vsel %vm3267_vm2, %v3297_v33, %v3299_v36  ;;  %v3303_v52 = vrot.slane %v9584_v11, 2 }
  0xa4   : > { %11722 = vst [vmem:[#allocation63_spill] sm:$0xff] %v9881_v31  ;;  %v843_v6 = vor.u32 %v9881_v31, %v839_v42  ;;  %v3305_v42 = vrot.slane %v9612_v43, 2 }
  0xa5   : > { %v9912_v56 = vsel %vm3267_vm2, %v3301_v57, %v3303_v52 }
  0xa6   : > { %v848_v63 = vsel %vm572_vm0, %v843_v6, %v847_v25  ;;  %v9915_v33 = vsel %vm3267_vm2, %v3303_v52, %v3305_v42  ;;  %v9926_v6 = vld [vmem:[%s9277_s15 + $0x10] sm:$0xff]   ;;  %v3307_v25 = vrot.slane %v9624_v55, 2 }
  0xa7   : > { %v9033_v52 = vld [vmem:[%s11541_s1 + $0x90] sm:$0xff]  }
  0xa8   : > { %v9937_v31 = vsel %vm3267_vm2, %v3305_v42, %v3307_v25  ;;  %v3311_v42 = vrot.slane %v9639_v19, 2 }
  0xa9   : > { %7670 = vmatmul.mubr.bf16.gmra.mrb[60].mxu1 %v832_v29  ;;  %v9901_v29 = vsel %vm3267_vm2, %v3299_v36, %v3301_v57  ;;  %v9031_v36 = vld [vmem:[%s11541_s1 + $0x88] sm:$0xff]   ;;  %v3309_v57 = vrot.slane %v9627_v37, 2 }
  0xaa   : > { %8054 = vmatmul.mubr.bf16.gmra.mrb[24].mxu0 %v9885_v21  ;;  %7673 = vmatprep.mubr.bf16.mxu1 %v840_v13  ;;  %v9905_v13 = vld [vmem:[%s9277_s15] sm:$0xff]  }
  0xab   : > { %8057 = vmatprep.mubr.bf16.mxu0 %v9889_v14  ;;  %v9940_v18 = vsel %vm3267_vm2, %v3307_v25, %v3309_v57  ;;  %v9039_v25 = vld [vmem:[%s11541_s1 + $0xa0] sm:$0xff]   ;;  %v9961_v46 = vsel %vm3267_vm2, %v3309_v57, %v3311_v42  ;;  %v3317_v57 = vrot.slane %v9717_v20, 2 }
  0xb1   : > { %7674 = vmatmul.mubr.bf16.gmra.mrb[64].mxu1 %v848_v63  ;;  %v9921_v63 = vld [vmem:[%s9277_s15 + $0x8] sm:$0xff]  }
  0xb2   : > { %8058 = vmatmul.mubr.bf16.gmra.mrb[28].mxu0 %v9898_v2  ;;  %7693 = vmatprep.mubr.bf16.mxu1 %v9905_v13 }
  0xb3   : > { %8061 = vmatprep.mubr.bf16.mxu0 %v9901_v29 }
  0xb9   : > { %7694 = vmatmul.mubr.bf16.vlgmr.msra.gmra.mrb[0].mxu1 %v9921_v63 }
  0xba   : > { %8062 = vmatmul.mubr.bf16.gmra.mrb[32].mxu0 %v9912_v56  ;;  %7697 = vmatprep.mubr.bf16.mxu1 %v9926_v6 }
  0xbb   : > { %8065 = vmatprep.mubr.bf16.mxu0 %v9915_v33  ;;  %7762 = vmatpush3.bf16.msra.mxu1 %v9618_v60  ;;  %v9946_v60 = vld [vmem:[%s9277_s15 + $0x18] sm:$0xff]  }
  0xbc   : > { %7763 = vmatprep.subr.bf16.mxu1 %v9031_v36 }
  0xbf   : > { %7764 = vmatpush3.bf16.msra.mxu1 %v9031_v36  ;;  %v3313_v36 = vrot.slane %v9671_v53, 2 }
  0xc0   : > { %7765 = vmatprep.subr.bf16.mxu1 %v9033_v52 }
  0xc1   : > { %7698 = vmatmul.mubr.bf16.gmra.mrb[4].mxu1 %v9946_v60  ;;  %v9964_v39 = vsel %vm3267_vm2, %v3311_v42, %v3313_v36  ;;  %v9043_v42 = vld [vmem:[%s11541_s1 + $0xb0] sm:$0xff]  }
  0xc2   : > { %8066 = vmatmul.mubr.bf16.gmra.mrb[36].mxu0 %v9937_v31  ;;  %7701 = vmatprep.mubr.bf16.mxu1 %v9951_v51 }
  0xc3   : > { %8069 = vmatprep.mubr.bf16.mxu0 %v9940_v18  ;;  %7766 = vmatpush3.bf16.msra.mxu1 %v9033_v52  ;;  %v9970_v52 = vld [vmem:[%s9277_s15 + $0x28] sm:$0xff]  }
  0xc4   : > { %7767 = vmatprep.subr.bf16.mxu1 %v9035_v48 }
  0xc7   : > { %7768 = vmatpush3.bf16.msra.mxu1 %v9035_v48  ;;  %v3315_v48 = vrot.slane %v9703_v10, 2 }
  0xc8   : > { %7769 = vmatprep.subr.bf16.mxu1 %v9039_v25 }
  0xc9   : > { %7702 = vmatmul.mubr.bf16.gmra.mrb[8].mxu1 %v9970_v52  ;;  %v9985_v16 = vsel %vm3267_vm2, %v3313_v36, %v3315_v48  ;;  %v9988_v17 = vsel %vm3267_vm2, %v3315_v48, %v3317_v57  ;;  %v3321_v36 = vrot.slane %v9761_v45, 2  ;;  %v10008_v48 = vld [vmem:[%s11541_s1 + $0xc0] sm:$0xff]  }
  0xca   : > { %8070 = vmatmul.mubr.bf16.gmra.mrb[40].mxu0 %v9961_v46  ;;  %7705 = vmatprep.mubr.bf16.mxu1 %v9975_v23 }
  0xcb   : > { %8073 = vmatprep.mubr.bf16.mxu0 %v9964_v39  ;;  %7770 = vmatpush3.bf16.msra.mxu1 %v9039_v25  ;;  %v9994_v25 = vld [vmem:[%s9277_s15 + $0x38] sm:$0xff]  }
  0xcc   : > { %7771 = vmatprep.subr.bf16.mxu1 %v9041_v22 }
  0xcf   : > { %7772 = vmatpush3.bf16.msra.mxu1 %v9041_v22  ;;  %v3319_v22 = vrot.slane %v9752_v27, 2 }
  0xd0   : > { %7773 = vmatprep.subr.bf16.mxu1 %v9043_v42 }
  0xd1   : > { %7706 = vmatmul.mubr.bf16.gmra.mrb[12].mxu1 %v9994_v25  ;;  %v10011_v54 = vsel %vm3267_vm2, %v3317_v57, %v3319_v22  ;;  %v10014_v58 = vsel %vm3267_vm2, %v3319_v22, %v3321_v36  ;;  %v3325_v57 = vrot.slane %v9801_v0, 2 }
  0xd2   : > { %8074 = vmatmul.mubr.bf16.gmra.mrb[44].mxu0 %v9985_v16  ;;  %7709 = vmatprep.mubr.bf16.mxu1 %v9999_v4  ;;  %11723 = vst [vmem:[#allocation64_spill] sm:$0xff] %v10011_v54  ;;  %11724 = vst [vmem:[#allocation65_spill] sm:$0xff] %v10014_v58 }
  0xd3   : > { %8077 = vmatprep.mubr.bf16.mxu0 %v9988_v17  ;;  %7774 = vmatpush3.bf16.msra.mxu1 %v9043_v42  ;;  %v10018_v42 = vld [vmem:[%s9277_s15 + $0x48] sm:$0xff]  }
  0xd4   : > { %7775 = vmatprep.subr.bf16.mxu1 %v9045_v1 }
  0xd7   : > { %7776 = vmatpush3.bf16.msra.mxu1 %v9045_v1  ;;  %v3323_v1 = vrot.slane %v9792_v34, 2 }
  0xd8   : > { %7845 = vmatprep.subr.bf16.mxu1 %v10008_v48 }
  0xd9   : > { %7710 = vmatmul.mubr.bf16.gmra.mrb[16].mxu1 %v10018_v42  ;;  %v10030_v22 = vsel %vm3267_vm2, %v3321_v36, %v3323_v1  ;;  %v10033_v50 = vsel %vm3267_vm2, %v3323_v1, %v3325_v57  ;;  %v3327_v36 = vrot.slane %v9832_v30, 2  ;;  %v3329_v1 = vrot.slane %v9841_v15, 2 }
  0xda   : > { %8078 = vmatmul.mubr.bf16.gmra.mrb[48].mxu0 %v10011_v54  ;;  %7713 = vmatprep.mubr.bf16.mxu1 %v10023_v49  ;;  %11726 = vst [vmem:[#allocation67_spill] sm:$0xff] %v10030_v22  ;;  %11727 = vst [vmem:[#allocation68_spill] sm:$0xff] %v10033_v50  ;;  %v9036_v54 = vld [vmem:[%s9277_s15 + $0x118] sm:$0xff]  }
  0xdb   : > { %8081 = vmatprep.mubr.bf16.mxu0 %v10014_v58  ;;  %v358_v58 = vld [vmem:[%s9277_s15 + $0x114] sm:$0xf] }
  0xdc   : > { %v10049_v49 = vcombine.low %v9862_v38, %v358_v58  ;;  %v10069_v38 = vrot.slane %v9036_v54, 2 }
  0xde   : > { %v3331_v58 = vrot.slane %v10049_v49, 2 }
  0xe1   : > { %7714 = vmatmul.mubr.bf16.gmra.mrb[20].mxu1 %v10036_v35  ;;  %v10052_v35 = vsel %vm3267_vm2, %v3325_v57, %v3327_v36  ;;  %v10072_v57 = vld [vmem:[%s9277_s15 + $0x120] sm:$0xf] }
  0xe2   : > { %8082 = vmatmul.mubr.bf16.gmra.mrb[52].mxu0 %v10030_v22  ;;  %7717 = vmatprep.mubr.bf16.mxu1 %v10041_v40  ;;  %11730 = vst [vmem:[#allocation71_spill] sm:$0xff] %v10052_v35  ;;  %v10055_v22 = vsel %vm3267_vm2, %v3327_v36, %v3329_v1  ;;  %v10059_v40 = vld [vmem:[%s9277_s15 + $0x68] sm:$0xff]   ;;  %v10075_v36 = vsel %vm3267_vm2, %v3329_v1, %v3331_v58 }
  0xe3   : > { %8085 = vmatprep.mubr.bf16.mxu0 %v10033_v50  ;;  %11731 = vst [vmem:[#allocation72_spill] sm:$0xff] %v10059_v40  ;;  %v10064_v50 = vld [vmem:[%s9277_s15 + $0x70] sm:$0xff]  }
  0xe4   : > { %11732 = vst [vmem:[#allocation73_spill] sm:$0xff] %v10064_v50 }
  0xe9   : > { %7718 = vmatmul.mubr.bf16.gmra.mrb[24].mxu1 %v10059_v40  ;;  %v10079_v40 = vcombine.low %v10072_v57, %v10072_v57 }
  0xea   : > { %8086 = vmatmul.mubr.bf16.gmra.mrb[56].mxu0 %v10052_v35  ;;  %7721 = vmatprep.mubr.bf16.mxu1 %v10064_v50  ;;  %v10083_v35 = vsel %vm3267_vm2, %v3331_v58, %v10069_v38  ;;  %v10086_v50 = vld [vmem:[%s9277_s15 + $0x78] sm:$0xff]   ;;  %v9040_v58 = vld [vmem:[%s11541_s1 + $0x1c8] sm:$0xff]  }
  0xeb   : > { %8089 = vmatprep.mubr.bf16.mxu0 %v10055_v22  ;;  %v3335_v54 = vrot.slane %v10079_v40, 2 }
  0xed   : > { %v3336_v1 = vsel %vm3267_vm2, %v10069_v38, %v3335_v54  ;;  %v5714_v54 = vld [vmem:[%s11545_s5 + $0x10] sm:$0xff] }
  0xf1   : > { %7722 = vmatmul.mubr.bf16.gmra.mrb[28].mxu1 %v10086_v50 }
  0xf2   : > { %8090 = vmatmul.mubr.bf16.gmra.mrb[60].mxu0 %v10075_v36  ;;  %7725 = vmatprep.mubr.bf16.mxu1 %v9519_v9  ;;  %v9042_v9 = vld [vmem:[%s11541_s1 + $0x1d0] sm:$0xff]  }
  0xf3   : > { %8093 = vmatprep.mubr.bf16.mxu0 %v10083_v35 }
  0xf9   : > { %7726 = vmatmul.mubr.bf16.gmra.mrb[32].mxu1 %v9525_v26  ;;  %v9044_v26 = vld [vmem:[%s11541_s1 + $0x1d8] sm:$0xff]  }
  0xfa   : > { %8094 = vmatmul.mubr.bf16.gmra.mrb[64].mxu0 %v3336_v1  ;;  %7729 = vmatprep.mubr.bf16.mxu1 %v9557_v24  ;;  %v9046_v24 = vld [vmem:[%s11541_s1 + $0x1e0] sm:$0xff]  }
  0xfb   : > { %8113 = vmatprep.mubr.bf16.mxu0 %v9693_v5  ;;  %v9049_v5 = vld [vmem:[%s11541_s1 + $0xc8] sm:$0xff]   ;;  %v5712_v1 = vld [vmem:[%s11545_s5] sm:$0xff] }
 0x101   : > { %7730 = vmatmul.mubr.bf16.gmra.mrb[36].mxu1 %v9562_v7  ;;  %v9048_v7 = vld [vmem:[%s11541_s1 + $0x1e8] sm:$0xff]  }
 0x102   : > { %8114 = vmatmul.mubr.bf16.vlgmr.msra.gmra.mrb[0].mxu0 %v9710_v3  ;;  %7733 = vmatprep.mubr.bf16.mxu1 %v9584_v11  ;;  %v9052_v11 = vld [vmem:[%s11541_s1 + $0x1f8] sm:$0xff]   ;;  %v9051_v3 = vld [vmem:[%s11541_s1 + $0xd0] sm:$0xff]  }
 0x103   : > { %8182 = vmatpush3.bf16.msra.mxu0 %v9807_v12  ;;  %8117 = vmatprep.mubr.bf16.mxu0 %v9714_v62 }
 0x104   : > { %8183 = vmatprep.subr.bf16.mxu0 %v9040_v58 }
 0x107   : > { %8184 = vmatpush3.bf16.msra.mxu0 %v9040_v58  ;;  %v1670_v58 = vrot.slane %v10086_v50, 1 }
 0x108   : > { %8185 = vmatprep.subr.bf16.mxu0 %v9042_v9 }
 0x109   : > { %7734 = vmatmul.mubr.bf16.gmra.mrb[40].mxu1 %v9612_v43  ;;  %v9050_v43 = vld [vmem:[%s11541_s1 + $0x1f0] sm:$0xff]  }
 0x10a   : > { %8118 = vmatmul.mubr.bf16.gmra.mrb[4].mxu0 %v9735_v41  ;;  %7737 = vmatprep.mubr.bf16.mxu1 %v9624_v55  ;;  %v1641_v55 = vrot.slane %v9905_v13, 1  ;;  %v9058_v41 = vld [vmem:[%s11541_s1 + $0xe0] sm:$0xff]  }
 0x10b   : > { %8121 = vmatprep.mubr.bf16.mxu0 %v9745_v61  ;;  %8186 = vmatpush3.bf16.msra.mxu0 %v9042_v9  ;;  %v11738_v13 = vld [vmem:[#allocation70_spill] sm:$0xff]  ;;  %v9169_v9 = vmov 0  }
 0x10c   : > { %8187 = vmatprep.subr.bf16.mxu0 %v9044_v26  ;;  %8955 = vset.pattern.permute.xlu1 %v9169_v9 }
 0x10d   : > { %8954 = vset.pattern.permute.xlu0 %v9169_v9  ;;  %5792 = vperm.xlu1 %8955, %v5714_v54  }
 0x10e   : > { %5782 = vperm.xlu0 %8954, %v5712_v1   ;;  %v11748_v1 = vld [vmem:[#allocation6_spill] sm:$0xff] }
 0x10f   : > { %8188 = vmatpush3.bf16.msra.mxu0 %v9044_v26  ;;  %v362_v26 = vld [vmem:[%s9277_s15 + $0x124] sm:$0xf] }
 0x110   : > { %8189 = vmatprep.subr.bf16.mxu0 %v9046_v24 }
 0x111   : > { %7738 = vmatmul.mubr.bf16.gmra.mrb[44].mxu1 %v9627_v37  ;;  %v10139_v37 = vld [vmem:[%s11541_s1 + $0x200] sm:$0xff]  }
 0x112   : > { %8122 = vmatmul.mubr.bf16.gmra.mrb[8].mxu0 %v9775_v47  ;;  %7741 = vmatprep.mubr.bf16.mxu1 %v9639_v19 }
 0x113   : > { %8125 = vmatprep.mubr.bf16.mxu0 %v9785_v28  ;;  %8190 = vmatpush3.bf16.msra.mxu0 %v9046_v24  ;;  %v1652_v28 = vrot.slane %v9975_v23, 1  ;;  %v9060_v23 = vld [vmem:[%s11541_s1 + $0xe8] sm:$0xff]   ;;  %v5715_v24 = vld [vmem:[%s11545_s5 + $0x18] sm:$0xff] }
 0x114   : > { %8191 = vmatprep.subr.bf16.mxu0 %v9048_v7  ;;  %5797 = vperm.xlu1 %8955, %v5715_v24  }
 0x117   : > { %8192 = vmatpush3.bf16.msra.mxu0 %v9048_v7 }
 0x118   : > { %8193 = vmatprep.subr.bf16.mxu0 %v9050_v43 }
 0x119   : > { %7742 = vmatmul.mubr.bf16.gmra.mrb[48].mxu1 %v9671_v53  ;;  %v1642_v53 = vrot.slane %v9921_v63, 1  ;;  %v11740_v63 = vld [vmem:[#allocation72_spill] sm:$0xff] }
 0x11a   : > { %8126 = vmatmul.mubr.bf16.gmra.mrb[12].mxu0 %v9817_v32  ;;  %7745 = vmatprep.mubr.bf16.mxu1 %v9703_v10  ;;  %v1650_v10 = vrot.slane %v9970_v52, 1 }
 0x11b   : > { %8129 = vmatprep.mubr.bf16.mxu0 %v9827_v44  ;;  %8194 = vmatpush3.bf16.msra.mxu0 %v9050_v43  ;;  %v1643_v19 = vsel %vm1640_vm3, %v1641_v55, %v1642_v53  ;;  %v1654_v44 = vrot.slane %v9994_v25, 1  ;;  %v11741_v25 = vld [vmem:[#allocation71_spill] sm:$0xff]  ;;  %v10279_v43 = vcombine.low %v10072_v57, %v362_v26  ;;  %v10288_v55 = vld [vmem:[%s9277_s15 + $0x80] sm:$0xff]   ;;  %v11749_v26 = vld [vmem:[#allocation9_spill] sm:$0xff] }
 0x11c   : > { %8195 = vmatprep.subr.bf16.mxu0 %v9052_v11  ;;  %v10197_v32 = vsel %vm1640_vm3, %v1650_v10, %v1652_v28  ;;  %v5717_v57 = vld [vmem:[%s11545_s5 + $0x28] sm:$0xff]  ;;  %v4279_v24 = vrot.slane %v11749_v26, 2  ;;  %v5731_v26 = vld [vmem:[%s11545_s5 + $0x98] sm:$0xff] }
 0x11d   : > { %v10200_v61 = vsel %vm1640_vm3, %v1652_v28, %v1654_v44  ;;  %5807 = vperm.xlu1 %8955, %v5717_v57   ;;  %v10320_v28 = vld [vmem:[%s9277_s15 + $0x130] ss:$0 sps:$4 sm:$0xff]   ;;  %v10364_v57 = vld [vmem:[%s9277_s15 + $0xa0] sm:$0xff]  }
 0x11f   : > { %8196 = vmatpush3.bf16.msra.mxu0 %v9052_v11  ;;  %v10282_v11 = vld [vmem:[%s9277_s15 + $0x128] sm:$0xff]  }
 0x120   : > { %8265 = vmatprep.subr.bf16.mxu0 %v10139_v37 }
 0x121   : > { %7746 = vmatmul.mubr.bf16.gmra.mrb[52].mxu1 %v9717_v20 }
 0x122   : > { %8130 = vmatmul.mubr.bf16.gmra.mrb[16].mxu0 %v9852_v8  ;;  %7749 = vmatprep.mubr.bf16.mxu1 %v9752_v27  ;;  %v9062_v27 = vld [vmem:[%s11541_s1 + $0xf0] sm:$0xff]  }
 0x123   : > { %8133 = vmatprep.mubr.bf16.mxu0 %v9865_v59 }
 0x129   : > { %7750 = vmatmul.mubr.bf16.gmra.mrb[56].mxu1 %v9761_v45 }
 0x12a   : > { %8134 = vmatmul.mubr.bf16.gmra.mrb[20].mxu0 %v9885_v21  ;;  %7753 = vmatprep.mubr.bf16.mxu1 %v9792_v34  ;;  %v11736_v21 = vld [vmem:[#allocation69_spill] sm:$0xff] }
 0x12b   : > { %8137 = vmatprep.mubr.bf16.mxu0 %v9889_v14  ;;  %v1644_v14 = vrot.slane %v9926_v6, 1  ;;  %v1662_v8 = vrot.slane %v11736_v21, 1  ;;  %v1666_v6 = vrot.slane %v11740_v63, 1  ;;  %v3824_v21 = vrot.slane %v10320_v28, 2 }
 0x12d   : > { %v1645_v45 = vsel %vm1640_vm3, %v1642_v53, %v1644_v14  ;;  %v1672_v53 = vrot.slane %v10288_v55, 1 }
 0x131   : > { %7754 = vmatmul.mubr.bf16.gmra.mrb[60].mxu1 %v9801_v0  ;;  %v1646_v0 = vrot.slane %v9946_v60, 1 }
 0x132   : > { %8138 = vmatmul.mubr.bf16.gmra.mrb[24].mxu0 %v9898_v2  ;;  %7757 = vmatprep.mubr.bf16.mxu1 %v9832_v30  ;;  %v11735_v30 = vld [vmem:[#allocation65_spill] sm:$0xff]  ;;  %v10238_v2 = vld [vmem:[%s11541_s1 + $0x100] sm:$0xff]  }
 0x133   : > { %8141 = vmatprep.mubr.bf16.mxu0 %v9901_v29  ;;  %v10164_v47 = vsel %vm1640_vm3, %v1644_v14, %v1646_v0  ;;  %v11737_v29 = vld [vmem:[#allocation67_spill] sm:$0xff]  ;;  %v3820_v14 = vrot.slane %v10279_v43, 2 }
 0x139   : > { %7758 = vmatmul.mubr.bf16.gmra.mrb[64].mxu1 %v9841_v15  ;;  %v1648_v15 = vrot.slane %v9951_v51, 1  ;;  %v9054_v51 = vld [vmem:[%s11541_s1 + $0xd8] sm:$0xff]  }
 0x13a   : > { %8142 = vmatmul.mubr.bf16.gmra.mrb[28].mxu0 %v9912_v56  ;;  %7777 = vmatprep.mubr.bf16.mxu1 %v1643_v19  ;;  %v1664_v56 = vrot.slane %v11738_v13, 1  ;;  %v5716_v19 = vld [vmem:[%s11545_s5 + $0x20] sm:$0xff] }
 0x13b   : > { %8145 = vmatprep.mubr.bf16.mxu0 %v9915_v33  ;;  %v10179_v62 = vsel %vm1640_vm3, %v1646_v0, %v1648_v15  ;;  %v10182_v20 = vsel %vm1640_vm3, %v1648_v15, %v1650_v10  ;;  %v11739_v33 = vld [vmem:[#allocation68_spill] sm:$0xff]  ;;  %v10308_v15 = vsel %vm1640_vm3, %v1670_v58, %v1672_v53  ;;  %v3821_v10 = vsel %vm3267_vm2, %v10069_v38, %v3820_v14 }
 0x13c   : > { %v10248_v60 = vsel %vm1640_vm3, %v1662_v8, %v1664_v56  ;;  %v10251_v52 = vsel %vm1640_vm3, %v1664_v56, %v1666_v6  ;;  %v10329_v38 = vld [vmem:[%s9277_s15 + $0x90] sm:$0xff]  }
 0x141   : > { %7778 = vmatmul.mubr.bf16.vlgmr.msra.gmra.mrb[0].mxu1 %v1645_v45  ;;  %v3822_v45 = vrot.slane %v10282_v11, 2 }
 0x142   : > { %8146 = vmatmul.mubr.bf16.gmra.mrb[32].mxu0 %v9937_v31  ;;  %7781 = vmatprep.mubr.bf16.mxu1 %v10164_v47 }
 0x143   : > { %8149 = vmatprep.mubr.bf16.mxu0 %v9940_v18  ;;  %7846 = vmatpush3.bf16.msra.mxu1 %v10008_v48  ;;  %v11742_v48 = vld [vmem:[#allocation73_spill] sm:$0xff] }
 0x144   : > { %7847 = vmatprep.subr.bf16.mxu1 %v9049_v5 }
 0x147   : > { %7848 = vmatpush3.bf16.msra.mxu1 %v9049_v5  ;;  %v5719_v5 = vld [vmem:[%s11545_s5 + $0x38] sm:$0xff] }
 0x148   : > { %7849 = vmatprep.subr.bf16.mxu1 %v9051_v3  ;;  %5817 = vperm.xlu1 %8955, %v5719_v5   ;;  %v10374_v5 = vld [vmem:[%s9277_s15 + $0xa8] sm:$0xff]  }
 0x149   : > { %7782 = vmatmul.mubr.bf16.gmra.mrb[4].mxu1 %v10179_v62 }
 0x14a   : > { %8150 = vmatmul.mubr.bf16.gmra.mrb[36].mxu0 %v9961_v46  ;;  %7785 = vmatprep.mubr.bf16.mxu1 %v10182_v20  ;;  %v1658_v46 = vrot.slane %v10018_v42, 1  ;;  %v1668_v42 = vrot.slane %v11742_v48, 1 }
 0x14b   : > { %8153 = vmatprep.mubr.bf16.mxu0 %v9964_v39  ;;  %7850 = vmatpush3.bf16.msra.mxu1 %v9051_v3  ;;  %v1656_v39 = vrot.slane %v9999_v4, 1  ;;  %v9064_v4 = vld [vmem:[%s11541_s1 + $0xf8] sm:$0xff]  }
 0x14c   : > { %7851 = vmatprep.subr.bf16.mxu1 %v9054_v51  ;;  %v10270_v7 = vsel %vm1640_vm3, %v1666_v6, %v1668_v42  ;;  %v10276_v50 = vsel %vm1640_vm3, %v1668_v42, %v1670_v58  ;;  %v5722_v6 = vld [vmem:[%s11545_s5 + $0x50] sm:$0xff]  ;;  %v11747_v42 = vld [vmem:[#allocation7_spill] sm:$0xff]  ;;  %v4276_v58 = vrot.slane %v11748_v1, 3 }
 0x14d   : > { %v10215_v59 = vsel %vm1640_vm3, %v1654_v44, %v1656_v39  ;;  %v10218_v34 = vsel %vm1640_vm3, %v1656_v39, %v1658_v46  ;;  %v11743_v44 = vld [vmem:[#allocation3_spill] sm:$0xff]  ;;  %v4275_v54 = vrot.slane %v11747_v42, 2 }
 0x14f   : > { %7852 = vmatpush3.bf16.msra.mxu1 %v9054_v51  ;;  %v3823_v51 = vsel %vm3267_vm2, %v3820_v14, %v3822_v45  ;;  %v5725_v14 = vld [vmem:[%s11545_s5 + $0x68] sm:$0xff] }
 0x150   : > { %7853 = vmatprep.subr.bf16.mxu1 %v9058_v41 }
 0x151   : > { %7786 = vmatmul.mubr.bf16.gmra.mrb[8].mxu1 %v10197_v32 }
 0x152   : > { %8154 = vmatmul.mubr.bf16.gmra.mrb[40].mxu0 %v9985_v16  ;;  %7789 = vmatprep.mubr.bf16.mxu1 %v10200_v61  ;;  %v11733_v16 = vld [vmem:[#allocation64_spill] sm:$0xff] }
 0x153   : > { %8157 = vmatprep.mubr.bf16.mxu0 %v9988_v17  ;;  %7854 = vmatpush3.bf16.msra.mxu1 %v9058_v41  ;;  %v11734_v17 = vld [vmem:[#allocation66_spill] sm:$0xff]  ;;  %v4268_v41 = vrot.slane %v11743_v44, 2 }
 0x154   : > { %7855 = vmatprep.subr.bf16.mxu1 %v9060_v23  ;;  %v1660_v12 = vrot.slane %v11734_v17, 1  ;;  %v1676_v17 = vrot.slane %v10329_v38, 1 }
 0x156   : > { %v10230_v18 = vsel %vm1640_vm3, %v1658_v46, %v1660_v12  ;;  %v10233_v31 = vsel %vm1640_vm3, %v1660_v12, %v1662_v8  ;;  %v11745_v46 = vld [vmem:[#allocation5_spill] sm:$0xff]  ;;  %v5721_v12 = vld [vmem:[%s11545_s5 + $0x48] sm:$0xff] }
 0x157   : > { %7856 = vmatpush3.bf16.msra.mxu1 %v9060_v23  ;;  %v11744_v23 = vld [vmem:[#allocation2_spill] sm:$0xff]  ;;  %v10340_v8 = vld [vmem:[%s9277_s15 + $0x98] sm:$0xff]   ;;  %5827 = vperm.xlu1 %8955, %v5721_v12  }
 0x158   : > { %7857 = vmatprep.subr.bf16.mxu1 %v9062_v27  ;;  %v4269_v39 = vrot.slane %v11744_v23, 3  ;;  %v11753_v12 = vld [vmem:[#allocation13_spill] sm:$0xff] }
 0x159   : > { %7790 = vmatmul.mubr.bf16.gmra.mrb[12].mxu1 %v10215_v59 }
 0x15a   : > { %8158 = vmatmul.mubr.bf16.gmra.mrb[44].mxu0 %v11733_v16  ;;  %7793 = vmatprep.mubr.bf16.mxu1 %v10218_v34  ;;  %v4270_v13 = vor.u32 %v4269_v39, %v4268_v41  ;;  %v5726_v41 = vld [vmem:[%s11545_s5 + $0x70] sm:$0xff] }
 0x15b   : > { %8161 = vmatprep.mubr.bf16.mxu0 %v11735_v30  ;;  %7858 = vmatpush3.bf16.msra.mxu1 %v9062_v27  ;;  %v4271_v27 = vrot.slane %v11745_v46, 2  ;;  %v5720_v30 = vld [vmem:[%s11545_s5 + $0x40] sm:$0xff]  ;;  %v11751_v46 = vld [vmem:[#allocation11_spill] sm:$0xff] }
 0x15c   : > { %7859 = vmatprep.subr.bf16.mxu1 %v9064_v4 }
 0x15f   : > { %7860 = vmatpush3.bf16.msra.mxu1 %v9064_v4  ;;  %v11746_v4 = vld [vmem:[#allocation4_spill] sm:$0xff] }
 0x160   : > { %8349 = vmatprep.subr.bf16.mxu1 %v10238_v2  ;;  %v4272_v16 = vrot.slane %v11746_v4, 3  ;;  %v11752_v4 = vld [vmem:[#allocation10_spill] sm:$0xff] }
 0x161   : > { %7794 = vmatmul.mubr.bf16.gmra.mrb[16].mxu1 %v10230_v18 }
 0x162   : > { %8162 = vmatmul.mubr.bf16.gmra.mrb[48].mxu0 %v11737_v29  ;;  %7797 = vmatprep.mubr.bf16.mxu1 %v10233_v31  ;;  %v1678_v29 = vrot.slane %v10340_v8, 1  ;;  %v4273_v56 = vor.u32 %v4272_v16, %v4271_v27  ;;  %v4283_v27 = vrot.slane %v11751_v46, 2  ;;  %v4284_v16 = vrot.slane %v11752_v4, 3 }
 0x163   : > { %8165 = vmatprep.mubr.bf16.mxu0 %v11739_v33  ;;  %v5723_v33 = vld [vmem:[%s11545_s5 + $0x58] sm:$0xff] }
 0x164   : > { %v10354_v48 = vsel %vm1640_vm3, %v1676_v17, %v1678_v29  ;;  %v4274_v9 = vsel %vm4267_vm4, %v4270_v13, %v4273_v56  ;;  %5837 = vperm.xlu1 %8955, %v5723_v33   ;;  %v9059_v13 = vld [vmem:[%s11541_s1 + $0x208] sm:$0xff]   ;;  %v4285_v42 = vor.u32 %v4284_v16, %v4283_v27  ;;  %v10442_v27 = vld [vmem:[%s9277_s15 + $0xc0] sm:$0xff]  }
 0x165   : > { %11761 = vst [vmem:[#allocation65_spill] sm:$0xff] %v10442_v27  ;;  %v1688_v4 = vrot.slane %v10442_v27, 1  ;;  %v5733_v16 = vld [vmem:[%s11545_s5 + $0xa8] sm:$0xff]  ;;  %v11792_v27 = vld [vmem:[#allocation42_spill] sm:$0xff] }
 0x168   : > { %5847 = vperm.xlu1 %8955, %v5725_v14  }
 0x169   : > { %7798 = vmatmul.mubr.bf16.gmra.mrb[20].mxu1 %v10248_v60 }
 0x16a   : > { %8166 = vmatmul.mubr.bf16.gmra.mrb[52].mxu0 %v11741_v25  ;;  %7801 = vmatprep.mubr.bf16.mxu1 %v10251_v52  ;;  %v3825_v25 = vsel %vm3267_vm2, %v3822_v45, %v3824_v21  ;;  %v4277_v45 = vor.u32 %v4276_v58, %v4275_v54  ;;  %v11754_v21 = vld [vmem:[#allocation12_spill] sm:$0xff]  ;;  %v10412_v54 = vld [vmem:[%s9277_s15 + $0xb8] sm:$0xff]  }
 0x16b   : > { %8169 = vmatprep.mubr.bf16.mxu0 %v10055_v22  ;;  %v5713_v22 = vld [vmem:[%s11545_s5 + $0x8] sm:$0xff]  ;;  %11756 = vst [vmem:[#allocation66_spill] sm:$0xff] %v10412_v54  ;;  %v1686_v1 = vrot.slane %v10412_v54, 1  ;;  %v4339_v54 = vrot.slane %v11792_v27, 2 }
 0x16c   : > { %5787 = vperm.xlu0 %8954, %v5713_v22   ;;  %v11750_v22 = vld [vmem:[#allocation8_spill] sm:$0xff]  ;;  %v4278_v23 = vsel %vm4267_vm4, %v4273_v56, %v4277_v45 }
 0x16d   : > { %v10401_v56 = vld [vmem:[%s9277_s15 + $0xb0] sm:$0xff]  }
 0x16e   : > { %11755 = vst [vmem:[#allocation64_spill] sm:$0xff] %v10401_v56  ;;  %v1684_v33 = vrot.slane %v10401_v56, 1 }
 0x170   : > { %5802 = vperm.xlu0 %8954, %v5716_v19   ;;  %v1680_v19 = vrot.slane %v10364_v57, 1 }
 0x171   : > { %7802 = vmatmul.mubr.bf16.gmra.mrb[24].mxu1 %v10270_v7 }
 0x172   : > { %8170 = vmatmul.mubr.bf16.gmra.mrb[56].mxu0 %v10075_v36  ;;  %7805 = vmatprep.mubr.bf16.mxu1 %v10276_v50  ;;  %v10300_v36 = vld [vmem:[%s9277_s15 + $0x88] sm:$0xff]   ;;  %v10381_v44 = vsel %vm1640_vm3, %v1678_v29, %v1680_v19  ;;  %v4288_v29 = vrot.slane %v11754_v21, 3 }
 0x173   : > { %8173 = vmatprep.mubr.bf16.mxu0 %v10083_v35  ;;  %v1674_v0 = vrot.slane %v10300_v36, 1  ;;  %v5718_v35 = vld [vmem:[%s11545_s5 + $0x30] sm:$0xff] }
 0x174   : > { %5812 = vperm.xlu0 %8954, %v5718_v35   ;;  %v1682_v35 = vrot.slane %v10374_v5, 1 }
 0x175   : > { %v10316_v3 = vsel %vm1640_vm3, %v1672_v53, %v1674_v0  ;;  %v10347_v63 = vsel %vm1640_vm3, %v1674_v0, %v1676_v17  ;;  %v4280_v53 = vrot.slane %v11750_v22, 3  ;;  %v5724_v0 = vld [vmem:[%s11545_s5 + $0x60] sm:$0xff] }
 0x176   : > { %v10388_v39 = vsel %vm1640_vm3, %v1680_v19, %v1682_v35  ;;  %v11757_v19 = vld [vmem:[#allocation14_spill] sm:$0xff] }
 0x177   : > { %v4291_v14 = vrot.slane %v11757_v19, 2 }
 0x178   : > { %5822 = vperm.xlu0 %8954, %v5720_v30   ;;  %v4287_v30 = vrot.slane %v11753_v12, 2 }
 0x179   : > { %7806 = vmatmul.mubr.bf16.gmra.mrb[28].mxu1 %v10308_v15 }
 0x17a   : > { %8174 = vmatmul.mubr.bf16.gmra.mrb[60].mxu0 %v3821_v10  ;;  %7809 = vmatprep.mubr.bf16.mxu1 %v10316_v3  ;;  %v4281_v10 = vor.u32 %v4280_v53, %v4279_v24  ;;  %v4289_v58 = vor.u32 %v4288_v29, %v4287_v30  ;;  %v5730_v24 = vld [vmem:[%s11545_s5 + $0x90] sm:$0xff]  ;;  %v10429_v53 = vsel %vm1640_vm3, %v1684_v33, %v1686_v1  ;;  %v10452_v30 = vld [vmem:[%s9277_s15 + $0xc8] sm:$0xff]  }
 0x17b   : > { %8177 = vmatprep.mubr.bf16.mxu0 %v3823_v51  ;;  %v5727_v51 = vld [vmem:[%s11545_s5 + $0x78] sm:$0xff]  ;;  %11762 = vst [vmem:[#allocation69_spill] sm:$0xff] %v10452_v30  ;;  %v1690_v21 = vrot.slane %v10452_v30, 1 }
 0x17c   : > { %5832 = vperm.xlu0 %8954, %v5722_v6   ;;  %v4282_v17 = vsel %vm4267_vm4, %v4277_v45, %v4281_v10  ;;  %5857 = vperm.xlu1 %8955, %v5727_v51   ;;  %v5729_v6 = vld [vmem:[%s11545_s5 + $0x88] sm:$0xff]  ;;  %v4286_v22 = vsel %vm4267_vm4, %v4281_v10, %v4285_v42  ;;  %v4290_v51 = vsel %vm4267_vm4, %v4285_v42, %v4289_v58  ;;  %v9063_v10 = vld [vmem:[%s11541_s1 + $0x218] sm:$0xff]  }
 0x180   : > { %5842 = vperm.xlu0 %8954, %v5724_v0   ;;  %5867 = vperm.xlu1 %8955, %v5729_v6   ;;  %v11758_v0 = vld [vmem:[#allocation15_spill] sm:$0xff]  ;;  %v10462_v6 = vsel %vm1640_vm3, %v1686_v1, %v1688_v4 }
 0x181   : > { %7810 = vmatmul.mubr.bf16.gmra.mrb[32].mxu1 %v10347_v63  ;;  %v4292_v45 = vrot.slane %v11758_v0, 3  ;;  %v11765_v0 = vld [vmem:[#allocation20_spill] sm:$0xff] }
 0x182   : > { %8178 = vmatmul.mubr.bf16.gmra.mrb[64].mxu0 %v3825_v25  ;;  %7813 = vmatprep.mubr.bf16.mxu1 %v10354_v48  ;;  %v5728_v25 = vld [vmem:[%s11545_s5 + $0x80] sm:$0xff]  ;;  %v4303_v1 = vrot.slane %v11765_v0, 2 }
 0x183   : > { %8197 = vmatprep.mubr.bf16.mxu0 %v4274_v9  ;;  %v9061_v9 = vld [vmem:[%s11541_s1 + $0x210] sm:$0xff]   ;;  %v4293_v12 = vor.u32 %v4292_v45, %v4291_v14  ;;  %v11766_v45 = vld [vmem:[#allocation21_spill] sm:$0xff] }
 0x184   : > { %5852 = vperm.xlu0 %8954, %v5726_v41   ;;  %v11759_v41 = vld [vmem:[#allocation17_spill] sm:$0xff]  ;;  %5877 = vperm.xlu1 %8955, %v5731_v26   ;;  %v11763_v26 = vld [vmem:[#allocation19_spill] sm:$0xff] }
 0x185   : > { %v4294_v42 = vsel %vm4267_vm4, %v4289_v58, %v4293_v12  ;;  %v9066_v58 = vld [vmem:[%s11541_s1 + $0x228] sm:$0xff]  }
 0x188   : > { %5862 = vperm.xlu0 %8954, %v5728_v25   ;;  %5887 = vperm.xlu1 %8955, %v5733_v16   ;;  %v5734_v25 = vld [vmem:[%s11545_s5 + $0xb0] sm:$0xff] }
 0x189   : > { %7814 = vmatmul.mubr.bf16.gmra.mrb[36].mxu1 %v10381_v44 }
 0x18a   : > { %8198 = vmatmul.mubr.bf16.vlgmr.msra.gmra.mrb[0].mxu0 %v4278_v23  ;;  %7817 = vmatprep.mubr.bf16.mxu1 %v10388_v39  ;;  %v11760_v23 = vld [vmem:[#allocation16_spill] sm:$0xff] }
 0x18b   : > { %8266 = vmatpush3.bf16.msra.mxu0 %v10139_v37  ;;  %8201 = vmatprep.mubr.bf16.mxu0 %v4282_v17  ;;  %v10422_v37 = vsel %vm1640_vm3, %v1682_v35, %v1684_v33  ;;  %v4295_v35 = vrot.slane %v11759_v41, 2  ;;  %v4296_v46 = vrot.slane %v11760_v23, 3  ;;  %v5732_v17 = vld [vmem:[%s11545_s5 + $0xa0] sm:$0xff]  ;;  %v5735_v33 = vld [vmem:[%s11545_s5 + $0xb8] sm:$0xff]  ;;  %v10482_v41 = vld [vmem:[%s9277_s15 + $0xd0] sm:$0xff]  }
 0x18c   : > { %8267 = vmatprep.subr.bf16.mxu0 %v9059_v13  ;;  %5872 = vperm.xlu0 %8954, %v5730_v24   ;;  %v4299_v24 = vrot.slane %v11763_v26, 2  ;;  %11767 = vst [vmem:[#allocation67_spill] sm:$0xff] %v10482_v41  ;;  %v5737_v23 = vld [vmem:[%s11545_s5 + $0xc8] sm:$0xff] }
 0x18d   : > { %v4297_v29 = vor.u32 %v4296_v46, %v4295_v35  ;;  %5897 = vperm.xlu1 %8955, %v5735_v33   ;;  %v1692_v35 = vrot.slane %v10482_v41, 1  ;;  %v5736_v46 = vld [vmem:[%s11545_s5 + $0xc0] sm:$0xff]  ;;  %v5739_v33 = vld [vmem:[%s11545_s5 + $0xd8] sm:$0xff] }
 0x18f   : > { %8268 = vmatpush3.bf16.msra.mxu0 %v9059_v13  ;;  %v9065_v13 = vld [vmem:[%s11541_s1 + $0x220] sm:$0xff]   ;;  %v4298_v14 = vsel %vm4267_vm4, %v4293_v12, %v4297_v29  ;;  %v9067_v12 = vld [vmem:[%s11541_s1 + $0x230] sm:$0xff]  }
 0x190   : > { %8269 = vmatprep.subr.bf16.mxu0 %v9061_v9  ;;  %5882 = vperm.xlu0 %8954, %v5732_v17  }
 0x191   : > { %7818 = vmatmul.mubr.bf16.gmra.mrb[40].mxu1 %v10422_v37  ;;  %5907 = vperm.xlu1 %8955, %v5737_v23   ;;  %v5741_v23 = vld [vmem:[%s11545_s5 + $0xe8] sm:$0xff] }
 0x192   : > { %8202 = vmatmul.mubr.bf16.gmra.mrb[4].mxu0 %v4286_v22  ;;  %7821 = vmatprep.mubr.bf16.mxu1 %v10429_v53  ;;  %v11764_v22 = vld [vmem:[#allocation18_spill] sm:$0xff] }
 0x193   : > { %8205 = vmatprep.mubr.bf16.mxu0 %v4290_v51  ;;  %8270 = vmatpush3.bf16.msra.mxu0 %v9061_v9  ;;  %v10469_v9 = vsel %vm1640_vm3, %v1688_v4, %v1690_v21  ;;  %v4300_v19 = vrot.slane %v11764_v22, 3  ;;  %v4304_v51 = vrot.slane %v11766_v45, 3  ;;  %v10492_v4 = vld [vmem:[%s9277_s15 + $0xd8] sm:$0xff]   ;;  %v11772_v45 = vld [vmem:[#allocation24_spill] sm:$0xff] }
 0x194   : > { %8271 = vmatprep.subr.bf16.mxu0 %v9063_v10  ;;  %5892 = vperm.xlu0 %8954, %v5734_v25   ;;  %11768 = vst [vmem:[#allocation70_spill] sm:$0xff] %v10492_v4  ;;  %v1694_v16 = vrot.slane %v10492_v4, 1  ;;  %v10502_v25 = vsel %vm1640_vm3, %v1690_v21, %v1692_v35 }
 0x195   : > { %v4305_v17 = vor.u32 %v4304_v51, %v4303_v1  ;;  %v11771_v1 = vld [vmem:[#allocation25_spill] sm:$0xff]  ;;  %v4312_v51 = vrot.slane %v11772_v45, 3  ;;  %5917 = vperm.xlu1 %8955, %v5739_v33   ;;  %v10532_v33 = vld [vmem:[%s9277_s15 + $0xe8] sm:$0xff]  }
 0x196   : > { %v10509_v26 = vsel %vm1640_vm3, %v1692_v35, %v1694_v16  ;;  %v4311_v21 = vrot.slane %v11771_v1, 2  ;;  %11774 = vst [vmem:[#allocation72_spill] sm:$0xff] %v10532_v33 }
 0x197   : > { %8272 = vmatpush3.bf16.msra.mxu0 %v9063_v10  ;;  %v4301_v10 = vor.u32 %v4300_v19, %v4299_v24  ;;  %v11769_v24 = vld [vmem:[#allocation23_spill] sm:$0xff]  ;;  %v11770_v19 = vld [vmem:[#allocation22_spill] sm:$0xff] }
 0x198   : > { %8273 = vmatprep.subr.bf16.mxu0 %v9065_v13  ;;  %5902 = vperm.xlu0 %8954, %v5736_v46   ;;  %v4307_v22 = vrot.slane %v11769_v24, 2  ;;  %v5740_v46 = vld [vmem:[%s11545_s5 + $0xe0] sm:$0xff]  ;;  %v5743_v24 = vld [vmem:[%s11545_s5 + $0xf8] sm:$0xff] }
 0x199   : > { %7822 = vmatmul.mubr.bf16.gmra.mrb[44].mxu1 %v10462_v6  ;;  %v4306_v0 = vsel %vm4267_vm4, %v4301_v10, %v4305_v17  ;;  %5927 = vperm.xlu1 %8955, %v5741_v23   ;;  %v11777_v23 = vld [vmem:[#allocation29_spill] sm:$0xff] }
 0x19a   : > { %8206 = vmatmul.mubr.bf16.gmra.mrb[8].mxu0 %v4294_v42  ;;  %7825 = vmatprep.mubr.bf16.mxu1 %v10469_v9  ;;  %v5738_v42 = vld [vmem:[%s11545_s5 + $0xd0] sm:$0xff] }
 0x19b   : > { %8209 = vmatprep.mubr.bf16.mxu0 %v4298_v14  ;;  %8274 = vmatpush3.bf16.msra.mxu0 %v9065_v13  ;;  %v4302_v13 = vsel %vm4267_vm4, %v4297_v29, %v4301_v10  ;;  %v4308_v14 = vrot.slane %v11770_v19, 3  ;;  %v9068_v29 = vld [vmem:[%s11541_s1 + $0x238] sm:$0xff]  }
 0x19c   : > { %8275 = vmatprep.subr.bf16.mxu0 %v9066_v58  ;;  %5912 = vperm.xlu0 %8954, %v5738_v42   ;;  %v1698_v42 = vrot.slane %v10532_v33, 1 }
 0x19d   : > { %v4309_v10 = vor.u32 %v4308_v14, %v4307_v22  ;;  %v5742_v22 = vld [vmem:[%s11545_s5 + $0xf0] sm:$0xff]  ;;  %5937 = vperm.xlu1 %8955, %v5743_v24  }
 0x19f   : > { %8276 = vmatpush3.bf16.msra.mxu0 %v9066_v58  ;;  %v10522_v58 = vld [vmem:[%s9277_s15 + $0xe0] sm:$0xff]   ;;  %v4310_v14 = vsel %vm4267_vm4, %v4305_v17, %v4309_v10  ;;  %v10556_v17 = vld [vmem:[%s9277_s15 + $0xf0] sm:$0xff]  }
 0x1a0   : > { %8277 = vmatprep.subr.bf16.mxu0 %v9067_v12  ;;  %11773 = vst [vmem:[#allocation68_spill] sm:$0xff] %v10522_v58  ;;  %v1696_v35 = vrot.slane %v10522_v58, 1  ;;  %5922 = vperm.xlu0 %8954, %v5740_v46   ;;  %v11778_v46 = vld [vmem:[#allocation28_spill] sm:$0xff]  ;;  %11779 = vst [vmem:[#allocation71_spill] sm:$0xff] %v10556_v17 }
 0x1a1   : > { %7826 = vmatmul.mubr.bf16.gmra.mrb[48].mxu1 %v10502_v25  ;;  %v4320_v33 = vrot.slane %v11778_v46, 3  ;;  %v11782_v46 = vld [vmem:[#allocation30_spill] sm:$0xff] }
 0x1a2   : > { %8210 = vmatmul.mubr.bf16.gmra.mrb[12].mxu0 %v4302_v13  ;;  %7829 = vmatprep.mubr.bf16.mxu1 %v10509_v26  ;;  %v4313_v13 = vor.u32 %v4312_v51, %v4311_v21  ;;  %v10539_v19 = vsel %vm1640_vm3, %v1694_v16, %v1696_v35  ;;  %v11776_v21 = vld [vmem:[#allocation26_spill] sm:$0xff]  ;;  %v4319_v16 = vrot.slane %v11777_v23, 2 }
 0x1a3   : > { %8213 = vmatprep.mubr.bf16.mxu0 %v4306_v0  ;;  %8278 = vmatpush3.bf16.msra.mxu0 %v9067_v12  ;;  %v10546_v12 = vsel %vm1640_vm3, %v1696_v35, %v1698_v42  ;;  %v11775_v0 = vld [vmem:[#allocation27_spill] sm:$0xff]  ;;  %v4316_v45 = vrot.slane %v11776_v21, 3  ;;  %v1700_v35 = vrot.slane %v10556_v17, 1  ;;  %v5747_v21 = vld [vmem:[%s11545_s5 + $0x118] sm:$0xff] }
 0x1a4   : > { %8279 = vmatprep.subr.bf16.mxu0 %v9068_v29  ;;  %v4315_v1 = vrot.slane %v11775_v0, 2  ;;  %v4314_v51 = vsel %vm4267_vm4, %v4309_v10, %v4313_v13  ;;  %5932 = vperm.xlu0 %8954, %v5742_v22   ;;  %v5744_v10 = vld [vmem:[%s11545_s5 + $0x100] sm:$0xff]  ;;  %v10566_v0 = vld [vmem:[%s9277_s15 + $0xf8] sm:$0xff]  }
 0x1a5   : > { %11780 = vst [vmem:[#allocation73_spill] sm:$0xff] %v10566_v0  ;;  %v1702_v22 = vrot.slane %v10566_v0, 1  ;;  %v10573_v23 = vsel %vm1640_vm3, %v1698_v42, %v1700_v35  ;;  %v11783_v0 = vld [vmem:[#allocation33_spill] sm:$0xff]  ;;  %v11784_v42 = vld [vmem:[#allocation32_spill] sm:$0xff] }
 0x1a6   : > { %v4317_v24 = vor.u32 %v4316_v45, %v4315_v1  ;;  %v4327_v17 = vrot.slane %v11783_v0, 2  ;;  %v4328_v58 = vrot.slane %v11784_v42, 3 }
 0x1a7   : > { %8280 = vmatpush3.bf16.msra.mxu0 %v9068_v29  ;;  %v5745_v29 = vld [vmem:[%s11545_s5 + $0x108] sm:$0xff]  ;;  %v10580_v45 = vsel %vm1640_vm3, %v1700_v35, %v1702_v22 }
 0x1a8   : > { %5947 = vperm.xlu1 %8955, %v5745_v29   ;;  %5942 = vperm.xlu0 %8954, %v5744_v10   ;;  %v4318_v1 = vsel %vm4267_vm4, %v4313_v13, %v4317_v24  ;;  %v4324_v29 = vrot.slane %v11782_v46, 3  ;;  %v10590_v13 = vld [vmem:[%s9277_s15 + $0x100] sm:$0xff]   ;;  %v5751_v46 = vld [vmem:[%s11545_s5 + $0x138] sm:$0xff] }
 0x1a9   : > { %7830 = vmatmul.mubr.bf16.gmra.mrb[52].mxu1 %v10539_v19  ;;  %11785 = vst [vmem:[#allocation3_spill] sm:$0xff] %v10590_v13  ;;  %v1704_v35 = vrot.slane %v10590_v13, 1  ;;  %v11789_v13 = vld [vmem:[#allocation40_spill] sm:$0xff] }
 0x1aa   : > { %8214 = vmatmul.mubr.bf16.gmra.mrb[16].mxu0 %v4310_v14  ;;  %7833 = vmatprep.mubr.bf16.mxu1 %v10546_v12  ;;  %v4321_v14 = vor.u32 %v4320_v33, %v4319_v16  ;;  %v11781_v33 = vld [vmem:[#allocation31_spill] sm:$0xff]  ;;  %v4335_v4 = vrot.slane %v11789_v13, 2 }
 0x1ab   : > { %8217 = vmatprep.mubr.bf16.mxu0 %v4314_v51  ;;  %v5746_v51 = vld [vmem:[%s11545_s5 + $0x110] sm:$0xff]  ;;  %v4323_v16 = vrot.slane %v11781_v33, 2  ;;  %v5749_v33 = vld [vmem:[%s11545_s5 + $0x128] sm:$0xff]  ;;  %v10609_v42 = vsel %vm1640_vm3, %v1702_v22, %v1704_v35  ;;  %v11790_v22 = vld [vmem:[#allocation37_spill] sm:$0xff] }
 0x1ac   : > { %v4322_v10 = vsel %vm4267_vm4, %v4317_v24, %v4321_v14  ;;  %5957 = vperm.xlu1 %8955, %v5747_v21   ;;  %5952 = vperm.xlu0 %8954, %v5746_v51   ;;  %v5748_v24 = vld [vmem:[%s11545_s5 + $0x120] sm:$0xff]  ;;  %v10600_v21 = vld [vmem:[%s9277_s15 + $0x108] sm:$0xff]   ;;  %v4336_v41 = vrot.slane %v11790_v22, 3 }
 0x1ad   : > { %v4325_v0 = vor.u32 %v4324_v29, %v4323_v16  ;;  %11786 = vst [vmem:[#allocation2_spill] sm:$0xff] %v10600_v21  ;;  %v10603_v51 = vrot.slane %v10600_v21, 1 }
 0x1ae   : > { %v4337_v30 = vor.u32 %v4336_v41, %v4335_v4  ;;  %v11794_v4 = vld [vmem:[#allocation43_spill] sm:$0xff] }
 0x1af   : > { %v4326_v16 = vsel %vm4267_vm4, %v4321_v14, %v4325_v0  ;;  %v10617_v29 = vsel %vm1640_vm3, %v1704_v35, %v10603_v51  ;;  %v11791_v14 = vld [vmem:[#allocation62_spill] sm:$0xff] }
 0x1b0   : > { %5967 = vperm.xlu1 %8955, %v5749_v33   ;;  %5962 = vperm.xlu0 %8954, %v5748_v24   ;;  %v11788_v33 = vld [vmem:[#allocation34_spill] sm:$0xff]  ;;  %v1708_v35 = vrot.slane %v11791_v14, 1 }
 0x1b1   : > { %7834 = vmatmul.mubr.bf16.gmra.mrb[56].mxu1 %v10573_v23  ;;  %v4332_v24 = vrot.slane %v11788_v33, 3 }
 0x1b2   : > { %8218 = vmatmul.mubr.bf16.gmra.mrb[20].mxu0 %v4318_v1  ;;  %7837 = vmatprep.mubr.bf16.mxu1 %v10580_v45  ;;  %v4329_v1 = vor.u32 %v4328_v58, %v4327_v17  ;;  %v11787_v58 = vld [vmem:[#allocation35_spill] sm:$0xff] }
 0x1b3   : > { %8221 = vmatprep.mubr.bf16.mxu0 %v4322_v10  ;;  %v5750_v10 = vld [vmem:[%s11545_s5 + $0x130] sm:$0xff]  ;;  %v4331_v17 = vrot.slane %v11787_v58, 2  ;;  %v5753_v58 = vld [vmem:[%s11545_s5 + $0x148] sm:$0xff] }
 0x1b4   : > { %v4330_v21 = vsel %vm4267_vm4, %v4325_v0, %v4329_v1  ;;  %5977 = vperm.xlu1 %8955, %v5751_v46   ;;  %5972 = vperm.xlu0 %8954, %v5750_v10   ;;  %v5752_v0 = vld [vmem:[%s11545_s5 + $0x140] sm:$0xff]  ;;  %v5755_v46 = vld [vmem:[%s11545_s5 + $0x158] sm:$0xff]  ;;  %v1709_v10 = vsel %vm1640_vm3, %v10603_v51, %v1708_v35 }
 0x1b5   : > { %v4333_v33 = vor.u32 %v4332_v24, %v4331_v17  ;;  %v4343_v24 = vrot.slane %v11794_v4, 2  ;;  %v5756_v35 = vld [vmem:[%s11545_s5 + $0x160] sm:$0xff] }
 0x1b7   : > { %v4334_v14 = vsel %vm4267_vm4, %v4329_v1, %v4333_v33  ;;  %v4338_v41 = vsel %vm4267_vm4, %v4333_v33, %v4337_v30  ;;  %v5757_v1 = vld [vmem:[%s11545_s5 + $0x168] sm:$0xff] }
 0x1b8   : > { %5987 = vperm.xlu1 %8955, %v5753_v58   ;;  %5982 = vperm.xlu0 %8954, %v5752_v0   ;;  %v11795_v58 = vld [vmem:[#allocation39_spill] sm:$0xff] }
 0x1b9   : > { %7838 = vmatmul.mubr.bf16.gmra.mrb[60].mxu1 %v10609_v42  ;;  %v4344_v0 = vrot.slane %v11795_v58, 3  ;;  %v11797_v58 = vld [vmem:[#allocation41_spill] sm:$0xff] }
 0x1ba   : > { %8222 = vmatmul.mubr.bf16.gmra.mrb[24].mxu0 %v4326_v16  ;;  %7841 = vmatprep.mubr.bf16.mxu1 %v10617_v29  ;;  %v5754_v16 = vld [vmem:[%s11545_s5 + $0x150] sm:$0xff]  ;;  %v4348_v4 = vrot.slane %v11797_v58, 3 }
 0x1bb   : > { %8225 = vmatprep.mubr.bf16.mxu0 %v4330_v21  ;;  %v11793_v21 = vld [vmem:[#allocation38_spill] sm:$0xff]  ;;  %v4345_v56 = vor.u32 %v4344_v0, %v4343_v24  ;;  %v11799_v24 = vld [vmem:[#allocation45_spill] sm:$0xff] }
 0x1bc   : > { %v4340_v17 = vrot.slane %v11793_v21, 3  ;;  %5997 = vperm.xlu1 %8955, %v5755_v46   ;;  %5992 = vperm.xlu0 %8954, %v5754_v16   ;;  %v5759_v46 = vld [vmem:[%s11545_s5 + $0x178] sm:$0xff]  ;;  %v11796_v16 = vld [vmem:[#allocation44_spill] sm:$0xff]  ;;  %v4352_v0 = vrot.slane %v11799_v24, 3 }
 0x1bd   : > { %v9105_v24 = vld [vmem:[%s11541_s1 + $0x110] sm:$0xff]  }
 0x1be   : > { %v4341_v33 = vor.u32 %v4340_v17, %v4339_v54  ;;  %v11798_v54 = vld [vmem:[#allocation46_spill] sm:$0xff] }
 0x1bf   : > { %v4351_v17 = vrot.slane %v11798_v54, 2 }
 0x1c0   : > { %6007 = vperm.xlu1 %8955, %v5757_v1   ;;  %6002 = vperm.xlu0 %8954, %v5756_v35   ;;  %v5760_v1 = vld [vmem:[%s11545_s5 + $0x180] sm:$0xff] }
 0x1c1   : > { %7842 = vmatmul.mubr.bf16.gmra.mrb[64].mxu1 %v1709_v10  ;;  %v4342_v10 = vsel %vm4267_vm4, %v4337_v30, %v4341_v33  ;;  %v5761_v30 = vld [vmem:[%s11545_s5 + $0x188] sm:$0xff] }
 0x1c2   : > { %8226 = vmatmul.mubr.bf16.gmra.mrb[28].mxu0 %v4334_v14  ;;  %7861 = vmatprep.mubr.bf16.mxu1 %v10164_v47  ;;  %v5758_v47 = vld [vmem:[%s11545_s5 + $0x170] sm:$0xff]  ;;  %v4347_v14 = vrot.slane %v11796_v16, 2 }
 0x1c3   : > { %8229 = vmatprep.mubr.bf16.mxu0 %v4338_v41  ;;  %v4346_v41 = vsel %vm4267_vm4, %v4341_v33, %v4345_v56  ;;  %v4353_v33 = vor.u32 %v4352_v0, %v4351_v17  ;;  %v11802_v17 = vld [vmem:[#allocation51_spill] sm:$0xff] }
 0x1c4   : > { %6017 = vperm.xlu1 %8955, %v5759_v46   ;;  %6012 = vperm.xlu0 %8954, %v5758_v47   ;;  %v4349_v35 = vor.u32 %v4348_v4, %v4347_v14  ;;  %v5762_v46 = vld [vmem:[%s11545_s5 + $0x190] sm:$0xff]  ;;  %v4359_v0 = vrot.slane %v11802_v17, 2  ;;  %v9107_v17 = vld [vmem:[%s11541_s1 + $0x120] sm:$0xff]  }
 0x1c5   : > { %v11800_v47 = vld [vmem:[#allocation48_spill] sm:$0xff] }
 0x1c6   : > { %v4350_v4 = vsel %vm4267_vm4, %v4345_v56, %v4349_v35  ;;  %v5765_v56 = vld [vmem:[%s11545_s5 + $0x1a8] sm:$0xff] }
 0x1c8   : > { %6027 = vperm.xlu1 %8955, %v5761_v30   ;;  %6022 = vperm.xlu0 %8954, %v5760_v1   ;;  %v11803_v30 = vld [vmem:[#allocation49_spill] sm:$0xff] }
 0x1c9   : > { %7862 = vmatmul.mubr.bf16.vlgmr.msra.gmra.mrb[0].mxu1 %v10179_v62  ;;  %v9104_v62 = vld [vmem:[%s11541_s1 + $0x108] sm:$0xff]   ;;  %v4360_v1 = vrot.slane %v11803_v30, 3 }
 0x1ca   : > { %8230 = vmatmul.mubr.bf16.gmra.mrb[32].mxu0 %v4342_v10  ;;  %7865 = vmatprep.mubr.bf16.mxu1 %v10182_v20  ;;  %v5763_v20 = vld [vmem:[%s11545_s5 + $0x198] sm:$0xff]  ;;  %v11801_v10 = vld [vmem:[#allocation47_spill] sm:$0xff] }
 0x1cb   : > { %8233 = vmatprep.mubr.bf16.mxu0 %v4346_v41  ;;  %8357 = vmatpush3.bf16.msra.mxu1 %v10238_v2  ;;  %v4355_v2 = vrot.slane %v11800_v47, 2  ;;  %v4356_v14 = vrot.slane %v11801_v10, 3  ;;  %v4354_v41 = vsel %vm4267_vm4, %v4349_v35, %v4353_v33  ;;  %v5764_v35 = vld [vmem:[%s11545_s5 + $0x1a0] sm:$0xff]  ;;  %v4361_v30 = vor.u32 %v4360_v1, %v4359_v0  ;;  %v11806_v0 = vld [vmem:[#allocation55_spill] sm:$0xff] }
 0x1cc   : > { %8350 = vmatprep.subr.bf16.mxu1 %v9104_v62  ;;  %6037 = vperm.xlu1 %8955, %v5763_v20   ;;  %v5766_v20 = vld [vmem:[%s11545_s5 + $0x1b0] sm:$0xff]  ;;  %v4367_v1 = vrot.slane %v11806_v0, 2 }
 0x1cd   : > { %6032 = vperm.xlu0 %8954, %v5762_v46   ;;  %v9109_v0 = vld [vmem:[%s11541_s1 + $0x130] sm:$0xff]  }
 0x1cf   : > { %8358 = vmatpush3.bf16.msra.mxu1 %v9104_v62  ;;  %v4357_v62 = vor.u32 %v4356_v14, %v4355_v2  ;;  %v11805_v2 = vld [vmem:[#allocation50_spill] sm:$0xff] }
 0x1d0   : > { %8351 = vmatprep.subr.bf16.mxu1 %v9105_v24  ;;  %6047 = vperm.xlu1 %8955, %v5765_v56   ;;  %v4364_v14 = vrot.slane %v11805_v2, 3  ;;  %v11807_v56 = vld [vmem:[#allocation53_spill] sm:$0xff] }
 0x1d1   : > { %7866 = vmatmul.mubr.bf16.gmra.mrb[4].mxu1 %v10197_v32  ;;  %v9106_v32 = vld [vmem:[%s11541_s1 + $0x118] sm:$0xff]   ;;  %6042 = vperm.xlu0 %8954, %v5764_v35   ;;  %v4358_v46 = vsel %vm4267_vm4, %v4353_v33, %v4357_v62  ;;  %v4368_v35 = vrot.slane %v11807_v56, 3  ;;  %v5769_v33 = vld [vmem:[%s11545_s5 + $0x1c8] sm:$0xff] }
 0x1d2   : > { %8234 = vmatmul.mubr.bf16.gmra.mrb[36].mxu0 %v4350_v4  ;;  %7869 = vmatprep.mubr.bf16.mxu1 %v10200_v61  ;;  %v5767_v61 = vld [vmem:[%s11545_s5 + $0x1b8] sm:$0xff]  ;;  %v11804_v4 = vld [vmem:[#allocation52_spill] sm:$0xff] }
 0x1d3   : > { %8237 = vmatprep.mubr.bf16.mxu0 %v4354_v41  ;;  %8359 = vmatpush3.bf16.msra.mxu1 %v9105_v24  ;;  %v4363_v24 = vrot.slane %v11804_v4, 2  ;;  %v4362_v41 = vsel %vm4267_vm4, %v4357_v62, %v4361_v30  ;;  %v5768_v62 = vld [vmem:[%s11545_s5 + $0x1c0] sm:$0xff]  ;;  %v4369_v56 = vor.u32 %v4368_v35, %v4367_v1  ;;  %v11810_v1 = vld [vmem:[#allocation59_spill] sm:$0xff] }
 0x1d4   : > { %8352 = vmatprep.subr.bf16.mxu1 %v9106_v32  ;;  %6057 = vperm.xlu1 %8955, %v5767_v61   ;;  %v5770_v61 = vld [vmem:[%s11545_s5 + $0x1d0] sm:$0xff]  ;;  %v4375_v35 = vrot.slane %v11810_v1, 2 }
 0x1d5   : > { %6052 = vperm.xlu0 %8954, %v5766_v20  }
 0x1d7   : > { %8360 = vmatpush3.bf16.msra.mxu1 %v9106_v32  ;;  %v4365_v32 = vor.u32 %v4364_v14, %v4363_v24  ;;  %v11809_v24 = vld [vmem:[#allocation54_spill] sm:$0xff] }
 0x1d8   : > { %8353 = vmatprep.subr.bf16.mxu1 %v9107_v17  ;;  %6067 = vperm.xlu1 %8955, %v5769_v33   ;;  %v4372_v14 = vrot.slane %v11809_v24, 3  ;;  %v11811_v33 = vld [vmem:[#allocation57_spill] sm:$0xff] }
 0x1d9   : > { %7870 = vmatmul.mubr.bf16.gmra.mrb[8].mxu1 %v10215_v59  ;;  %v9108_v59 = vld [vmem:[%s11541_s1 + $0x128] sm:$0xff]   ;;  %6062 = vperm.xlu0 %8954, %v5768_v62   ;;  %v4366_v20 = vsel %vm4267_vm4, %v4361_v30, %v4365_v32  ;;  %v4376_v62 = vrot.slane %v11811_v33, 3 }
 0x1da   : > { %8238 = vmatmul.mubr.bf16.gmra.mrb[40].mxu0 %v4358_v46  ;;  %7873 = vmatprep.mubr.bf16.mxu1 %v10218_v34  ;;  %v5771_v34 = vld [vmem:[%s11545_s5 + $0x1d8] sm:$0xff]  ;;  %v11808_v46 = vld [vmem:[#allocation56_spill] sm:$0xff]  ;;  %v5773_v30 = vld [vmem:[%s11545_s5 + $0x1e8] sm:$0xff] }
 0x1db   : > { %8241 = vmatprep.mubr.bf16.mxu0 %v4362_v41  ;;  %8361 = vmatpush3.bf16.msra.mxu1 %v9107_v17  ;;  %v4371_v17 = vrot.slane %v11808_v46, 2  ;;  %v4370_v41 = vsel %vm4267_vm4, %v4365_v32, %v4369_v56  ;;  %v5772_v32 = vld [vmem:[%s11545_s5 + $0x1e0] sm:$0xff]  ;;  %v4377_v33 = vor.u32 %v4376_v62, %v4375_v35  ;;  %v11814_v35 = vld [vmem:[#allocation63_spill] sm:$0xff] }
 0x1dc   : > { %8354 = vmatprep.subr.bf16.mxu1 %v9108_v59  ;;  %6077 = vperm.xlu1 %8955, %v5771_v34   ;;  %v5774_v34 = vld [vmem:[%s11545_s5 + $0x1f0] sm:$0xff]  ;;  %v4383_v62 = vrot.slane %v11814_v35, 2  ;;  %v11657_v35 = vshrl.u32 %v10049_v49, 16 }
 0x1dd   : > { %6072 = vperm.xlu0 %8954, %v5770_v61  }
 0x1df   : > { %8362 = vmatpush3.bf16.msra.mxu1 %v9108_v59  ;;  %v4373_v59 = vor.u32 %v4372_v14, %v4371_v17  ;;  %v11813_v17 = vld [vmem:[#allocation58_spill] sm:$0xff] }
 0x1e0   : > { %8355 = vmatprep.subr.bf16.mxu1 %v9109_v0  ;;  %6087 = vperm.xlu1 %8955, %v5773_v30   ;;  %v4380_v14 = vrot.slane %v11813_v17, 3  ;;  %v11815_v30 = vld [vmem:[#allocation61_spill] sm:$0xff]  ;;  %v4405_v17 = vshrl.u32 %v10282_v11, 16 }
 0x1e1   : > { %7874 = vmatmul.mubr.bf16.gmra.mrb[12].mxu1 %v10230_v18  ;;  %v9110_v18 = vld [vmem:[%s11541_s1 + $0x138] sm:$0xff]   ;;  %6082 = vperm.xlu0 %8954, %v5772_v32   ;;  %v4374_v61 = vsel %vm4267_vm4, %v4369_v56, %v4373_v59  ;;  %v4384_v32 = vrot.slane %v11815_v30, 3  ;;  %v5777_v56 = vld [vmem:[%s11545_s5 + $0x208] sm:$0xff] }
 0x1e2   : > { %8242 = vmatmul.mubr.bf16.gmra.mrb[44].mxu0 %v4366_v20  ;;  %7877 = vmatprep.mubr.bf16.mxu1 %v10233_v31  ;;  %v5775_v31 = vld [vmem:[%s11545_s5 + $0x1f8] sm:$0xff]  ;;  %v11812_v20 = vld [vmem:[#allocation60_spill] sm:$0xff] }
 0x1e3   : > { %8245 = vmatprep.mubr.bf16.mxu0 %v4370_v41  ;;  %8363 = vmatpush3.bf16.msra.mxu1 %v9109_v0  ;;  %v4379_v0 = vrot.slane %v11812_v20, 2  ;;  %v4378_v41 = vsel %vm4267_vm4, %v4373_v59, %v4377_v33  ;;  %v4385_v30 = vor.u32 %v4384_v32, %v4383_v62 }
 0x1e4   : > { %8356 = vmatprep.subr.bf16.mxu1 %v9110_v18  ;;  %6097 = vperm.xlu1 %8955, %v5775_v31   ;;  %v11658_v31 = vshll.u32 %v10049_v49, 16 }
 0x1e5   : > { %6092 = vperm.xlu0 %8954, %v5774_v34   ;;  %v4381_v59 = vor.u32 %v4380_v14, %v4379_v0  ;;  %v5778_v0 = vld [vmem:[%s11545_s5 + $0x210] sm:$0xff] }
 0x1e6   : > { %v4388_v62 = vrot.slane %v11658_v31, 3  ;;  %v4399_v31 = vshll.u32 %v10279_v43, 16 }
 0x1e7   : > { %8364 = vmatpush3.bf16.msra.mxu1 %v9110_v18  ;;  %v5776_v18 = vld [vmem:[%s11545_s5 + $0x200] sm:$0xff]  ;;  %v4382_v14 = vsel %vm4267_vm4, %v4377_v33, %v4381_v59  ;;  %v4386_v32 = vsel %vm4267_vm4, %v4381_v59, %v4385_v30 }
 0x1e8   : > { %6107 = vperm.xlu1 %8955, %v5777_v56   ;;  %v4401_v20 = vrot.slane %v4399_v31, 3 }
 0x1e9   : > { %7878 = vmatmul.mubr.bf16.gmra.mrb[16].mxu1 %v10248_v60  ;;  %v10779_v60 = vld [vmem:[%s9277_s15 + $0x118] sm:$0xff]   ;;  %6102 = vperm.xlu0 %8954, %v5776_v18  }
 0x1ea   : > { %8246 = vmatmul.mubr.bf16.gmra.mrb[48].mxu0 %v4374_v61  ;;  %7881 = vmatprep.mubr.bf16.mxu1 %v10251_v52  ;;  %v11659_v34 = vshrl.u32 %v10779_v60, 16  ;;  %v11660_v52 = vshll.u32 %v10779_v60, 16  ;;  %v5779_v61 = vld [vmem:[%s11545_s5 + $0x218] sm:$0xff] }
 0x1eb   : > { %8249 = vmatprep.mubr.bf16.mxu0 %v4378_v41  ;;  %v4387_v41 = vrot.slane %v11657_v35, 2  ;;  %v4396_v35 = vshrl.u32 %v10279_v43, 16 }
 0x1ec   : > { %v4391_v56 = vrot.slane %v11659_v34, 2  ;;  %v4392_v18 = vrot.slane %v11660_v52, 3  ;;  %6117 = vperm.xlu1 %8955, %v5779_v61   ;;  %v4408_v34 = vshll.u32 %v10282_v11, 16  ;;  %v4417_v11 = vshll.u32 %v10320_v28, 16 }
 0x1ed   : > { %6112 = vperm.xlu0 %8954, %v5778_v0   ;;  %v4389_v33 = vor.u32 %v4388_v62, %v4387_v41  ;;  %v4398_v61 = vrot.slane %v4396_v35, 2  ;;  %v4407_v0 = vrot.slane %v4405_v17, 2  ;;  %v4414_v41 = vshrl.u32 %v10320_v28, 16 }
 0x1ee   : > { %v4393_v59 = vor.u32 %v4392_v18, %v4391_v56  ;;  %v4419_v62 = vrot.slane %v4417_v11, 3  ;;  %v9115_v56 = vld [vmem:[%s9277_s15 + $0x38] sm:$0xff]  }
 0x1ef   : > { %v4390_v52 = vsel %vm4267_vm4, %v4385_v30, %v4389_v33  ;;  %v4416_v31 = vrot.slane %v4414_v41, 2  ;;  %v4900_v18 = vrot.slane %v9115_v56, 3 }
 0x1f1   : > { %7882 = vmatmul.mubr.bf16.gmra.mrb[20].mxu1 %v10270_v7  ;;  %v4394_v7 = vsel %vm4267_vm4, %v4389_v33, %v4393_v59 }
 0x1f2   : > { %8250 = vmatmul.mubr.bf16.gmra.mrb[52].mxu0 %v4382_v14  ;;  %7885 = vmatprep.mubr.bf16.mxu1 %v10276_v50  ;;  %v4410_v14 = vrot.slane %v4408_v34, 3  ;;  %v4402_v50 = vor.u32 %v4401_v20, %v4398_v61  ;;  %v9113_v34 = vld [vmem:[%s9277_s15 + $0x28] sm:$0xff]  }
 0x1f3   : > { %8253 = vmatprep.mubr.bf16.mxu0 %v4386_v32  ;;  %v4896_v28 = vrot.slane %v9113_v34, 3 }
 0x1f4   : > { %v4411_v30 = vor.u32 %v4410_v14, %v4407_v0  ;;  %v4403_v35 = vsel %vm4267_vm4, %v4393_v59, %v4402_v50 }
 0x1f6   : > { %v4412_v17 = vsel %vm4267_vm4, %v4402_v50, %v4411_v30 }
 0x1f9   : > { %7886 = vmatmul.mubr.bf16.gmra.mrb[24].mxu1 %v10308_v15  ;;  %v4420_v15 = vor.u32 %v4419_v62, %v4416_v31 }
 0x1fa   : > { %8254 = vmatmul.mubr.bf16.gmra.mrb[56].mxu0 %v4390_v52  ;;  %7889 = vmatprep.mubr.bf16.mxu1 %v10316_v3  ;;  %v9112_v3 = vld [vmem:[%s9277_s15 + $0x20] sm:$0xff]  }
 0x1fb   : > { %8257 = vmatprep.mubr.bf16.mxu0 %v4394_v7  ;;  %v4895_v20 = vrot.slane %v9112_v3, 3  ;;  %v4421_v52 = vsel %vm4267_vm4, %v4411_v30, %v4420_v15  ;;  %v9123_v3 = vld [vmem:[%s9277_s15 + $0x78] sm:$0xff]  }
 0x1fd   : > { %v4897_v32 = vsel %vm4894_vm5, %v4895_v20, %v4896_v28  ;;  %v4916_v20 = vrot.slane %v9123_v3, 3 }
 0x201   : > { %7890 = vmatmul.mubr.bf16.gmra.mrb[28].mxu1 %v10347_v63  ;;  %v9114_v63 = vld [vmem:[%s9277_s15 + $0x30] sm:$0xff]  }
 0x202   : > { %8258 = vmatmul.mubr.bf16.gmra.mrb[60].mxu0 %v4403_v35  ;;  %7893 = vmatprep.mubr.bf16.mxu1 %v10354_v48  ;;  %v4898_v48 = vrot.slane %v9114_v63, 3 }
 0x203   : > { %8261 = vmatprep.mubr.bf16.mxu0 %v4412_v17 }
 0x204   : > { %v4899_v33 = vsel %vm4894_vm5, %v4896_v28, %v4898_v48  ;;  %v4901_v59 = vsel %vm4894_vm5, %v4898_v48, %v4900_v18  ;;  %v4920_v28 = vrot.slane %v10300_v36, 3 }
 0x209   : > { %7894 = vmatmul.mubr.bf16.gmra.mrb[32].mxu1 %v10381_v44  ;;  %v9116_v44 = vld [vmem:[%s9277_s15 + $0x40] sm:$0xff]  }
 0x20a   : > { %8262 = vmatmul.mubr.bf16.gmra.mrb[64].mxu0 %v4421_v52  ;;  %7897 = vmatprep.mubr.bf16.mxu1 %v10388_v39  ;;  %v4902_v61 = vrot.slane %v9116_v44, 3  ;;  %v9117_v39 = vld [vmem:[%s9277_s15 + $0x48] sm:$0xff]   ;;  %v11816_v44 = vld [vmem:[#allocation36_spill] sm:$0xff] }
 0x20b   : > { %8281 = vmatprep.mubr.bf16.mxu0 %v4897_v32  ;;  %v4904_v7 = vrot.slane %v9117_v39, 3  ;;  %v2193_v32 = vrot.slane %v10049_v49, 1  ;;  %v11817_v39 = vld [vmem:[#allocation43_spill] sm:$0xff] }
 0x20c   : > { %v4903_v0 = vsel %vm4894_vm5, %v4900_v18, %v4902_v61 }
 0x20d   : > { %v4905_v14 = vsel %vm4894_vm5, %v4902_v61, %v4904_v7  ;;  %v2194_v36 = vsel %vm1640_vm3, %v10603_v51, %v2193_v32  ;;  %v4928_v51 = vrot.slane %v10374_v5, 3 }
 0x211   : > { %7898 = vmatmul.mubr.bf16.gmra.mrb[36].mxu1 %v10422_v37  ;;  %v9118_v37 = vld [vmem:[%s9277_s15 + $0x50] sm:$0xff]  }
 0x212   : > { %8282 = vmatmul.mubr.bf16.vlgmr.msra.gmra.mrb[0].mxu0 %v4899_v33  ;;  %7901 = vmatprep.mubr.bf16.mxu1 %v10429_v53  ;;  %v4906_v50 = vrot.slane %v9118_v37, 3  ;;  %v9119_v53 = vld [vmem:[%s9277_s15 + $0x58] sm:$0xff]   ;;  %v11819_v37 = vld [vmem:[#allocation64_spill] sm:$0xff] }
 0x213   : > { %8285 = vmatprep.mubr.bf16.mxu0 %v4901_v59  ;;  %v4908_v41 = vrot.slane %v9119_v53, 3  ;;  %v2720_v59 = vrot.slane %v11792_v27, 1  ;;  %v4930_v27 = vrot.slane %v11819_v37, 3  ;;  %v2756_v37 = vrot.slane %v11810_v1, 1 }
 0x214   : > { %v4907_v11 = vsel %vm4894_vm5, %v4904_v7, %v4906_v50  ;;  %v2724_v7 = vrot.slane %v11817_v39, 1  ;;  %v11831_v39 = vld [vmem:[#allocation72_spill] sm:$0xff] }
 0x215   : > { %v4909_v30 = vsel %vm4894_vm5, %v4906_v50, %v4908_v41 }
 0x219   : > { %7902 = vmatmul.mubr.bf16.gmra.mrb[40].mxu1 %v10462_v6  ;;  %v9120_v6 = vld [vmem:[%s9277_s15 + $0x60] sm:$0xff]  }
 0x21a   : > { %8286 = vmatmul.mubr.bf16.gmra.mrb[4].mxu0 %v4903_v0  ;;  %7905 = vmatprep.mubr.bf16.mxu1 %v10469_v9  ;;  %v4910_v35 = vrot.slane %v9120_v6, 3  ;;  %v9121_v9 = vld [vmem:[%s9277_s15 + $0x68] sm:$0xff]   ;;  %v4931_v6 = vsel %vm4894_vm5, %v4928_v51, %v4930_v27 }
 0x21b   : > { %8289 = vmatprep.mubr.bf16.mxu0 %v4905_v14  ;;  %v4912_v31 = vrot.slane %v9121_v9, 3  ;;  %v11818_v0 = vld [vmem:[#allocation39_spill] sm:$0xff]  ;;  %v2732_v9 = vrot.slane %v11798_v54, 1  ;;  %v2737_v54 = vrot.slane %v11801_v10, 2 }
 0x21c   : > { %v4911_v62 = vsel %vm4894_vm5, %v4908_v41, %v4910_v35  ;;  %v2725_v14 = vrot.slane %v11818_v0, 2  ;;  %v2752_v0 = vrot.slane %v11808_v46, 1 }
 0x21d   : > { %v4913_v17 = vsel %vm4894_vm5, %v4910_v35, %v4912_v31 }
 0x21e   : > { %v2726_v50 = vor.u32 %v2725_v14, %v2724_v7  ;;  %v2753_v14 = vrot.slane %v11809_v24, 2 }
 0x221   : > { %7906 = vmatmul.mubr.bf16.gmra.mrb[44].mxu1 %v10502_v25  ;;  %v9122_v25 = vld [vmem:[%s9277_s15 + $0x70] sm:$0xff]  }
 0x222   : > { %8290 = vmatmul.mubr.bf16.gmra.mrb[8].mxu0 %v4907_v11  ;;  %7909 = vmatprep.mubr.bf16.mxu1 %v10509_v26  ;;  %v4914_v15 = vrot.slane %v9122_v25, 3  ;;  %v2728_v11 = vrot.slane %v11796_v16, 1 }
 0x223   : > { %8293 = vmatprep.mubr.bf16.mxu0 %v4909_v30  ;;  %v2729_v30 = vrot.slane %v11797_v58, 2 }
 0x224   : > { %v4915_v26 = vsel %vm4894_vm5, %v4912_v31, %v4914_v15  ;;  %v4917_v34 = vsel %vm4894_vm5, %v4914_v15, %v4916_v20  ;;  %v11821_v31 = vld [vmem:[#allocation45_spill] sm:$0xff] }
 0x225   : > { %v2730_v25 = vor.u32 %v2729_v30, %v2728_v11  ;;  %v11822_v15 = vld [vmem:[#allocation65_spill] sm:$0xff] }
 0x226   : > { %v4934_v3 = vrot.slane %v11822_v15, 3  ;;  %v11834_v30 = vld [vmem:[#allocation73_spill] sm:$0xff] }
 0x227   : > { %v4948_v24 = vrot.slane %v11834_v30, 3 }
 0x229   : > { %7910 = vmatmul.mubr.bf16.gmra.mrb[48].mxu1 %v10539_v19  ;;  %v4918_v19 = vrot.slane %v10288_v55, 3  ;;  %v4924_v55 = vrot.slane %v10340_v8, 3  ;;  %v4926_v8 = vrot.slane %v10364_v57, 3 }
 0x22a   : > { %8294 = vmatmul.mubr.bf16.gmra.mrb[12].mxu0 %v4911_v62  ;;  %7913 = vmatprep.mubr.bf16.mxu1 %v10546_v12  ;;  %v2733_v62 = vrot.slane %v11821_v31, 2  ;;  %v11836_v31 = vld [vmem:[#allocation58_spill] sm:$0xff] }
 0x22b   : > { %8297 = vmatprep.mubr.bf16.mxu0 %v4913_v17  ;;  %v4919_v12 = vsel %vm4894_vm5, %v4916_v20, %v4918_v19  ;;  %v4921_v52 = vsel %vm4894_vm5, %v4918_v19, %v4920_v28  ;;  %v4929_v57 = vsel %vm4894_vm5, %v4926_v8, %v4928_v51  ;;  %v11823_v20 = vld [vmem:[#allocation69_spill] sm:$0xff]  ;;  %v2761_v1 = vrot.slane %v11836_v31, 2 }
 0x22c   : > { %v2734_v16 = vor.u32 %v2733_v62, %v2732_v9  ;;  %v4936_v58 = vrot.slane %v11823_v20, 3 }
 0x231   : > { %7914 = vmatmul.mubr.bf16.gmra.mrb[52].mxu1 %v10573_v23  ;;  %v4922_v23 = vrot.slane %v10329_v38, 3  ;;  %v2197_v38 = vrot.slane %v10079_v40, 1 }
 0x232   : > { %8298 = vmatmul.mubr.bf16.gmra.mrb[16].mxu0 %v4915_v26  ;;  %7917 = vmatprep.mubr.bf16.mxu1 %v10580_v45  ;;  %v2195_v45 = vrot.slane %v10779_v60, 1  ;;  %v2731_v26 = vsel %vm2640_vm1, %v2726_v50, %v2730_v25 }
 0x233   : > { %8301 = vmatprep.mubr.bf16.mxu0 %v4917_v34  ;;  %v4923_v63 = vsel %vm4894_vm5, %v4920_v28, %v4922_v23  ;;  %v4925_v56 = vsel %vm4894_vm5, %v4922_v23, %v4924_v55  ;;  %v2736_v34 = vrot.slane %v11800_v47, 1  ;;  %v2735_v28 = vsel %vm2640_vm1, %v2730_v25, %v2734_v16  ;;  %v11837_v25 = vld [vmem:[#allocation63_spill] sm:$0xff] }
 0x234   : > { %v2196_v48 = vsel %vm1640_vm3, %v2193_v32, %v2195_v45  ;;  %v2198_v33 = vsel %vm1640_vm3, %v2195_v45, %v2197_v38  ;;  %v11825_v32 = vld [vmem:[#allocation49_spill] sm:$0xff]  ;;  %v4937_v45 = vsel %vm4894_vm5, %v4934_v3, %v4936_v58  ;;  %v2764_v15 = vrot.slane %v11837_v25, 1 }
 0x235   : > { %v2741_v23 = vrot.slane %v11825_v32, 2 }
 0x239   : > { %7918 = vmatmul.mubr.bf16.gmra.mrb[56].mxu1 %v10609_v42  ;;  %v2716_v42 = vrot.slane %v11789_v13, 1  ;;  %v2721_v13 = vrot.slane %v11793_v21, 2  ;;  %v11820_v21 = vld [vmem:[#allocation66_spill] sm:$0xff] }
 0x23a   : > { %8302 = vmatmul.mubr.bf16.gmra.mrb[20].mxu0 %v4919_v12  ;;  %7921 = vmatprep.mubr.bf16.mxu1 %v10617_v29  ;;  %v2717_v29 = vrot.slane %v11790_v22, 2  ;;  %v4927_v22 = vsel %vm4894_vm5, %v4924_v55, %v4926_v8  ;;  %v4932_v53 = vrot.slane %v11820_v21, 3  ;;  %v11824_v12 = vld [vmem:[#allocation51_spill] sm:$0xff]  ;;  %v2738_v55 = vor.u32 %v2737_v54, %v2736_v34 }
 0x23b   : > { %8305 = vmatprep.mubr.bf16.mxu0 %v4921_v52  ;;  %v2722_v5 = vor.u32 %v2721_v13, %v2720_v59  ;;  %v2740_v52 = vrot.slane %v11824_v12, 1 }
 0x23c   : > { %v2718_v18 = vor.u32 %v2717_v29, %v2716_v42  ;;  %v4933_v17 = vsel %vm4894_vm5, %v4930_v27, %v4932_v53  ;;  %v4935_v19 = vsel %vm4894_vm5, %v4932_v53, %v4934_v3  ;;  %v2739_v42 = vsel %vm2640_vm1, %v2734_v16, %v2738_v55  ;;  %v11832_v27 = vld [vmem:[#allocation57_spill] sm:$0xff] }
 0x23d   : > { %v2727_v35 = vsel %vm2640_vm1, %v2722_v5, %v2726_v50  ;;  %v2742_v47 = vor.u32 %v2741_v23, %v2740_v52  ;;  %v2744_v29 = vrot.slane %v11804_v4, 1  ;;  %v2757_v50 = vrot.slane %v11832_v27, 2  ;;  %v11838_v3 = vld [vmem:[#allocation61_spill] sm:$0xff] }
 0x23e   : > { %v2719_v61 = vsel %vm2640_vm1, %v11816_v44, %v2718_v18  ;;  %v2723_v41 = vsel %vm2640_vm1, %v2718_v18, %v2722_v5  ;;  %v11828_v18 = vld [vmem:[#allocation55_spill] sm:$0xff]  ;;  %v11830_v44 = vld [vmem:[#allocation68_spill] sm:$0xff]  ;;  %v2754_v53 = vor.u32 %v2753_v14, %v2752_v0  ;;  %v2765_v16 = vrot.slane %v11838_v3, 2 }
 0x23f   : > { %v2743_v8 = vsel %vm2640_vm1, %v2738_v55, %v2742_v47  ;;  %v2748_v51 = vrot.slane %v11828_v18, 1  ;;  %v2758_v46 = vor.u32 %v2757_v50, %v2756_v37  ;;  %v11841_v52 = vshrl.u32 %v10049_v49, 16  ;;  %v9125_v0 = vld [vmem:[%s9277_s15 + $0x130] ss:$0 sps:$4 sm:$0xff]   ;;  %v10961_v37 = vpop.permute.xlu0 %5782 }
 0x240   : > { %v2766_v54 = vor.u32 %v2765_v16, %v2764_v15  ;;  %v11842_v23 = vshll.u32 %v10049_v49, 16  ;;  %v4962_v14 = vrot.slane %v9125_v0, 3 }
 0x241   : > { %7922 = vmatmul.mubr.bf16.gmra.mrb[60].mxu1 %v2194_v36  ;;  %v11826_v36 = vld [vmem:[#allocation67_spill] sm:$0xff]  ;;  %v2771_v32 = vrot.slane %v11841_v52, 1 }
 0x242   : > { %8306 = vmatmul.mubr.bf16.gmra.mrb[24].mxu0 %v4923_v63  ;;  %7925 = vmatprep.mubr.bf16.mxu1 %v2196_v48  ;;  %v4938_v63 = vrot.slane %v11826_v36, 3  ;;  %v11827_v48 = vld [vmem:[#allocation70_spill] sm:$0xff] }
 0x243   : > { %8309 = vmatprep.mubr.bf16.mxu0 %v4925_v56  ;;  %v4940_v10 = vrot.slane %v11827_v48, 3  ;;  %v2745_v56 = vrot.slane %v11805_v2, 2  ;;  %v4944_v2 = vrot.slane %v11831_v39, 3  ;;  %v11844_v48 = vshll.u32 %v10779_v60, 16 }
 0x244   : > { %v4939_v38 = vsel %vm4894_vm5, %v4936_v58, %v4938_v63 }
 0x245   : > { %v4941_v13 = vsel %vm4894_vm5, %v4938_v63, %v4940_v10  ;;  %v11843_v63 = vshrl.u32 %v10779_v60, 16 }
 0x249   : > { %7926 = vmatmul.mubr.bf16.gmra.mrb[64].mxu1 %v2198_v33  ;;  %v11829_v33 = vld [vmem:[#allocation53_spill] sm:$0xff] }
 0x24a   : > { %8310 = vmatmul.mubr.bf16.gmra.mrb[28].mxu0 %v4927_v22  ;;  %7981 = vmatprep.mubr.bf16.mxu1 %v2719_v61  ;;  %v2749_v59 = vrot.slane %v11829_v33, 2  ;;  %v2746_v22 = vor.u32 %v2745_v56, %v2744_v29  ;;  %v4942_v61 = vrot.slane %v11830_v44, 3  ;;  %v2787_v56 = vshrl.u32 %v10079_v40, 16 }
 0x24b   : > { %8313 = vmatprep.mubr.bf16.mxu0 %v4929_v57 }
 0x24c   : > { %v2750_v4 = vor.u32 %v2749_v59, %v2748_v51  ;;  %v2747_v7 = vsel %vm2640_vm1, %v2742_v47, %v2746_v22  ;;  %v4943_v57 = vsel %vm4894_vm5, %v4940_v10, %v4942_v61  ;;  %v4945_v21 = vsel %vm4894_vm5, %v4942_v61, %v4944_v2 }
 0x24d   : > { %v2780_v47 = vrot.slane %v11843_v63, 1  ;;  %v2783_v10 = vrot.slane %v11844_v48, 2  ;;  %v4956_v51 = vrot.slane %v10779_v60, 3  ;;  %v2789_v59 = vrot.slane %v2787_v56, 1 }
 0x24e   : > { %v2751_v5 = vsel %vm2640_vm1, %v2746_v22, %v2750_v4 }
 0x24f   : > { %v2784_v18 = vor.u32 %v2783_v10, %v2780_v47 }
 0x251   : > { %7982 = vmatmul.mubr.bf16.vlgmr.msra.gmra.mrb[36].mxu1 %v2723_v41  ;;  %v11833_v41 = vld [vmem:[#allocation71_spill] sm:$0xff] }
 0x252   : > { %8314 = vmatmul.mubr.bf16.gmra.mrb[32].mxu0 %v4931_v6  ;;  %7985 = vmatprep.mubr.bf16.mxu1 %v2727_v35  ;;  %v4946_v11 = vrot.slane %v11833_v41, 3  ;;  %v2755_v6 = vsel %vm2640_vm1, %v2750_v4, %v2754_v53  ;;  %v11835_v35 = vld [vmem:[#allocation60_spill] sm:$0xff]  ;;  %v9124_v4 = vld [vmem:[%s9277_s15 + $0x128] sm:$0xff]   ;;  %v10971_v41 = vpop.permute.xlu0 %5787 }
 0x253   : > { %8317 = vmatprep.mubr.bf16.mxu0 %v4933_v17  ;;  %v2760_v9 = vrot.slane %v11835_v35, 1  ;;  %v2759_v17 = vsel %vm2640_vm1, %v2754_v53, %v2758_v46  ;;  %v4960_v60 = vrot.slane %v9124_v4, 3 }
 0x254   : > { %v4947_v62 = vsel %vm4894_vm5, %v4944_v2, %v4946_v11  ;;  %v4949_v20 = vsel %vm4894_vm5, %v4946_v11, %v4948_v24 }
 0x255   : > { %v2762_v58 = vor.u32 %v2761_v1, %v2760_v9 }
 0x257   : > { %v2763_v12 = vsel %vm2640_vm1, %v2758_v46, %v2762_v58  ;;  %v2767_v36 = vsel %vm2640_vm1, %v2762_v58, %v2766_v54 }
 0x259   : > { %7986 = vmatmul.mubr.bf16.gmra.mrb[40].mxu1 %v2731_v26  ;;  %v11839_v26 = vld [vmem:[#allocation3_spill] sm:$0xff] }
 0x25a   : > { %8318 = vmatmul.mubr.bf16.gmra.mrb[36].mxu0 %v4935_v19  ;;  %7989 = vmatprep.mubr.bf16.mxu1 %v2735_v28  ;;  %v4950_v34 = vrot.slane %v11839_v26, 3  ;;  %v11840_v19 = vld [vmem:[#allocation2_spill] sm:$0xff] }
 0x25b   : > { %8321 = vmatprep.mubr.bf16.mxu0 %v4937_v45  ;;  %v4952_v28 = vrot.slane %v11840_v19, 3  ;;  %v2774_v45 = vrot.slane %v11842_v23, 2 }
 0x25c   : > { %v4951_v55 = vsel %vm4894_vm5, %v4948_v24, %v4950_v34  ;;  %v10979_v24 = vpop.permute.xlu0 %5802 }
 0x25d   : > { %v2775_v29 = vor.u32 %v2774_v45, %v2771_v32 }
 0x25f   : > { %v2776_v33 = vsel %vm2640_vm1, %v2766_v54, %v2775_v29  ;;  %v2785_v44 = vsel %vm2640_vm1, %v2775_v29, %v2784_v18 }
 0x260   : > { %v10987_v31 = vpop.permute.xlu0 %5812 }
 0x261   : > { %7990 = vmatmul.mubr.bf16.gmra.mrb[44].mxu1 %v2739_v42  ;;  %v4953_v42 = vsel %vm4894_vm5, %v4950_v34, %v4952_v28 }
 0x262   : > { %8322 = vmatmul.mubr.bf16.gmra.mrb[40].mxu0 %v4939_v38  ;;  %7993 = vmatprep.mubr.bf16.mxu1 %v2743_v8  ;;  %v2790_v38 = vshll.u32 %v10079_v40, 16  ;;  %v4954_v8 = vrot.slane %v10049_v49, 3  ;;  %v4958_v49 = vrot.slane %v10279_v43, 3 }
 0x263   : > { %8325 = vmatprep.mubr.bf16.mxu0 %v4941_v13 }
 0x264   : > { %v2792_v13 = vrot.slane %v2790_v38, 2  ;;  %v4955_v22 = vsel %vm4894_vm5, %v4952_v28, %v4954_v8  ;;  %v4957_v61 = vsel %vm4894_vm5, %v4954_v8, %v4956_v51  ;;  %v4959_v2 = vsel %vm4894_vm5, %v4956_v51, %v4958_v49  ;;  %v10999_v3 = vpop.permute.xlu0 %5822 }
 0x266   : > { %v2793_v40 = vor.u32 %v2792_v13, %v2789_v59 }
 0x268   : > { %v2794_v39 = vsel %vm2640_vm1, %v2784_v18, %v2793_v40  ;;  %v11011_v54 = vpop.permute.xlu0 %5832 }
 0x269   : > { %7994 = vmatmul.mubr.bf16.gmra.mrb[48].mxu1 %v2747_v7  ;;  %v4961_v7 = vsel %vm4894_vm5, %v4958_v49, %v4960_v60 }
 0x26a   : > { %8326 = vmatmul.mubr.bf16.gmra.mrb[44].mxu0 %v4943_v57  ;;  %7997 = vmatprep.mubr.bf16.mxu1 %v2751_v5  ;;  %v4963_v57 = vsel %vm4894_vm5, %v4960_v60, %v4962_v14  ;;  %v10959_v5 = vpop.permute.xlu1 %5792 }
 0x26b   : > { %8329 = vmatprep.mubr.bf16.mxu0 %v4945_v21 }
 0x26c   : > { %v11019_v52 = vpop.permute.xlu0 %5842 }
 0x26e   : > { %v10967_v21 = vpop.permute.xlu1 %5797 }
 0x271   : > { %7998 = vmatmul.mubr.bf16.gmra.mrb[52].mxu1 %v2755_v6 }
 0x272   : > { %8330 = vmatmul.mubr.bf16.gmra.mrb[48].mxu0 %v4947_v62  ;;  %8001 = vmatprep.mubr.bf16.mxu1 %v2759_v17  ;;  %v10975_v46 = vpop.permute.xlu1 %5807 }
 0x273   : > { %8333 = vmatprep.mubr.bf16.mxu0 %v4949_v20 }
 0x276   : > { %v10985_v9 = vpop.permute.xlu1 %5817 }
 0x279   : > { %8002 = vmatmul.mubr.bf16.gmra.mrb[56].mxu1 %v2763_v12 }
 0x27a   : > { %8334 = vmatmul.mubr.bf16.gmra.mrb[52].mxu0 %v4951_v55  ;;  %8005 = vmatprep.mubr.bf16.mxu1 %v2767_v36  ;;  %v10997_v15 = vpop.permute.xlu1 %5827  ;;  %v11027_v55 = vpop.permute.xlu0 %5852 }
 0x27b   : > { %8337 = vmatprep.mubr.bf16.mxu0 %v4953_v42 }
 0x27e   : > { %v11007_v26 = vpop.permute.xlu1 %5837  ;;  %v11039_v42 = vpop.permute.xlu0 %5862 }
 0x281   : > { %8006 = vmatmul.mubr.bf16.gmra.mrb[60].mxu1 %v2776_v33 }
 0x282   : > { %8338 = vmatmul.mubr.bf16.gmra.mrb[56].mxu0 %v4955_v22  ;;  %8009 = vmatprep.mubr.bf16.mxu1 %v2785_v44  ;;  %v11015_v28 = vpop.permute.xlu1 %5847  ;;  %v11051_v51 = vpop.permute.xlu0 %5872 }
 0x283   : > { %8341 = vmatprep.mubr.bf16.mxu0 %v4957_v61 }
 0x286   : > { %v11025_v45 = vpop.permute.xlu1 %5857  ;;  %v11059_v22 = vpop.permute.xlu0 %5882 }
 0x287   : > { %11848 = vst [vmem:[#allocation6_spill] sm:$0xff] %v11059_v22 }
 0x289   : > { %8010 = vmatmul.mubr.bf16.gmra.mrb[64].mxu1 %v2794_v39 }
 0x28a   : > { %8342 = vmatmul.mubr.bf16.gmra.mrb[60].mxu0 %v4959_v2  ;;  %v11037_v10 = vpop.permute.xlu1 %5867  ;;  %v11067_v49 = vpop.permute.xlu0 %5892 }
 0x28b   : > { %8345 = vmatprep.mubr.bf16.mxu0 %v4961_v7  ;;  %11852 = vst [vmem:[#allocation10_spill] sm:$0xff] %v11067_v49 }
 0x28e   : > { %v11047_v8 = vpop.permute.xlu1 %5877  ;;  %v11079_v0 = vpop.permute.xlu0 %5902 }
 0x28f   : > { %11858 = vst [vmem:[#allocation16_spill] sm:$0xff] %v11079_v0 }
 0x292   : > { %8346 = vmatmul.mubr.bf16.gmra.mrb[64].mxu0 %v4963_v57  ;;  %v11055_v59 = vpop.permute.xlu1 %5887  ;;  %v11084_v57 = vld [vmem:[%s11542_s2] ss:$0 sm:$0xff] }
 0x293   : > { %11846 = vst [vmem:[#allocation4_spill] sm:$0xff] %v11055_v59 }
 0x296   : > { %v11065_v40 = vpop.permute.xlu1 %5897 }
 0x297   : > { %11851 = vst [vmem:[#allocation11_spill] sm:$0xff] %v11065_v40 }
 0x29a   : > { %v11077_v7 = vpop.permute.xlu1 %5907 }
 0x29b   : > { %11857 = vst [vmem:[#allocation17_spill] sm:$0xff] %v11077_v7 }
 0x29c   : > { %v7863_v43 = vpop.f32.mrb[0].mxu1 }
 0x29d   : > { %v10963_v27 = vpop.f32.mrb[1].mxu1 }
 0x29e   : > { %v10965_v50 = vpop.f32.mrb[2].mxu1 }
 0x29f   : > { %v10969_v53 = vpop.f32.mrb[3].mxu1 }
 0x2a4   : > { %v10973_v11 = vpop.f32.mrb[4].mxu1 }
 0x2a5   : > { %v10977_v30 = vpop.f32.mrb[5].mxu1 }
 0x2a6   : > { %v10981_v6 = vpop.f32.mrb[6].mxu1 }
 0x2a7   : > { %v10983_v35 = vpop.f32.mrb[7].mxu1 }
 0x2ac   : > { %v10989_v1 = vpop.f32.mrb[8].mxu1 }
 0x2ad   : > { %v10991_v62 = vpop.f32.mrb[9].mxu1 }
 0x2ae   : > { %v10993_v17 = vpop.f32.mrb[10].mxu1 }
 0x2af   : > { %v10995_v25 = vpop.f32.mrb[11].mxu1 }
 0x2b4   : > { %v11001_v16 = vpop.f32.mrb[12].mxu1 }
 0x2b5   : > { %v11003_v20 = vpop.f32.mrb[13].mxu1 }
 0x2b6   : > { %v11005_v58 = vpop.f32.mrb[14].mxu1 }
 0x2b7   : > { %v11009_v34 = vpop.f32.mrb[15].mxu1 }
 0x2bc   : > { %v11013_v19 = vpop.f32.mrb[16].mxu1 }
 0x2bd   : > { %v11017_v12 = vpop.f32.mrb[17].mxu1 }
 0x2be   : > { %v11021_v32 = vpop.f32.mrb[18].mxu1 }
 0x2bf   : > { %v11023_v23 = vpop.f32.mrb[19].mxu1 }
 0x2c4   : > { %v11029_v36 = vpop.f32.mrb[20].mxu1 }
 0x2c5   : > { %v11031_v63 = vpop.f32.mrb[21].mxu1 }
 0x2c6   : > { %v11033_v47 = vpop.f32.mrb[22].mxu1 }
 0x2c7   : > { %v11035_v48 = vpop.f32.mrb[23].mxu1 }
 0x2cc   : > { %v11041_v29 = vpop.f32.mrb[24].mxu1 }
 0x2cd   : > { %v11043_v56 = vpop.f32.mrb[25].mxu1 }
 0x2ce   : > { %v11045_v38 = vpop.f32.mrb[26].mxu1 }
 0x2cf   : > { %v11049_v18 = vpop.f32.mrb[27].mxu1 }
 0x2d4   : > { %v11053_v33 = vpop.f32.mrb[28].mxu1 }
 0x2d5   : > { %11845 = vst [vmem:[#allocation5_spill] sm:$0xff] %v11053_v33  ;;  %v11057_v13 = vpop.f32.mrb[29].mxu1  ;;  %v11097_v33 = vld [vmem:[%s11543_s3] ss:$0 sm:$0xff] }
 0x2d6   : > { %11847 = vst [vmem:[#allocation7_spill] sm:$0xff] %v11057_v13  ;;  %v11061_v44 = vpop.f32.mrb[30].mxu1  ;;  %v11089_v13 = vpop.permute.xlu0 %5912 }
 0x2d7   : > { %11849 = vst [vmem:[#allocation9_spill] sm:$0xff] %v11061_v44  ;;  %v11063_v61 = vpop.f32.mrb[31].mxu1  ;;  %11860 = vst [vmem:[#allocation18_spill] sm:$0xff] %v11089_v13 }
 0x2d8   : > { %11850 = vst [vmem:[#allocation8_spill] sm:$0xff] %v11063_v61 }
 0x2dc   : > { %v11069_v4 = vpop.f32.mrb[32].mxu1 }
 0x2dd   : > { %11853 = vst [vmem:[#allocation13_spill] sm:$0xff] %v11069_v4  ;;  %v11071_v60 = vpop.f32.mrb[33].mxu1  ;;  %v11086_v4 = vpop.permute.xlu1 %5917 }
 0x2de   : > { %11854 = vst [vmem:[#allocation12_spill] sm:$0xff] %v11071_v60  ;;  %v11073_v39 = vpop.f32.mrb[34].mxu1  ;;  %11859 = vst [vmem:[#allocation19_spill] sm:$0xff] %v11086_v4 }
 0x2df   : > { %11855 = vst [vmem:[#allocation14_spill] sm:$0xff] %v11073_v39  ;;  %v11075_v2 = vpop.f32.mrb[35].mxu1 }
 0x2e0   : > { %11856 = vst [vmem:[#allocation15_spill] sm:$0xff] %v11075_v2 }
 0x2e1   : > { %v11110_v59 = vpop.permute.xlu1 %5927 }
 0x2e2   : > { %11861 = vst [vmem:[#allocation20_spill] sm:$0xff] %v11110_v59 }
 0x2e5   : > { %v8283_v14 = vpop.f32.mrb[0].mxu0  ;;  %v11130_v49 = vpop.permute.xlu1 %5937 }
 0x2e6   : > { %v8365_v61 = vadd.f32 %v8283_v14, %v7863_v43  ;;  %v5080_v44 = vpop.f32.mrb[1].mxu0 }
 0x2e7   : > { %v8366_v60 = vadd.f32 %v5080_v44, %v10963_v27  ;;  %v8284_v39 = vpop.f32.mrb[2].mxu0 }
 0x2e8   : > { %v5428_v2 = vadd.f32 %v8365_v61, %v11084_v57  ;;  %v8367_v7 = vadd.f32 %v8284_v39, %v10965_v50  ;;  %v5083_v0 = vpop.f32.mrb[3].mxu0  ;;  %v11106_v61 = vld [vmem:[%s11544_s4] ss:$0 sm:$0xff] }
 0x2e9   : > { %v5426_v43 = vadd.f32 %v8366_v60, %v11084_v57  ;;  %v8368_v14 = vadd.f32 %v5083_v0, %v10969_v53  ;;  %v11113_v0 = vpop.permute.xlu0 %5922 }
 0x2ea   : > { %v5496_v27 = vmax.f32 %v5428_v2, 0.0  ;;  %v5429_v44 = vadd.f32 %v8367_v7, %v11084_v57  ;;  %11862 = vst [vmem:[#allocation21_spill] sm:$0xff] %v11113_v0 }
 0x2eb   : > { %v5494_v50 = vmax.f32 %v5426_v43, 0.0  ;;  %v5427_v39 = vadd.f32 %v8368_v14, %v11084_v57 }
 0x2ec   : > { %v5571_v4 = vmul.f32 %v11097_v33, %v5496_v27  ;;  %v5497_v13 = vmax.f32 %v5429_v44, 0.0 }
 0x2ed   : > { %v5569_v60 = vmul.f32 %v11097_v33, %v5494_v50  ;;  %v5495_v53 = vmax.f32 %v5427_v39, 0.0  ;;  %v8287_v2 = vpop.f32.mrb[4].mxu0 }
 0x2ee   : > { %v5646_v7 = vadd.f32 %v11106_v61, %v5571_v4  ;;  %v5572_v22 = vmul.f32 %v11097_v33, %v5497_v13  ;;  %v8369_v43 = vadd.f32 %v8287_v2, %v10973_v11  ;;  %v5096_v40 = vpop.f32.mrb[5].mxu0 }
 0x2ef   : > { %v5644_v14 = vadd.f32 %v11106_v61, %v5569_v60  ;;  %v5570_v27 = vmul.f32 %v11097_v33, %v5495_v53  ;;  %v8370_v44 = vadd.f32 %v5096_v40, %v10977_v30  ;;  %v8288_v59 = vpop.f32.mrb[6].mxu0 }
 0x2f0   : > { %v5647_v50 = vadd.f32 %v11106_v61, %v5572_v22  ;;  %v5432_v39 = vadd.f32 %v8369_v43, %v11084_v57  ;;  %v8371_v0 = vadd.f32 %v8288_v59, %v10981_v6  ;;  %v5099_v4 = vpop.f32.mrb[7].mxu0  ;;  %v6122_v60 = vmul.f32 %v10959_v5, %v5646_v7 }
 0x2f1   : > { %v5645_v13 = vadd.f32 %v11106_v61, %v5570_v27  ;;  %v5430_v11 = vadd.f32 %v8370_v44, %v11084_v57  ;;  %v8372_v2 = vadd.f32 %v5099_v4, %v10983_v35  ;;  %v6120_v22 = vmul.f32 %v10961_v37, %v5644_v14 }
 0x2f2   : > { %v6123_v53 = vmul.f32 %v10967_v21, %v5647_v50  ;;  %v5500_v30 = vmax.f32 %v5432_v39, 0.0  ;;  %v5433_v40 = vadd.f32 %v8371_v0, %v11084_v57  ;;  %v11140_v21 = vpop.permute.xlu0 %5932 }
 0x2f3   : > { %v6121_v6 = vmul.f32 %v10971_v41, %v5645_v13  ;;  %v5498_v35 = vmax.f32 %v5430_v11, 0.0  ;;  %v5431_v5 = vadd.f32 %v8372_v2, %v11084_v57 }
 0x2f4   : > { %v7020_v59 = vpack.c.bf16 %v6123_v53, %v6122_v60  ;;  %v5575_v0 = vmul.f32 %v11097_v33, %v5500_v30  ;;  %v5501_v7 = vmax.f32 %v5433_v40, 0.0 }
 0x2f5   : > { %v7015_v43 = vpack.c.bf16 %v6121_v6, %v6120_v22  ;;  %v5573_v37 = vmul.f32 %v11097_v33, %v5498_v35  ;;  %v5499_v14 = vmax.f32 %v5431_v5, 0.0  ;;  %v8291_v27 = vpop.f32.mrb[8].mxu0  ;;  %v11155_v22 = vpop.permute.xlu1 %5947 }
 0x2f6   : > { %7182 = vst [vmem:[%s11136_s10 + $0x8] sm:$0xff] %v7020_v59   ;;  %v5650_v44 = vadd.f32 %v11106_v61, %v5575_v0  ;;  %v5576_v41 = vmul.f32 %v11097_v33, %v5501_v7  ;;  %v8373_v50 = vadd.f32 %v8291_v27, %v10989_v1  ;;  %v5112_v39 = vpop.f32.mrb[9].mxu0  ;;  %v11160_v5 = vpop.permute.xlu0 %5942 }
 0x2f7   : > { %7016 = vst [vmem:[%s11136_s10] sm:$0xff] %v7015_v43   ;;  %v5648_v4 = vadd.f32 %v11106_v61, %v5573_v37  ;;  %v5574_v13 = vmul.f32 %v11097_v33, %v5499_v14  ;;  %v8374_v11 = vadd.f32 %v5112_v39, %v10991_v62  ;;  %v8292_v2 = vpop.f32.mrb[10].mxu0 }
 0x2f8   : > { %v5651_v60 = vadd.f32 %v11106_v61, %v5576_v41  ;;  %v5436_v53 = vadd.f32 %v8373_v50, %v11084_v57  ;;  %v8375_v30 = vadd.f32 %v8292_v2, %v10993_v17  ;;  %v5115_v40 = vpop.f32.mrb[11].mxu0  ;;  %v6126_v62 = vmul.f32 %v10987_v31, %v5650_v44 }
 0x2f9   : > { %v5649_v1 = vadd.f32 %v11106_v61, %v5574_v13  ;;  %v5434_v6 = vadd.f32 %v8374_v11, %v11084_v57  ;;  %v8376_v35 = vadd.f32 %v5115_v40, %v10995_v25  ;;  %v6124_v17 = vmul.f32 %v10979_v24, %v5648_v4  ;;  %v11174_v13 = vpop.permute.xlu1 %5957 }
 0x2fa   : > { %v6127_v59 = vmul.f32 %v10985_v9, %v5651_v60  ;;  %v5504_v0 = vmax.f32 %v5436_v53, 0.0  ;;  %v5437_v7 = vadd.f32 %v8375_v30, %v11084_v57  ;;  %v11180_v30 = vpop.permute.xlu0 %5952 }
 0x2fb   : > { %v6125_v43 = vmul.f32 %v10975_v46, %v5649_v1  ;;  %v5502_v37 = vmax.f32 %v5434_v6, 0.0  ;;  %v5435_v14 = vadd.f32 %v8376_v35, %v11084_v57 }
 0x2fc   : > { %v7030_v27 = vpack.c.bf16 %v6127_v59, %v6126_v62  ;;  %v5579_v25 = vmul.f32 %v11097_v33, %v5504_v0  ;;  %v5505_v41 = vmax.f32 %v5437_v7, 0.0 }
 0x2fd   : > { %v7025_v50 = vpack.c.bf16 %v6125_v43, %v6124_v17  ;;  %v5577_v31 = vmul.f32 %v11097_v33, %v5502_v37  ;;  %v5503_v44 = vmax.f32 %v5435_v14, 0.0  ;;  %v8295_v9 = vpop.f32.mrb[12].mxu0 }
 0x2fe   : > { %7184 = vst [vmem:[%s11136_s10 + $0x18] sm:$0xff] %v7030_v27   ;;  %v5654_v39 = vadd.f32 %v11106_v61, %v5579_v25  ;;  %v5580_v24 = vmul.f32 %v11097_v33, %v5505_v41  ;;  %v8377_v46 = vadd.f32 %v8295_v9, %v11001_v16  ;;  %v5128_v4 = vpop.f32.mrb[13].mxu0  ;;  %v11195_v41 = vpop.permute.xlu1 %5967 }
 0x2ff   : > { %7183 = vst [vmem:[%s11136_s10 + $0x10] sm:$0xff] %v7025_v50   ;;  %v5652_v11 = vadd.f32 %v11106_v61, %v5577_v31  ;;  %v5578_v2 = vmul.f32 %v11097_v33, %v5503_v44  ;;  %v8378_v60 = vadd.f32 %v5128_v4, %v11003_v20  ;;  %v8296_v53 = vpop.f32.mrb[14].mxu0  ;;  %v11198_v44 = vpop.permute.xlu0 %5962 }
 0x300   : > { %v5655_v40 = vadd.f32 %v11106_v61, %v5580_v24  ;;  %v5440_v1 = vadd.f32 %v8377_v46, %v11084_v57  ;;  %v8379_v6 = vadd.f32 %v8296_v53, %v11005_v58  ;;  %v5131_v16 = vpop.f32.mrb[15].mxu0  ;;  %v6130_v0 = vmul.f32 %v11011_v54, %v5654_v39 }
 0x301   : > { %v5653_v35 = vadd.f32 %v11106_v61, %v5578_v2  ;;  %v5438_v62 = vadd.f32 %v8378_v60, %v11084_v57  ;;  %v8380_v59 = vadd.f32 %v5131_v16, %v11009_v34  ;;  %v6128_v43 = vmul.f32 %v10999_v3, %v5652_v11 }
 0x302   : > { %v6131_v20 = vmul.f32 %v11007_v26, %v5655_v40  ;;  %v5508_v7 = vmax.f32 %v5440_v1, 0.0  ;;  %v5441_v17 = vadd.f32 %v8379_v6, %v11084_v57 }
 0x303   : > { %v6129_v37 = vmul.f32 %v10997_v15, %v5653_v35  ;;  %v5506_v58 = vmax.f32 %v5438_v62, 0.0  ;;  %v5439_v14 = vadd.f32 %v8380_v59, %v11084_v57  ;;  %v11217_v59 = vpop.permute.xlu1 %5977 }
 0x304   : > { %v7040_v27 = vpack.c.bf16 %v6131_v20, %v6130_v0  ;;  %v5583_v25 = vmul.f32 %v11097_v33, %v5508_v7  ;;  %v5509_v34 = vmax.f32 %v5441_v17, 0.0  ;;  %v11222_v17 = vpop.permute.xlu0 %5972 }
 0x305   : > { %v7035_v54 = vpack.c.bf16 %v6129_v37, %v6128_v43  ;;  %v5581_v26 = vmul.f32 %v11097_v33, %v5506_v58  ;;  %v5507_v50 = vmax.f32 %v5439_v14, 0.0  ;;  %v8299_v31 = vpop.f32.mrb[16].mxu0 }
 0x306   : > { %7186 = vst [vmem:[%s11136_s10 + $0x28] sm:$0xff] %v7040_v27   ;;  %v5658_v15 = vadd.f32 %v11106_v61, %v5583_v25  ;;  %v5584_v3 = vmul.f32 %v11097_v33, %v5509_v34  ;;  %v8381_v9 = vadd.f32 %v8299_v31, %v11013_v19  ;;  %v5144_v39 = vpop.f32.mrb[17].mxu0 }
 0x307   : > { %7185 = vst [vmem:[%s11136_s10 + $0x20] sm:$0xff] %v7035_v54   ;;  %v5656_v24 = vadd.f32 %v11106_v61, %v5581_v26  ;;  %v5582_v46 = vmul.f32 %v11097_v33, %v5507_v50  ;;  %v8382_v4 = vadd.f32 %v5144_v39, %v11017_v12  ;;  %v8300_v11 = vpop.f32.mrb[18].mxu0  ;;  %v11237_v39 = vpop.permute.xlu1 %5987 }
 0x308   : > { %v5659_v2 = vadd.f32 %v11106_v61, %v5584_v3  ;;  %v5444_v60 = vadd.f32 %v8381_v9, %v11084_v57  ;;  %v8383_v53 = vadd.f32 %v8300_v11, %v11021_v32  ;;  %v5147_v40 = vpop.f32.mrb[19].mxu0  ;;  %v6134_v16 = vmul.f32 %v11027_v55, %v5658_v15 }
 0x309   : > { %v5657_v1 = vadd.f32 %v11106_v61, %v5582_v46  ;;  %v5442_v19 = vadd.f32 %v8382_v4, %v11084_v57  ;;  %v8384_v6 = vadd.f32 %v5147_v40, %v11023_v23  ;;  %v6132_v0 = vmul.f32 %v11019_v52, %v5656_v24  ;;  %v11242_v4 = vpop.permute.xlu0 %5982 }
 0x30a   : > { %v6135_v35 = vmul.f32 %v11025_v45, %v5659_v2  ;;  %v5512_v12 = vmax.f32 %v5444_v60, 0.0  ;;  %v5445_v62 = vadd.f32 %v8383_v53, %v11084_v57 }
 0x30b   : > { %v6133_v32 = vmul.f32 %v11015_v28, %v5657_v1  ;;  %v5510_v20 = vmax.f32 %v5442_v19, 0.0  ;;  %v5443_v7 = vadd.f32 %v8384_v6, %v11084_v57 }
 0x30c   : > { %v7050_v23 = vpack.c.bf16 %v6135_v35, %v6134_v16  ;;  %v5587_v55 = vmul.f32 %v11097_v33, %v5512_v12  ;;  %v5513_v45 = vmax.f32 %v5445_v62, 0.0 }
 0x30d   : > { %v7045_v43 = vpack.c.bf16 %v6133_v32, %v6132_v0  ;;  %v5585_v37 = vmul.f32 %v11097_v33, %v5510_v20  ;;  %v5511_v58 = vmax.f32 %v5443_v7, 0.0  ;;  %v8303_v14 = vpop.f32.mrb[20].mxu0  ;;  %v11256_v0 = vpop.permute.xlu1 %5997 }
 0x30e   : > { %7188 = vst [vmem:[%s11136_s10 + $0x38] sm:$0xff] %v7050_v23   ;;  %v5662_v52 = vadd.f32 %v11106_v61, %v5587_v55  ;;  %v5588_v28 = vmul.f32 %v11097_v33, %v5513_v45  ;;  %v8385_v27 = vadd.f32 %v8303_v14, %v11029_v36  ;;  %v5160_v25 = vpop.f32.mrb[21].mxu0  ;;  %v11262_v55 = vpop.permute.xlu0 %5992 }
 0x30f   : > { %7187 = vst [vmem:[%s11136_s10 + $0x30] sm:$0xff] %v7045_v43   ;;  %v5660_v34 = vadd.f32 %v11106_v61, %v5585_v37  ;;  %v5586_v54 = vmul.f32 %v11097_v33, %v5511_v58  ;;  %v8386_v26 = vadd.f32 %v5160_v25, %v11031_v63  ;;  %v8304_v50 = vpop.f32.mrb[22].mxu0  ;;  %v11864_v25 = vld [vmem:[#allocation11_spill] sm:$0xff] }
 0x310   : > { %v5663_v31 = vadd.f32 %v11106_v61, %v5588_v28  ;;  %v5448_v15 = vadd.f32 %v8385_v27, %v11084_v57  ;;  %v8387_v3 = vadd.f32 %v8304_v50, %v11033_v47  ;;  %v5163_v9 = vpop.f32.mrb[23].mxu0  ;;  %v6138_v63 = vmul.f32 %v11051_v51, %v5662_v52  ;;  %v11863_v28 = vld [vmem:[#allocation10_spill] sm:$0xff] }
 0x311   : > { %v5661_v36 = vadd.f32 %v11106_v61, %v5586_v54  ;;  %v5446_v24 = vadd.f32 %v8386_v26, %v11084_v57  ;;  %v8388_v46 = vadd.f32 %v5163_v9, %v11035_v48  ;;  %v6136_v47 = vmul.f32 %v11039_v42, %v5660_v34  ;;  %v11865_v26 = vld [vmem:[#allocation6_spill] sm:$0xff] }
 0x312   : > { %v6139_v11 = vmul.f32 %v11047_v8, %v5663_v31  ;;  %v5516_v2 = vmax.f32 %v5448_v15, 0.0  ;;  %v5449_v60 = vadd.f32 %v8387_v3, %v11084_v57  ;;  %v11866_v31 = vld [vmem:[#allocation4_spill] sm:$0xff] }
 0x313   : > { %v6137_v53 = vmul.f32 %v11037_v10, %v5661_v36  ;;  %v5514_v40 = vmax.f32 %v5446_v24, 0.0  ;;  %v5447_v1 = vadd.f32 %v8388_v46, %v11084_v57  ;;  %v11277_v24 = vpop.permute.xlu1 %6007 }
 0x314   : > { %v7060_v19 = vpack.c.bf16 %v6139_v11, %v6138_v63  ;;  %v5591_v48 = vmul.f32 %v11097_v33, %v5516_v2  ;;  %v5517_v6 = vmax.f32 %v5449_v60, 0.0  ;;  %v11280_v60 = vpop.permute.xlu0 %6002 }
 0x315   : > { %v7055_v16 = vpack.c.bf16 %v6137_v53, %v6136_v47  ;;  %v5589_v51 = vmul.f32 %v11097_v33, %v5514_v40  ;;  %v5515_v35 = vmax.f32 %v5447_v1, 0.0  ;;  %v8307_v8 = vpop.f32.mrb[24].mxu0  ;;  %v11867_v40 = vld [vmem:[#allocation5_spill] sm:$0xff] }
 0x316   : > { %7190 = vst [vmem:[%s11136_s10 + $0x48] sm:$0xff] %v7060_v19   ;;  %v5666_v12 = vadd.f32 %v11106_v61, %v5591_v48  ;;  %v5592_v42 = vmul.f32 %v11097_v33, %v5517_v6  ;;  %v8389_v10 = vadd.f32 %v8307_v8, %v11041_v29  ;;  %v5176_v62 = vpop.f32.mrb[25].mxu0 }
 0x317   : > { %7189 = vst [vmem:[%s11136_s10 + $0x40] sm:$0xff] %v7055_v16   ;;  %v5664_v32 = vadd.f32 %v11106_v61, %v5589_v51  ;;  %v5590_v20 = vmul.f32 %v11097_v33, %v5515_v35  ;;  %v8390_v7 = vadd.f32 %v5176_v62, %v11043_v56  ;;  %v8308_v23 = vpop.f32.mrb[26].mxu0  ;;  %v11868_v16 = vld [vmem:[#allocation7_spill] sm:$0xff] }
 0x318   : > { %v5667_v45 = vadd.f32 %v11106_v61, %v5592_v42  ;;  %v5452_v43 = vadd.f32 %v8389_v10, %v11084_v57  ;;  %v8391_v37 = vadd.f32 %v8308_v23, %v11045_v38  ;;  %v5179_v29 = vpop.f32.mrb[27].mxu0  ;;  %v6142_v27 = vmul.f32 %v11863_v28, %v5666_v12  ;;  %v11869_v42 = vld [vmem:[#allocation9_spill] sm:$0xff]  ;;  %v11873_v28 = vld [vmem:[#allocation16_spill] sm:$0xff] }
 0x319   : > { %v5665_v58 = vadd.f32 %v11106_v61, %v5590_v20  ;;  %v5450_v14 = vadd.f32 %v8390_v7, %v11084_v57  ;;  %v8392_v52 = vadd.f32 %v5179_v29, %v11049_v18  ;;  %v6140_v50 = vmul.f32 %v11865_v26, %v5664_v32  ;;  %v11870_v7 = vld [vmem:[#allocation8_spill] sm:$0xff]  ;;  %v11304_v26 = vpop.permute.xlu0 %6012 }
 0x31a   : > { %v6143_v56 = vmul.f32 %v11864_v25, %v5667_v45  ;;  %v5520_v34 = vmax.f32 %v5452_v43, 0.0  ;;  %v5453_v54 = vadd.f32 %v8391_v37, %v11084_v57  ;;  %v11871_v45 = vld [vmem:[#allocation18_spill] sm:$0xff]  ;;  %v11872_v37 = vld [vmem:[#allocation19_spill] sm:$0xff]  ;;  %v11874_v25 = vld [vmem:[#allocation17_spill] sm:$0xff] }
 0x31b   : > { %v6141_v15 = vmul.f32 %v11866_v31, %v5665_v58  ;;  %v5518_v38 = vmax.f32 %v5450_v14, 0.0  ;;  %v5451_v3 = vadd.f32 %v8392_v52, %v11084_v57  ;;  %v11299_v52 = vpop.permute.xlu1 %6017 }
 0x31c   : > { %v7070_v9 = vpack.c.bf16 %v6143_v56, %v6142_v27  ;;  %v5595_v36 = vmul.f32 %v11097_v33, %v5520_v34  ;;  %v5521_v18 = vmax.f32 %v5453_v54, 0.0 }
 0x31d   : > { %v7065_v46 = vpack.c.bf16 %v6141_v15, %v6140_v50  ;;  %v5593_v63 = vmul.f32 %v11097_v33, %v5518_v38  ;;  %v5519_v11 = vmax.f32 %v5451_v3, 0.0  ;;  %v8311_v2 = vpop.f32.mrb[28].mxu0 }
 0x31e   : > { %7192 = vst [vmem:[%s11136_s10 + $0x58] sm:$0xff] %v7070_v9   ;;  %v5670_v47 = vadd.f32 %v11106_v61, %v5595_v36  ;;  %v5596_v53 = vmul.f32 %v11097_v33, %v5521_v18  ;;  %v8393_v1 = vadd.f32 %v8311_v2, %v11867_v40  ;;  %v5192_v19 = vpop.f32.mrb[29].mxu0  ;;  %v11875_v2 = vld [vmem:[#allocation13_spill] sm:$0xff] }
 0x31f   : > { %7191 = vst [vmem:[%s11136_s10 + $0x50] sm:$0xff] %v7065_v46   ;;  %v5668_v48 = vadd.f32 %v11106_v61, %v5593_v63  ;;  %v5594_v6 = vmul.f32 %v11097_v33, %v5519_v11  ;;  %v8394_v51 = vadd.f32 %v5192_v19, %v11868_v16  ;;  %v8312_v35 = vpop.f32.mrb[30].mxu0 }
 0x320   : > { %v5671_v8 = vadd.f32 %v11106_v61, %v5596_v53  ;;  %v5456_v12 = vadd.f32 %v8393_v1, %v11084_v57  ;;  %v8395_v10 = vadd.f32 %v8312_v35, %v11869_v42  ;;  %v5195_v62 = vpop.f32.mrb[31].mxu0  ;;  %v6146_v43 = vmul.f32 %v11871_v45, %v5670_v47 }
 0x321   : > { %v5669_v32 = vadd.f32 %v11106_v61, %v5594_v6  ;;  %v5454_v20 = vadd.f32 %v8394_v51, %v11084_v57  ;;  %v8396_v23 = vadd.f32 %v5195_v62, %v11870_v7  ;;  %v6144_v27 = vmul.f32 %v11873_v28, %v5668_v48  ;;  %v11876_v48 = vld [vmem:[#allocation12_spill] sm:$0xff] }
 0x322   : > { %v6147_v29 = vmul.f32 %v11872_v37, %v5671_v8  ;;  %v5524_v58 = vmax.f32 %v5456_v12, 0.0  ;;  %v5457_v14 = vadd.f32 %v8395_v10, %v11084_v57  ;;  %v11877_v12 = vld [vmem:[#allocation14_spill] sm:$0xff]  ;;  %v11880_v28 = vld [vmem:[#allocation20_spill] sm:$0xff] }
 0x323   : > { %v6145_v56 = vmul.f32 %v11874_v25, %v5669_v32  ;;  %v5522_v34 = vmax.f32 %v5454_v20, 0.0  ;;  %v5455_v54 = vadd.f32 %v8396_v23, %v11084_v57  ;;  %v11878_v20 = vld [vmem:[#allocation15_spill] sm:$0xff] }
 0x324   : > { %v7080_v50 = vpack.c.bf16 %v6147_v29, %v6146_v43  ;;  %v5599_v31 = vmul.f32 %v11097_v33, %v5524_v58  ;;  %v5525_v15 = vmax.f32 %v5457_v14, 0.0  ;;  %v7983_v38 = vpop.f32.mrb[36].mxu1  ;;  %v11325_v29 = vpop.permute.xlu1 %6027  ;;  %v11879_v58 = vld [vmem:[#allocation21_spill] sm:$0xff] }
 0x325   : > { %v7075_v3 = vpack.c.bf16 %v6145_v56, %v6144_v27  ;;  %v5597_v9 = vmul.f32 %v11097_v33, %v5522_v34  ;;  %v5523_v36 = vmax.f32 %v5455_v54, 0.0  ;;  %v8315_v18 = vpop.f32.mrb[32].mxu0  ;;  %v3055_v46 = vpop.f32.mrb[37].mxu1 }
 0x326   : > { %7194 = vst [vmem:[%s11136_s10 + $0x68] sm:$0xff] %v7080_v50   ;;  %v5674_v63 = vadd.f32 %v11106_v61, %v5599_v31  ;;  %v5600_v11 = vmul.f32 %v11097_v33, %v5525_v15  ;;  %v8397_v47 = vadd.f32 %v8315_v18, %v11875_v2  ;;  %v5208_v53 = vpop.f32.mrb[33].mxu0  ;;  %v7984_v40 = vpop.f32.mrb[38].mxu1 }
 0x327   : > { %7193 = vst [vmem:[%s11136_s10 + $0x60] sm:$0xff] %v7075_v3   ;;  %v5672_v1 = vadd.f32 %v11106_v61, %v5597_v9  ;;  %v5598_v19 = vmul.f32 %v11097_v33, %v5523_v36  ;;  %v8398_v6 = vadd.f32 %v5208_v53, %v11876_v48  ;;  %v8316_v16 = vpop.f32.mrb[34].mxu0  ;;  %v3058_v51 = vpop.f32.mrb[39].mxu1 }
 0x328   : > { %v5675_v35 = vadd.f32 %v11106_v61, %v5600_v11  ;;  %v5460_v8 = vadd.f32 %v8397_v47, %v11084_v57  ;;  %v8399_v42 = vadd.f32 %v8316_v16, %v11877_v12  ;;  %v5211_v10 = vpop.f32.mrb[35].mxu0  ;;  %v6150_v23 = vmul.f32 %v11140_v21, %v5674_v63  ;;  %v11330_v34 = vpop.permute.xlu0 %6022 }
 0x329   : > { %v5673_v62 = vadd.f32 %v11106_v61, %v5598_v19  ;;  %v5458_v32 = vadd.f32 %v8398_v6, %v11084_v57  ;;  %v8400_v7 = vadd.f32 %v5211_v10, %v11878_v20  ;;  %v6148_v14 = vmul.f32 %v11879_v58, %v5672_v1 }
 0x32a   : > { %v6151_v45 = vmul.f32 %v11130_v49, %v5675_v35  ;;  %v5528_v43 = vmax.f32 %v5460_v8, 0.0  ;;  %v5461_v37 = vadd.f32 %v8399_v42, %v11084_v57 }
 0x32b   : > { %v6149_v27 = vmul.f32 %v11880_v28, %v5673_v62  ;;  %v5526_v25 = vmax.f32 %v5458_v32, 0.0  ;;  %v5459_v56 = vadd.f32 %v8400_v7, %v11084_v57  ;;  %v11347_v7 = vpop.permute.xlu1 %6037 }
 0x32c   : > { %v7090_v54 = vpack.c.bf16 %v6151_v45, %v6150_v23  ;;  %v5603_v21 = vmul.f32 %v11097_v33, %v5528_v43  ;;  %v5529_v49 = vmax.f32 %v5461_v37, 0.0  ;;  %v7987_v50 = vpop.f32.mrb[40].mxu1  ;;  %v11352_v37 = vpop.permute.xlu0 %6032 }
 0x32d   : > { %v7085_v31 = vpack.c.bf16 %v6149_v27, %v6148_v14  ;;  %v5601_v15 = vmul.f32 %v11097_v33, %v5526_v25  ;;  %v5527_v3 = vmax.f32 %v5459_v56, 0.0  ;;  %v8319_v9 = vpop.f32.mrb[36].mxu0  ;;  %v3071_v36 = vpop.f32.mrb[41].mxu1 }
 0x32e   : > { %7196 = vst [vmem:[%s11136_s10 + $0x78] sm:$0xff] %v7090_v54   ;;  %v5678_v18 = vadd.f32 %v11106_v61, %v5603_v21  ;;  %v5604_v63 = vmul.f32 %v11097_v33, %v5529_v49  ;;  %v8401_v11 = vadd.f32 %v8319_v9, %v7983_v38  ;;  %v5224_v2 = vpop.f32.mrb[37].mxu0  ;;  %v7988_v47 = vpop.f32.mrb[42].mxu1 }
 0x32f   : > { %7195 = vst [vmem:[%s11136_s10 + $0x70] sm:$0xff] %v7085_v31   ;;  %v5676_v53 = vadd.f32 %v11106_v61, %v5601_v15  ;;  %v5602_v1 = vmul.f32 %v11097_v33, %v5527_v3  ;;  %v8402_v19 = vadd.f32 %v5224_v2, %v3055_v46  ;;  %v8320_v48 = vpop.f32.mrb[38].mxu0  ;;  %v3074_v6 = vpop.f32.mrb[43].mxu1 }
 0x330   : > { %v5679_v16 = vadd.f32 %v11106_v61, %v5604_v63  ;;  %v5464_v35 = vadd.f32 %v8401_v11, %v11084_v57  ;;  %v8403_v8 = vadd.f32 %v8320_v48, %v7984_v40  ;;  %v5227_v12 = vpop.f32.mrb[39].mxu0  ;;  %v6154_v62 = vmul.f32 %v11180_v30, %v5678_v18 }
 0x331   : > { %v5677_v42 = vadd.f32 %v11106_v61, %v5602_v1  ;;  %v5462_v38 = vadd.f32 %v8402_v19, %v11084_v57  ;;  %v8404_v10 = vadd.f32 %v5227_v12, %v3058_v51  ;;  %v6152_v23 = vmul.f32 %v11160_v5, %v5676_v53 }
 0x332   : > { %v6155_v32 = vmul.f32 %v11174_v13, %v5679_v16  ;;  %v5532_v20 = vmax.f32 %v5464_v35, 0.0  ;;  %v5465_v46 = vadd.f32 %v8403_v8, %v11084_v57  ;;  %v11369_v8 = vpop.permute.xlu1 %6047 }
 0x333   : > { %v6153_v40 = vmul.f32 %v11155_v22, %v5677_v42  ;;  %v5530_v45 = vmax.f32 %v5462_v38, 0.0  ;;  %v5463_v43 = vadd.f32 %v8404_v10, %v11084_v57  ;;  %v11374_v10 = vpop.permute.xlu0 %6042 }
 0x334   : > { %v7100_v51 = vpack.c.bf16 %v6155_v32, %v6154_v62  ;;  %v5607_v30 = vmul.f32 %v11097_v33, %v5532_v20  ;;  %v5533_v13 = vmax.f32 %v5465_v46, 0.0  ;;  %v7991_v58 = vpop.f32.mrb[44].mxu1 }
 0x335   : > { %v7095_v14 = vpack.c.bf16 %v6153_v40, %v6152_v23  ;;  %v5605_v28 = vmul.f32 %v11097_v33, %v5530_v45  ;;  %v5531_v27 = vmax.f32 %v5463_v43, 0.0  ;;  %v8323_v25 = vpop.f32.mrb[40].mxu0  ;;  %v3087_v56 = vpop.f32.mrb[45].mxu1 }
 0x336   : > { %7198 = vst [vmem:[%s11136_s10 + $0x88] sm:$0xff] %v7100_v51   ;;  %v5682_v22 = vadd.f32 %v11106_v61, %v5607_v30  ;;  %v5608_v5 = vmul.f32 %v11097_v33, %v5533_v13  ;;  %v8405_v54 = vadd.f32 %v8323_v25, %v7987_v50  ;;  %v5240_v21 = vpop.f32.mrb[41].mxu0  ;;  %v7992_v49 = vpop.f32.mrb[46].mxu1 }
 0x337   : > { %7197 = vst [vmem:[%s11136_s10 + $0x80] sm:$0xff] %v7095_v14   ;;  %v5680_v31 = vadd.f32 %v11106_v61, %v5605_v28  ;;  %v5606_v15 = vmul.f32 %v11097_v33, %v5531_v27  ;;  %v8406_v3 = vadd.f32 %v5240_v21, %v3071_v36  ;;  %v8324_v9 = vpop.f32.mrb[42].mxu0  ;;  %v3090_v18 = vpop.f32.mrb[47].mxu1 }
 0x338   : > { %v5683_v63 = vadd.f32 %v11106_v61, %v5608_v5  ;;  %v5468_v11 = vadd.f32 %v8405_v54, %v11084_v57  ;;  %v8407_v2 = vadd.f32 %v8324_v9, %v7988_v47  ;;  %v5243_v53 = vpop.f32.mrb[43].mxu0  ;;  %v6158_v48 = vmul.f32 %v11222_v17, %v5682_v22 }
 0x339   : > { %v5681_v1 = vadd.f32 %v11106_v61, %v5606_v15  ;;  %v5466_v50 = vadd.f32 %v8406_v3, %v11084_v57  ;;  %v8408_v19 = vadd.f32 %v5243_v53, %v3074_v6  ;;  %v6156_v12 = vmul.f32 %v11198_v44, %v5680_v31 }
 0x33a   : > { %v6159_v16 = vmul.f32 %v11217_v59, %v5683_v63  ;;  %v5536_v35 = vmax.f32 %v5468_v11, 0.0  ;;  %v5469_v36 = vadd.f32 %v8407_v2, %v11084_v57  ;;  %v11391_v63 = vpop.permute.xlu1 %6057 }
 0x33b   : > { %v6157_v47 = vmul.f32 %v11195_v41, %v5681_v1  ;;  %v5534_v42 = vmax.f32 %v5466_v50, 0.0  ;;  %v5467_v38 = vadd.f32 %v8408_v19, %v11084_v57  ;;  %v11396_v1 = vpop.permute.xlu0 %6052 }
 0x33c   : > { %v7110_v6 = vpack.c.bf16 %v6159_v16, %v6158_v48  ;;  %v5611_v17 = vmul.f32 %v11097_v33, %v5536_v35  ;;  %v5537_v59 = vmax.f32 %v5469_v36, 0.0  ;;  %v7995_v62 = vpop.f32.mrb[48].mxu1 }
 0x33d   : > { %v7105_v32 = vpack.c.bf16 %v6157_v47, %v6156_v12  ;;  %v5609_v20 = vmul.f32 %v11097_v33, %v5534_v42  ;;  %v5535_v46 = vmax.f32 %v5467_v38, 0.0  ;;  %v8327_v23 = vpop.f32.mrb[44].mxu0  ;;  %v3103_v40 = vpop.f32.mrb[49].mxu1 }
 0x33e   : > { %7200 = vst [vmem:[%s11136_s10 + $0x98] sm:$0xff] %v7110_v6   ;;  %v5686_v41 = vadd.f32 %v11106_v61, %v5611_v17  ;;  %v5612_v44 = vmul.f32 %v11097_v33, %v5537_v59  ;;  %v8409_v45 = vadd.f32 %v8327_v23, %v7991_v58  ;;  %v5256_v43 = vpop.f32.mrb[45].mxu0  ;;  %v7996_v51 = vpop.f32.mrb[50].mxu1 }
 0x33f   : > { %7199 = vst [vmem:[%s11136_s10 + $0x90] sm:$0xff] %v7105_v32   ;;  %v5684_v30 = vadd.f32 %v11106_v61, %v5609_v20  ;;  %v5610_v13 = vmul.f32 %v11097_v33, %v5535_v46  ;;  %v8410_v14 = vadd.f32 %v5256_v43, %v3087_v56  ;;  %v8328_v28 = vpop.f32.mrb[46].mxu0  ;;  %v3106_v27 = vpop.f32.mrb[51].mxu1 }
 0x340   : > { %v5687_v25 = vadd.f32 %v11106_v61, %v5612_v44  ;;  %v5472_v22 = vadd.f32 %v8409_v45, %v11084_v57  ;;  %v8411_v5 = vadd.f32 %v8328_v28, %v7992_v49  ;;  %v5259_v54 = vpop.f32.mrb[47].mxu0  ;;  %v6162_v15 = vmul.f32 %v11262_v55, %v5686_v41 }
 0x341   : > { %v5685_v21 = vadd.f32 %v11106_v61, %v5610_v13  ;;  %v5470_v58 = vadd.f32 %v8410_v14, %v11084_v57  ;;  %v8412_v31 = vadd.f32 %v5259_v54, %v3090_v18  ;;  %v6160_v11 = vmul.f32 %v11242_v4, %v5684_v30  ;;  %v11413_v14 = vpop.permute.xlu1 %6067 }
 0x342   : > { %v6163_v3 = vmul.f32 %v11256_v0, %v5687_v25  ;;  %v5540_v9 = vmax.f32 %v5472_v22, 0.0  ;;  %v5473_v56 = vadd.f32 %v8411_v5, %v11084_v57  ;;  %v11418_v5 = vpop.permute.xlu0 %6062 }
 0x343   : > { %v6161_v49 = vmul.f32 %v11237_v39, %v5685_v21  ;;  %v5538_v2 = vmax.f32 %v5470_v58, 0.0  ;;  %v5471_v53 = vadd.f32 %v8412_v31, %v11084_v57 }
 0x344   : > { %v7120_v18 = vpack.c.bf16 %v6163_v3, %v6162_v15  ;;  %v5615_v55 = vmul.f32 %v11097_v33, %v5540_v9  ;;  %v5541_v0 = vmax.f32 %v5473_v56, 0.0  ;;  %v7999_v50 = vpop.f32.mrb[52].mxu1 }
 0x345   : > { %v7115_v19 = vpack.c.bf16 %v6161_v49, %v6160_v11  ;;  %v5613_v48 = vmul.f32 %v11097_v33, %v5538_v2  ;;  %v5539_v16 = vmax.f32 %v5471_v53, 0.0  ;;  %v8331_v35 = vpop.f32.mrb[48].mxu0  ;;  %v3119_v36 = vpop.f32.mrb[53].mxu1 }
 0x346   : > { %7202 = vst [vmem:[%s11136_s10 + $0xa8] sm:$0xff] %v7120_v18   ;;  %v5690_v39 = vadd.f32 %v11106_v61, %v5615_v55  ;;  %v5616_v4 = vmul.f32 %v11097_v33, %v5541_v0  ;;  %v8413_v12 = vadd.f32 %v8331_v35, %v7995_v62  ;;  %v5272_v47 = vpop.f32.mrb[49].mxu0  ;;  %v8000_v42 = vpop.f32.mrb[54].mxu1 }
 0x347   : > { %7201 = vst [vmem:[%s11136_s10 + $0xa0] sm:$0xff] %v7115_v19   ;;  %v5688_v38 = vadd.f32 %v11106_v61, %v5613_v48  ;;  %v5614_v6 = vmul.f32 %v11097_v33, %v5539_v16  ;;  %v8414_v17 = vadd.f32 %v5272_v47, %v3103_v40  ;;  %v8332_v59 = vpop.f32.mrb[50].mxu0  ;;  %v3122_v32 = vpop.f32.mrb[55].mxu1 }
 0x348   : > { %v5691_v20 = vadd.f32 %v11106_v61, %v5616_v4  ;;  %v5476_v46 = vadd.f32 %v8413_v12, %v11084_v57  ;;  %v8415_v23 = vadd.f32 %v8332_v59, %v7996_v51  ;;  %v5275_v41 = vpop.f32.mrb[51].mxu0  ;;  %v6166_v43 = vmul.f32 %v11304_v26, %v5690_v39 }
 0x349   : > { %v5689_v44 = vadd.f32 %v11106_v61, %v5614_v6  ;;  %v5474_v62 = vadd.f32 %v8414_v17, %v11084_v57  ;;  %v8416_v45 = vadd.f32 %v5275_v41, %v3106_v27  ;;  %v6164_v28 = vmul.f32 %v11280_v60, %v5688_v38  ;;  %v11435_v38 = vpop.permute.xlu1 %6077 }
 0x34a   : > { %v6167_v30 = vmul.f32 %v11299_v52, %v5691_v20  ;;  %v5544_v13 = vmax.f32 %v5476_v46, 0.0  ;;  %v5477_v40 = vadd.f32 %v8415_v23, %v11084_v57  ;;  %v11440_v20 = vpop.permute.xlu0 %6072 }
 0x34b   : > { %v6165_v51 = vmul.f32 %v11277_v24, %v5689_v44  ;;  %v5542_v25 = vmax.f32 %v5474_v62, 0.0  ;;  %v5475_v22 = vadd.f32 %v8416_v45, %v11084_v57 }
 0x34c   : > { %v7130_v27 = vpack.c.bf16 %v6167_v30, %v6166_v43  ;;  %v5619_v26 = vmul.f32 %v11097_v33, %v5544_v13  ;;  %v5545_v52 = vmax.f32 %v5477_v40, 0.0  ;;  %v8003_v54 = vpop.f32.mrb[56].mxu1 }
 0x34d   : > { %v7125_v21 = vpack.c.bf16 %v6165_v51, %v6164_v28  ;;  %v5617_v58 = vmul.f32 %v11097_v33, %v5542_v25  ;;  %v5543_v31 = vmax.f32 %v5475_v22, 0.0  ;;  %v8335_v15 = vpop.f32.mrb[52].mxu0  ;;  %v3135_v3 = vpop.f32.mrb[57].mxu1 }
 0x34e   : > { %7204 = vst [vmem:[%s11136_s10 + $0xb8] sm:$0xff] %v7130_v27   ;;  %v5694_v24 = vadd.f32 %v11106_v61, %v5619_v26  ;;  %v5620_v60 = vmul.f32 %v11097_v33, %v5545_v52  ;;  %v8417_v9 = vadd.f32 %v8335_v15, %v7999_v50  ;;  %v5288_v56 = vpop.f32.mrb[53].mxu0  ;;  %v8004_v11 = vpop.f32.mrb[58].mxu1  ;;  %v11454_v27 = vld [vmem:[%s11542_s2] ss:$0 sm:$0xff] }
 0x34f   : > { %7203 = vst [vmem:[%s11136_s10 + $0xb0] sm:$0xff] %v7125_v21   ;;  %v5692_v49 = vadd.f32 %v11106_v61, %v5617_v58  ;;  %v5618_v2 = vmul.f32 %v11097_v33, %v5543_v31  ;;  %v8418_v53 = vadd.f32 %v5288_v56, %v3119_v36  ;;  %v8336_v18 = vpop.f32.mrb[54].mxu0  ;;  %v3138_v55 = vpop.f32.mrb[59].mxu1 }
 0x350   : > { %v5695_v0 = vadd.f32 %v11106_v61, %v5620_v60  ;;  %v5480_v19 = vadd.f32 %v8417_v9, %v11084_v57  ;;  %v8419_v48 = vadd.f32 %v8336_v18, %v8000_v42  ;;  %v5291_v16 = vpop.f32.mrb[55].mxu0  ;;  %v6170_v4 = vmul.f32 %v11352_v37, %v5694_v24  ;;  %v11462_v60 = vpop.permute.xlu1 %6087 }
 0x351   : > { %v5693_v35 = vadd.f32 %v11106_v61, %v5618_v2  ;;  %v5478_v50 = vadd.f32 %v8418_v53, %v11084_v57  ;;  %v8420_v39 = vadd.f32 %v5291_v16, %v3122_v32  ;;  %v6168_v6 = vmul.f32 %v11330_v34, %v5692_v49  ;;  %v11467_v49 = vpop.permute.xlu0 %6082 }
 0x352   : > { %v6171_v12 = vmul.f32 %v11347_v7, %v5695_v0  ;;  %v5548_v47 = vmax.f32 %v5480_v19, 0.0  ;;  %v5481_v36 = vadd.f32 %v8419_v48, %v11084_v57  ;;  %v11480_v48 = vld [vmem:[%s11544_s4] ss:$0 sm:$0xff] }
 0x353   : > { %v6169_v42 = vmul.f32 %v11325_v29, %v5693_v35  ;;  %v5546_v17 = vmax.f32 %v5478_v50, 0.0  ;;  %v5479_v59 = vadd.f32 %v8420_v39, %v11084_v57 }
 0x354   : > { %v7140_v32 = vpack.c.bf16 %v6171_v12, %v6170_v4  ;;  %v5623_v37 = vmul.f32 %v11097_v33, %v5548_v47  ;;  %v5549_v7 = vmax.f32 %v5481_v36, 0.0  ;;  %v8007_v46 = vpop.f32.mrb[60].mxu1 }
 0x355   : > { %v7135_v23 = vpack.c.bf16 %v6169_v42, %v6168_v6  ;;  %v5621_v41 = vmul.f32 %v11097_v33, %v5546_v17  ;;  %v5547_v44 = vmax.f32 %v5479_v59, 0.0  ;;  %v8339_v62 = vpop.f32.mrb[56].mxu0  ;;  %v3151_v45 = vpop.f32.mrb[61].mxu1 }
 0x356   : > { %7206 = vst [vmem:[%s11136_s10 + $0xc8] sm:$0xff] %v7140_v32   ;;  %v5698_v29 = vadd.f32 %v11106_v61, %v5623_v37  ;;  %v5624_v34 = vmul.f32 %v11097_v33, %v5549_v7  ;;  %v8421_v57 = vadd.f32 %v8339_v62, %v8003_v54  ;;  %v5304_v43 = vpop.f32.mrb[57].mxu0  ;;  %v8008_v30 = vpop.f32.mrb[62].mxu1 }
 0x357   : > { %7205 = vst [vmem:[%s11136_s10 + $0xc0] sm:$0xff] %v7135_v23   ;;  %v5696_v13 = vadd.f32 %v11106_v61, %v5621_v41  ;;  %v5622_v40 = vmul.f32 %v11097_v33, %v5547_v44  ;;  %v8422_v28 = vadd.f32 %v5304_v43, %v3135_v3  ;;  %v8340_v51 = vpop.f32.mrb[58].mxu0  ;;  %v3154_v25 = vpop.f32.mrb[63].mxu1 }
 0x358   : > { %v5699_v22 = vadd.f32 %v11106_v61, %v5624_v34  ;;  %v5484_v26 = vadd.f32 %v11454_v27, %v8421_v57  ;;  %v8423_v52 = vadd.f32 %v8340_v51, %v8004_v11  ;;  %v5307_v54 = vpop.f32.mrb[59].mxu0  ;;  %v6174_v33 = vmul.f32 %v11396_v1, %v5698_v29 }
 0x359   : > { %v5697_v21 = vadd.f32 %v11106_v61, %v5622_v40  ;;  %v5482_v58 = vadd.f32 %v11454_v27, %v8422_v28  ;;  %v8424_v31 = vadd.f32 %v5307_v54, %v3138_v55  ;;  %v6172_v9 = vmul.f32 %v11374_v10, %v5696_v13 }
 0x35a   : > { %v6175_v15 = vmul.f32 %v11391_v63, %v5699_v22  ;;  %v5552_v3 = vmax.f32 %v5484_v26, 0.0  ;;  %v5485_v24 = vadd.f32 %v11454_v27, %v8423_v52  ;;  %v11472_v63 = vld [vmem:[%s11543_s3] ss:$0 sm:$0xff] }
 0x35b   : > { %v6173_v56 = vmul.f32 %v11369_v8, %v5697_v21  ;;  %v5550_v11 = vmax.f32 %v5482_v58, 0.0  ;;  %v5483_v61 = vadd.f32 %v11454_v27, %v8424_v31 }
 0x35c   : > { %v7150_v2 = vpack.c.bf16 %v6175_v15, %v6174_v33  ;;  %v5627_v1 = vmul.f32 %v11472_v63, %v5552_v3  ;;  %v5553_v53 = vmax.f32 %v5485_v24, 0.0  ;;  %v8011_v18 = vpop.f32.mrb[64].mxu1 }
 0x35d   : > { %v7145_v55 = vpack.c.bf16 %v6173_v56, %v6172_v9  ;;  %v5625_v10 = vmul.f32 %v11472_v63, %v5550_v11  ;;  %v5551_v8 = vmax.f32 %v5483_v61, 0.0  ;;  %v8343_v0 = vpop.f32.mrb[60].mxu0  ;;  %v3167_v19 = vpop.f32.mrb[65].mxu1 }
 0x35e   : > { %7208 = vst [vmem:[%s11136_s10 + $0xd8] sm:$0xff] %v7150_v2   ;;  %v5702_v16 = vadd.f32 %v11480_v48, %v5627_v1  ;;  %v5628_v35 = vmul.f32 %v11472_v63, %v5553_v53  ;;  %v8425_v50 = vadd.f32 %v8343_v0, %v8007_v46  ;;  %v5320_v39 = vpop.f32.mrb[61].mxu0  ;;  %v8012_v4 = vpop.f32.mrb[66].mxu1 }
 0x35f   : > { %7207 = vst [vmem:[%s11136_s10 + $0xd0] sm:$0xff] %v7145_v55   ;;  %v5700_v12 = vadd.f32 %v11480_v48, %v5625_v10  ;;  %v5626_v47 = vmul.f32 %v11472_v63, %v5551_v8  ;;  %v8426_v36 = vadd.f32 %v5320_v39, %v3151_v45  ;;  %v8344_v6 = vpop.f32.mrb[62].mxu0  ;;  %v3170_v42 = vpop.f32.mrb[67].mxu1 }
 0x360   : > { %v5703_v17 = vadd.f32 %v11480_v48, %v5628_v35  ;;  %v5488_v59 = vadd.f32 %v11454_v27, %v8425_v50  ;;  %v8427_v32 = vadd.f32 %v8344_v6, %v8008_v30  ;;  %v5323_v37 = vpop.f32.mrb[63].mxu0  ;;  %v6178_v41 = vmul.f32 %v11440_v20, %v5702_v16  ;;  %v6098_v30 = vpop.permute.xlu1 %6097 }
 0x361   : > { %v5701_v7 = vadd.f32 %v11480_v48, %v5626_v47  ;;  %v5486_v46 = vadd.f32 %v11454_v27, %v8426_v36  ;;  %v8428_v23 = vadd.f32 %v5323_v37, %v3154_v25  ;;  %v6176_v29 = vmul.f32 %v11418_v5, %v5700_v12  ;;  %v6093_v20 = vpop.permute.xlu0 %6092 }
 0x362   : > { %v6179_v44 = vmul.f32 %v11435_v38, %v5703_v17  ;;  %v5556_v62 = vmax.f32 %v5488_v59, 0.0  ;;  %v5489_v45 = vadd.f32 %v11454_v27, %v8427_v32 }
 0x363   : > { %v6177_v34 = vmul.f32 %v11413_v14, %v5701_v7  ;;  %v5554_v57 = vmax.f32 %v5486_v46, 0.0  ;;  %v5487_v43 = vadd.f32 %v11454_v27, %v8428_v23 }
 0x364   : > { %v7160_v13 = vpack.c.bf16 %v6179_v44, %v6178_v41  ;;  %v5631_v40 = vmul.f32 %v11472_v63, %v5556_v62  ;;  %v5557_v28 = vmax.f32 %v5489_v45, 0.0 }
 0x365   : > { %v7155_v51 = vpack.c.bf16 %v6177_v34, %v6176_v29  ;;  %v5629_v38 = vmul.f32 %v11472_v63, %v5554_v57  ;;  %v5555_v25 = vmax.f32 %v5487_v43, 0.0  ;;  %v8347_v22 = vpop.f32.mrb[64].mxu0  ;;  %v6103_v55 = vpop.permute.xlu0 %6102 }
 0x366   : > { %7210 = vst [vmem:[%s11136_s10 + $0xe8] sm:$0xff] %v7160_v13   ;;  %v5706_v5 = vadd.f32 %v11480_v48, %v5631_v40  ;;  %v5632_v14 = vmul.f32 %v11472_v63, %v5557_v28  ;;  %v8429_v26 = vadd.f32 %v8347_v22, %v8011_v18  ;;  %v5336_v52 = vpop.f32.mrb[65].mxu0  ;;  %v6108_v18 = vpop.permute.xlu1 %6107 }
 0x367   : > { %7209 = vst [vmem:[%s11136_s10 + $0xe0] sm:$0xff] %v7155_v51   ;;  %v5704_v54 = vadd.f32 %v11480_v48, %v5629_v38  ;;  %v5630_v21 = vmul.f32 %v11472_v63, %v5555_v25  ;;  %v8430_v58 = vadd.f32 %v5336_v52, %v3167_v19  ;;  %v8348_v31 = vpop.f32.mrb[66].mxu0 }
 0x368   : > { %v5707_v33 = vadd.f32 %v11480_v48, %v5632_v14  ;;  %v5492_v15 = vadd.f32 %v11454_v27, %v8429_v26  ;;  %v8431_v3 = vadd.f32 %v8348_v31, %v8012_v4  ;;  %v5339_v24 = vpop.f32.mrb[67].mxu0  ;;  %v6182_v61 = vmul.f32 %v6093_v20, %v5706_v5 }
 0x369   : > { %v5705_v9 = vadd.f32 %v11480_v48, %v5630_v21  ;;  %v5490_v56 = vadd.f32 %v11454_v27, %v8430_v58  ;;  %v8432_v11 = vadd.f32 %v5339_v24, %v3170_v42  ;;  %v6180_v10 = vmul.f32 %v11467_v49, %v5704_v54  ;;  %v6113_v42 = vpop.permute.xlu0 %6112 }
 0x36a   : > { %v6183_v2 = vmul.f32 %v6098_v30, %v5707_v33  ;;  %v5560_v1 = vmax.f32 %v5492_v15, 0.0  ;;  %v5493_v53 = vadd.f32 %v11454_v27, %v8431_v3  ;;  %v6118_v6 = vpop.permute.xlu1 %6117 }
 0x36b   : > { %v6181_v8 = vmul.f32 %v11462_v60, %v5705_v9  ;;  %v5558_v0 = vmax.f32 %v5490_v56, 0.0  ;;  %v5491_v19 = vadd.f32 %v11454_v27, %v8432_v11 }
 0x36c   : > { %v7170_v16 = vpack.c.bf16 %v6183_v2, %v6182_v61  ;;  %v5635_v35 = vmul.f32 %v11472_v63, %v5560_v1  ;;  %v5561_v50 = vmax.f32 %v5493_v53, 0.0 }
 0x36d   : > { %v7165_v39 = vpack.c.bf16 %v6181_v8, %v6180_v10  ;;  %v5633_v4 = vmul.f32 %v11472_v63, %v5558_v0  ;;  %v5559_v12 = vmax.f32 %v5491_v19, 0.0 }
 0x36e   : > { %7212 = vst [vmem:[%s11136_s10 + $0xf8] sm:$0xff] %v7170_v16   ;;  %v5710_v47 = vadd.f32 %v11480_v48, %v5635_v35  ;;  %v5636_v49 = vmul.f32 %v11472_v63, %v5561_v50 }
 0x36f   : > { %7211 = vst [vmem:[%s11136_s10 + $0xf0] sm:$0xff] %v7165_v39   ;;  %v5708_v60 = vadd.f32 %v11480_v48, %v5633_v4  ;;  %v5634_v27 = vmul.f32 %v11472_v63, %v5559_v12 }
 0x370   : > { %v5711_v36 = vadd.f32 %v11480_v48, %v5636_v49  ;;  %v6186_v59 = vmul.f32 %v6113_v42, %v5710_v47 }
 0x371   : > { %v5709_v17 = vadd.f32 %v11480_v48, %v5634_v27  ;;  %v6184_v37 = vmul.f32 %v6103_v55, %v5708_v60 }
 0x372   : > { %v6187_v32 = vmul.f32 %v6118_v6, %v5711_v36 }
 0x373   : > { %v6185_v7 = vmul.f32 %v6108_v18, %v5709_v17 }
 0x374   : > { %v7180_v46 = vpack.c.bf16 %v6187_v32, %v6186_v59 }
 0x375   : > { %v7175_v23 = vpack.c.bf16 %v6185_v7, %v6184_v37 }
 0x376   : > { %7214 = vst [vmem:[%s11136_s10 + $0x108] sm:$0xff] %v7180_v46  }
 0x377   : > { %7213 = vst [vmem:[%s11136_s10 + $0x100] sm:$0xff] %v7175_v23  }
 0x378 PF: > { %s16_s25 = sadd.s32 1, %s9167_s25   ;;  %s11881_s21 = smov %s9159_s23 }
 0x379   : > { %p13_p7 = scmp.ge.s32.totalorder %s16_s25, 6   ;;  %s11882_s22 = smov %s9163_s24 }
 0x37a   : > { %s11883_s23 = smov %s11886_s26  ;;  %s11884_s24 = smov %s11890_s27 }
 0x37b   :  { %15 = sbr.rel (!%p13_p7) target bundleno = 3 (0x3), region = 82 }

</bundles_post_ra>
